<compile_context>
chip_gen: v7x
topology: tpu7x:2x2x1
jax: 0.10.0
libtpu: 0.0.40
codegen_flags: <defaults>
</compile_context>

<pallas_src>
import jax
import jax.numpy as jnp
from jax.experimental import pallas as pl
from jax.experimental.pallas import tpu as pltpu

# ---- model hyper-parameters (small, consistent with the module) ----
N_BATCH    = 2
VOCAB      = 16          # src_vocab_size
EMBED      = 32          # embed_size
HEADS      = 4
HEAD_DIM   = EMBED // HEADS
SEQ        = 8           # == max_length
NUM_LAYERS = 1
FFN_HIDDEN = 4 * EMBED   # forward_expansion * embed_size
FC_HIDDEN  = 2048        # hard-coded in the reference module
OUT_DIM    = 2
LN_EPS     = 1e-5
BN_EPS     = 1e-5
TOKENS     = N_BATCH * SEQ


def _layernorm(x, g, b):
    mu = jnp.mean(x, axis=-1, keepdims=True)
    var = jnp.mean((x - mu) ** 2, axis=-1, keepdims=True)
    return (x - mu) * jax.lax.rsqrt(var + LN_EPS) * g + b


def _softmax_lastdim(e):
    m = jnp.max(e, axis=-1, keepdims=True)
    p = jnp.exp(e - m)
    return p / jnp.sum(p, axis=-1, keepdims=True)


# ---------------- fused kernel ----------------

def fused_kernel(src_ref, we_ref, be_ref, pos_ref,
                 wq_ref, wk_ref, wv_ref, wo_ref,
                 ln1g_ref, ln1b_ref, w1_ref, b1_ref, w2_ref, b2_ref,
                 ln2g_ref, ln2b_ref,
                 fc1w_hbm_ref, fc2w_ref, fc2b_ref,
                 o_ref,
                 fc1w_vmem, fc1_sem):
    f32 = jnp.float32

    # Kick off the per-slab DMAs of the dominant fc1 weight (HBM -> VMEM) right away
    # so the ~1 MiB transfer overlaps the encoder compute and the early fc1 matmuls.
    fc1_cps = [pltpu.make_async_copy(fc1w_hbm_ref.at[s], fc1w_vmem.at[s], fc1_sem.at[s])
               for s in range(SEQ)]
    for cp in fc1_cps:
        cp.start()

    # -- Encoder embedding: Linear(vocab -> embed) + position embedding (dropout=0) --
    x = jnp.dot(src_ref[...], we_ref[...], preferred_element_type=f32)
    x = x + be_ref[...] + pos_ref[...]                        # (TOKENS, EMBED)

    # -- TransformerBlocks (value = key = query = x; mask unused in the reference) --
    scale = 1.0 / (float(EMBED) ** 0.5)   # reference divides by embed_size**0.5
    for l in range(NUM_LAYERS):
        # block-diagonal per-head projections: one (16,32)x(32,32) MXU op each
        q = jnp.dot(x, wq_ref[l], preferred_element_type=f32)
        k = jnp.dot(x, wk_ref[l], preferred_element_type=f32)
        v = jnp.dot(x, wv_ref[l], preferred_element_type=f32)
        # tile-aligned leading-dim split (8-row groups): (TOKENS, E) -> (N, SEQ, E)
        q3 = q.reshape(N_BATCH, SEQ, EMBED)
        k3 = k.reshape(N_BATCH, SEQ, EMBED)
        v3 = v.reshape(N_BATCH, SEQ, EMBED)
        wo = wo_ref[l]                                         # (EMBED, EMBED)

        att = jnp.zeros((TOKENS, EMBED), dtype=f32)
        for h in range(HEADS):              # static unroll; each step batched over N
            sl = slice(h * HEAD_DIM, (h + 1) * HEAD_DIM)
            qh, kh, vh = q3[:, :, sl], k3[:, :, sl], v3[:, :, sl]
            e = jnp.einsum('nqd,nkd->nqk', qh, kh,
                           preferred_element_type=f32) * scale
            a = _softmax_lastdim(e)
            oh = jnp.einsum('nqk,nkd->nqd', a, vh, preferred_element_type=f32)
            # concat-over-heads followed by fc_out == sum over heads of
            # (head output) @ (matching rows of Wo)  -> no lane-axis concat needed.
            att = att + jnp.dot(oh.reshape(TOKENS, HEAD_DIM), wo[sl, :],
                                preferred_element_type=f32)

        h1 = _layernorm(att + x, ln1g_ref[l], ln1b_ref[l])
        ff = jnp.dot(h1, w1_ref[l], preferred_element_type=f32) + b1_ref[l]
        ff = jnp.maximum(ff, 0.0)
        ff = jnp.dot(ff, w2_ref[l], preferred_element_type=f32) + b2_ref[l]
        x = _layernorm(ff + h1, ln2g_ref[l], ln2b_ref[l])      # (TOKENS, EMBED)

    # -- Head: flatten(SEQ*EMBED) -> fc1 -> (folded BN + fc2) --
    # The flatten is decomposed as a sum over tile-aligned SEQ slices, so no
    # sublane->lane reshape is required inside the kernel.  fc1_b and BatchNorm
    # (eval) are folded host-side into fc2w/fc2b, so only the matmuls remain.
    enc_bf = x.astype(jnp.bfloat16).reshape(N_BATCH, SEQ, EMBED)
    hfc = jnp.zeros((N_BATCH, FC_HIDDEN), dtype=f32)
    for s in range(SEQ):
        fc1_cps[s].wait()                       # slab s is now resident in VMEM
        hfc = hfc + jnp.dot(enc_bf[:, s, :], fc1w_vmem[s],
                            preferred_element_type=f32)
    out = jnp.dot(hfc, fc2w_ref[...], preferred_element_type=f32) + fc2b_ref[...]
    o_ref[...] = out                                           # (N_BATCH, OUT_DIM)


# ---------------- wrapper ----------------

def transformer_forward(src, prep):
    """Single fused pallas_call: whole batch + all weights resident in VMEM,
    with the big fc1 weight streamed in via manual async DMA."""
    vmem = lambda: pl.BlockSpec(memory_space=pltpu.MemorySpace.VMEM)
    args_specs = [
        (src.reshape(TOKENS, VOCAB), vmem()),
        (prep["we"], vmem()), (prep["be"], vmem()), (prep["pos"], vmem()),
        (prep["wq"], vmem()), (prep["wk"], vmem()),
        (prep["wv"], vmem()), (prep["wo"], vmem()),
        (prep["ln1g"], vmem()), (prep["ln1b"], vmem()),
        (prep["w1"], vmem()), (prep["b1"], vmem()),
        (prep["w2"], vmem()), (prep["b2"], vmem()),
        (prep["ln2g"], vmem()), (prep["ln2b"], vmem()),
        (prep["fc1w"], pl.BlockSpec(memory_space=pl.ANY)),   # stays in HBM; manual DMA
        (prep["fc2w"], vmem()), (prep["fc2b"], vmem()),
    ]
    args = [a for a, _ in args_specs]
    in_specs = [s for _, s in args_specs]

    flops = (2 * TOKENS * VOCAB * EMBED
             + NUM_LAYERS * (3 * 2 * TOKENS * EMBED * EMBED                       # q/k/v
                             + 2 * 2 * N_BATCH * HEADS * SEQ * SEQ * HEAD_DIM     # scores+AV
                             + 2 * TOKENS * EMBED * EMBED                         # fc_out
                             + 2 * 2 * TOKENS * EMBED * FFN_HIDDEN)               # FFN
             + 2 * N_BATCH * SEQ * EMBED * FC_HIDDEN                              # fc1
             + 2 * N_BATCH * FC_HIDDEN * OUT_DIM)                                 # fc2
    transcendentals = NUM_LAYERS * (N_BATCH * HEADS * SEQ * SEQ + 2 * TOKENS)
    bytes_accessed = (sum(int(a.size) * a.dtype.itemsize for a in args)
                      + N_BATCH * OUT_DIM * 4)

    out = pl.pallas_call(
        fused_kernel,
        out_shape=jax.ShapeDtypeStruct((N_BATCH, OUT_DIM), jnp.float32),
        in_specs=in_specs,
        out_specs=pl.BlockSpec(memory_space=pltpu.MemorySpace.VMEM),
        scratch_shapes=[pltpu.VMEM((SEQ, EMBED, FC_HIDDEN), jnp.bfloat16),
                        pltpu.SemaphoreType.DMA((SEQ,))],
        cost_estimate=pl.CostEstimate(flops=flops,
                                      transcendentals=transcendentals,
                                      bytes_accessed=bytes_accessed),
    )(*args)
    return out


# ---------------- host-side parameter prep ----------------

def prepare_params(params):
    """One-time host-side weight prep:
       - per-head q/k/v weights expanded to block-diagonal (EMBED, EMBED);
       - positional embedding tiled over the batch;
       - BatchNorm1d (eval mode) + fc1 bias folded exactly into fc2 (row-scaled
         fc2_w, folded fc2_b) -> fewer inputs, fewer in-kernel ops, no 128-lane
         zero-padded fc2 weight in HBM;
       - fc1_w cast to bf16 and reshaped to (SEQ, EMBED, FC_HIDDEN) for
         tile-aligned accumulation and per-slab DMA streaming."""
    eye = jnp.eye(HEADS, dtype=jnp.float32)
    bd = lambda w: jnp.kron(eye, w)                  # (HEAD_DIM,HEAD_DIM) -> (EMBED,EMBED)
    stack = lambda key, fn=(lambda w: w): jnp.stack([fn(lp[key]) for lp in params["layers"]])

    # eval-mode BatchNorm as affine:  h_bn = h * bns + bnh
    bns = params["bn_g"] * jax.lax.rsqrt(params["bn_v"] + BN_EPS)      # (1, FC_HIDDEN)
    bnh = params["bn_b"] - params["bn_m"] * bns                        # (1, FC_HIDDEN)
    # fold (fc1_b, BN) through fc2:  out = (flat@W1)@W2f + b2f
    fc2w = params["fc2_w"] * bns.reshape(-1, 1)                        # (FC_HIDDEN, OUT_DIM)
    fc2b = params["fc2_b"] + (params["fc1_b"] * bns + bnh) @ params["fc2_w"]

    return {
        "we": params["w_emb"], "be": params["b_emb"],
        "pos": jnp.tile(params["pos_emb"], (N_BATCH, 1)),
        "wq": stack("wq", bd), "wk": stack("wk", bd), "wv": stack("wv", bd),
        "wo": stack("wo"),
        "ln1g": stack("ln1_g"), "ln1b": stack("ln1_b"),
        "w1": stack("ff_w1"), "b1": stack("ff_b1"),
        "w2": stack("ff_w2"), "b2": stack("ff_b2"),
        "ln2g": stack("ln2_g"), "ln2b": stack("ln2_b"),
        "fc1w": params["fc1_w"].reshape(SEQ, EMBED, FC_HIDDEN).astype(jnp.bfloat16),
        "fc2w": fc2w,
        "fc2b": fc2b,
    }


# ---------------- deterministic parameter init (PyTorch-style fresh params) ----------------

def init_params(key):
    ks = iter(jax.random.split(key, 64))
    rnd = lambda shape, s=0.05: (s * jax.random.normal(next(ks), shape)).astype(jnp.float32)
    params = {
        "w_emb": rnd((VOCAB, EMBED)),
        "b_emb": rnd((1, EMBED)),
        "pos_emb": rnd((SEQ, EMBED)),
        "fc1_w": rnd((SEQ * EMBED, FC_HIDDEN)),
        "fc1_b": rnd((1, FC_HIDDEN)),
        "bn_g": jnp.ones((1, FC_HIDDEN), jnp.float32),
        "bn_b": jnp.zeros((1, FC_HIDDEN), jnp.float32),
        "bn_m": jnp.zeros((1, FC_HIDDEN), jnp.float32),
        "bn_v": jnp.ones((1, FC_HIDDEN), jnp.float32),
        "fc2_w": rnd((FC_HIDDEN, OUT_DIM)),
        "fc2_b": rnd((1, OUT_DIM)),
        "layers": [],
    }
    for _ in range(NUM_LAYERS):
        params["layers"].append({
            "wq": rnd((HEAD_DIM, HEAD_DIM)), "wk": rnd((HEAD_DIM, HEAD_DIM)),
            "wv": rnd((HEAD_DIM, HEAD_DIM)), "wo": rnd((EMBED, EMBED)),
            "ln1_g": jnp.ones((1, EMBED), jnp.float32),
            "ln1_b": jnp.zeros((1, EMBED), jnp.float32),
            "ff_w1": rnd((EMBED, FFN_HIDDEN)), "ff_b1": rnd((1, FFN_HIDDEN)),
            "ff_w2": rnd((FFN_HIDDEN, EMBED)), "ff_b2": rnd((1, EMBED)),
            "ln2_g": jnp.ones((1, EMBED), jnp.float32),
            "ln2_b": jnp.zeros((1, EMBED), jnp.float32),
        })
    return params


# ---------------- plain-JAX f32 reference (mirrors the PyTorch module) ----------------

def reference_forward(src, params):
    x = src @ params["w_emb"] + params["b_emb"] + params["pos_emb"][None]
    for lp in params["layers"]:
        x4 = x.reshape(N_BATCH, SEQ, HEADS, HEAD_DIM)
        q, k, v = x4 @ lp["wq"], x4 @ lp["wk"], x4 @ lp["wv"]
        e = jnp.einsum('nqhd,nkhd->nhqk', q, k) / (EMBED ** 0.5)
        a = jax.nn.softmax(e, axis=-1)
        o = jnp.einsum('nhqk,nkhd->nqhd', a, v).reshape(N_BATCH, SEQ, EMBED)
        att = o @ lp["wo"]
        h1 = _layernorm(att + x, lp["ln1_g"], lp["ln1_b"])
        ff = jnp.maximum(h1 @ lp["ff_w1"] + lp["ff_b1"], 0.0) @ lp["ff_w2"] + lp["ff_b2"]
        x = _layernorm(ff + h1, lp["ln2_g"], lp["ln2_b"])
    flat = x.reshape(N_BATCH, SEQ * EMBED)
    h = flat @ params["fc1_w"] + params["fc1_b"]
    h = (h - params["bn_m"]) * jax.lax.rsqrt(params["bn_v"] + BN_EPS) * params["bn_g"] + params["bn_b"]
    return h @ params["fc2_w"] + params["fc2_b"]


if __name__ == "__main__":
    key = jax.random.PRNGKey(0)
    pkey, xkey = jax.random.split(key)
    params = init_params(pkey)
    prep = prepare_params(params)
    # src: (N, seq_length == max_length, src_vocab_size) float input (word_embedding
    # is nn.Linear(src_vocab_size, embed_size) in the reference).
    src = jax.random.normal(xkey, (N_BATCH, SEQ, VOCAB), dtype=jnp.float32)

    fwd = jax.jit(transformer_forward)
    out = jax.block_until_ready(fwd(src, prep))

    assert out.shape == (N_BATCH, OUT_DIM) and out.dtype == jnp.float32
    assert bool(jnp.all(jnp.isfinite(out)))

    # sanity check against the plain-JAX f32 reference (loose tol: bf16 fc1 weights)
    ref = reference_forward(src, params)
    assert bool(jnp.allclose(out, ref, rtol=5e-2, atol=5e-2)), \
        f"max abs diff {float(jnp.max(jnp.abs(out - ref)))}"
    print("KERNEL_OK")
</pallas_src>

<mosaic_0001>
module attributes {stable_mosaic.version = 11 : i64} {
  func.func @fused_kernel(%arg0: memref<16x16xf32, #tpu.memory_space<vmem>>, %arg1: memref<16x32xf32, #tpu.memory_space<vmem>>, %arg2: memref<1x32xf32, #tpu.memory_space<vmem>>, %arg3: memref<16x32xf32, #tpu.memory_space<vmem>>, %arg4: memref<1x32x32xf32, #tpu.memory_space<vmem>>, %arg5: memref<1x32x32xf32, #tpu.memory_space<vmem>>, %arg6: memref<1x32x32xf32, #tpu.memory_space<vmem>>, %arg7: memref<1x32x32xf32, #tpu.memory_space<vmem>>, %arg8: memref<1x1x32xf32, #tpu.memory_space<vmem>>, %arg9: memref<1x1x32xf32, #tpu.memory_space<vmem>>, %arg10: memref<1x32x128xf32, #tpu.memory_space<vmem>>, %arg11: memref<1x1x128xf32, #tpu.memory_space<vmem>>, %arg12: memref<1x128x32xf32, #tpu.memory_space<vmem>>, %arg13: memref<1x1x32xf32, #tpu.memory_space<vmem>>, %arg14: memref<1x1x32xf32, #tpu.memory_space<vmem>>, %arg15: memref<1x1x32xf32, #tpu.memory_space<vmem>>, %arg16: memref<8x32x2048xbf16, #tpu.memory_space<any>>, %arg17: memref<2048x2xf32, #tpu.memory_space<vmem>>, %arg18: memref<1x2xf32, #tpu.memory_space<vmem>>, %arg19: memref<2x2xf32, #tpu.memory_space<vmem>>, %arg20: memref<8x32x2048xbf16, #tpu.memory_space<vmem>>, %arg21: memref<8x!tpu.dma_semaphore, #tpu.memory_space<semaphore_mem>>) attributes {dimension_semantics = [], scalar_prefetch = 0 : i64, scratch_operands = 2 : i64, tpu.core_type = #tpu.core_type<tc>} {
    %c0_i32 = arith.constant 0 : i32
    %c0_i32_0 = arith.constant 0 : i32
    %c0_i32_1 = arith.constant 0 : i32
    %c0_i32_2 = arith.constant 0 : i32
    %c0_i32_3 = arith.constant 0 : i32
    %0 = tpu.memref_slice %arg16[%c0_i32, %c0_i32_2, %c0_i32_3] : memref<8x32x2048xbf16, #tpu.memory_space<any>> -> memref<1x32x2048xbf16, #tpu.memory_space<any>>
    %1 = tpu.memref_squeeze %0 : memref<1x32x2048xbf16, #tpu.memory_space<any>> -> memref<32x2048xbf16, #tpu.memory_space<any>>
    %c0_i32_4 = arith.constant 0 : i32
    %c0_i32_5 = arith.constant 0 : i32
    %2 = tpu.memref_slice %arg20[%c0_i32_0, %c0_i32_4, %c0_i32_5] : memref<8x32x2048xbf16, #tpu.memory_space<vmem>> -> memref<1x32x2048xbf16, #tpu.memory_space<vmem>>
    %3 = tpu.memref_squeeze %2 : memref<1x32x2048xbf16, #tpu.memory_space<vmem>> -> memref<32x2048xbf16, #tpu.memory_space<vmem>>
    %4 = tpu.memref_slice %arg21[%c0_i32_1] : memref<8x!tpu.dma_semaphore, #tpu.memory_space<semaphore_mem>> -> memref<1x!tpu.dma_semaphore, #tpu.memory_space<semaphore_mem>>
    %5 = tpu.memref_squeeze %4 : memref<1x!tpu.dma_semaphore, #tpu.memory_space<semaphore_mem>> -> memref<!tpu.dma_semaphore, #tpu.memory_space<semaphore_mem>>
    tpu.enqueue_dma source(%1 : memref<32x2048xbf16, #tpu.memory_space<any>>) target(%3 : memref<32x2048xbf16, #tpu.memory_space<vmem>>) target_semaphore(%5 : memref<!tpu.dma_semaphore, #tpu.memory_space<semaphore_mem>>)
    %c1_i32 = arith.constant 1 : i32
    %c1_i32_6 = arith.constant 1 : i32
    %c1_i32_7 = arith.constant 1 : i32
    %c0_i32_8 = arith.constant 0 : i32
    %c0_i32_9 = arith.constant 0 : i32
    %6 = tpu.memref_slice %arg16[%c1_i32, %c0_i32_8, %c0_i32_9] : memref<8x32x2048xbf16, #tpu.memory_space<any>> -> memref<1x32x2048xbf16, #tpu.memory_space<any>>
    %7 = tpu.memref_squeeze %6 : memref<1x32x2048xbf16, #tpu.memory_space<any>> -> memref<32x2048xbf16, #tpu.memory_space<any>>
    %c0_i32_10 = arith.constant 0 : i32
    %c0_i32_11 = arith.constant 0 : i32
    %8 = tpu.memref_slice %arg20[%c1_i32_6, %c0_i32_10, %c0_i32_11] : memref<8x32x2048xbf16, #tpu.memory_space<vmem>> -> memref<1x32x2048xbf16, #tpu.memory_space<vmem>>
    %9 = tpu.memref_squeeze %8 : memref<1x32x2048xbf16, #tpu.memory_space<vmem>> -> memref<32x2048xbf16, #tpu.memory_space<vmem>>
    %10 = tpu.memref_slice %arg21[%c1_i32_7] : memref<8x!tpu.dma_semaphore, #tpu.memory_space<semaphore_mem>> -> memref<1x!tpu.dma_semaphore, #tpu.memory_space<semaphore_mem>>
    %11 = tpu.memref_squeeze %10 : memref<1x!tpu.dma_semaphore, #tpu.memory_space<semaphore_mem>> -> memref<!tpu.dma_semaphore, #tpu.memory_space<semaphore_mem>>
    tpu.enqueue_dma source(%7 : memref<32x2048xbf16, #tpu.memory_space<any>>) target(%9 : memref<32x2048xbf16, #tpu.memory_space<vmem>>) target_semaphore(%11 : memref<!tpu.dma_semaphore, #tpu.memory_space<semaphore_mem>>)
    %c2_i32 = arith.constant 2 : i32
    %c2_i32_12 = arith.constant 2 : i32
    %c2_i32_13 = arith.constant 2 : i32
    %c0_i32_14 = arith.constant 0 : i32
    %c0_i32_15 = arith.constant 0 : i32
    %12 = tpu.memref_slice %arg16[%c2_i32, %c0_i32_14, %c0_i32_15] : memref<8x32x2048xbf16, #tpu.memory_space<any>> -> memref<1x32x2048xbf16, #tpu.memory_space<any>>
    %13 = tpu.memref_squeeze %12 : memref<1x32x2048xbf16, #tpu.memory_space<any>> -> memref<32x2048xbf16, #tpu.memory_space<any>>
    %c0_i32_16 = arith.constant 0 : i32
    %c0_i32_17 = arith.constant 0 : i32
    %14 = tpu.memref_slice %arg20[%c2_i32_12, %c0_i32_16, %c0_i32_17] : memref<8x32x2048xbf16, #tpu.memory_space<vmem>> -> memref<1x32x2048xbf16, #tpu.memory_space<vmem>>
    %15 = tpu.memref_squeeze %14 : memref<1x32x2048xbf16, #tpu.memory_space<vmem>> -> memref<32x2048xbf16, #tpu.memory_space<vmem>>
    %16 = tpu.memref_slice %arg21[%c2_i32_13] : memref<8x!tpu.dma_semaphore, #tpu.memory_space<semaphore_mem>> -> memref<1x!tpu.dma_semaphore, #tpu.memory_space<semaphore_mem>>
    %17 = tpu.memref_squeeze %16 : memref<1x!tpu.dma_semaphore, #tpu.memory_space<semaphore_mem>> -> memref<!tpu.dma_semaphore, #tpu.memory_space<semaphore_mem>>
    tpu.enqueue_dma source(%13 : memref<32x2048xbf16, #tpu.memory_space<any>>) target(%15 : memref<32x2048xbf16, #tpu.memory_space<vmem>>) target_semaphore(%17 : memref<!tpu.dma_semaphore, #tpu.memory_space<semaphore_mem>>)
    %c3_i32 = arith.constant 3 : i32
    %c3_i32_18 = arith.constant 3 : i32
    %c3_i32_19 = arith.constant 3 : i32
    %c0_i32_20 = arith.constant 0 : i32
    %c0_i32_21 = arith.constant 0 : i32
    %18 = tpu.memref_slice %arg16[%c3_i32, %c0_i32_20, %c0_i32_21] : memref<8x32x2048xbf16, #tpu.memory_space<any>> -> memref<1x32x2048xbf16, #tpu.memory_space<any>>
    %19 = tpu.memref_squeeze %18 : memref<1x32x2048xbf16, #tpu.memory_space<any>> -> memref<32x2048xbf16, #tpu.memory_space<any>>
    %c0_i32_22 = arith.constant 0 : i32
    %c0_i32_23 = arith.constant 0 : i32
    %20 = tpu.memref_slice %arg20[%c3_i32_18, %c0_i32_22, %c0_i32_23] : memref<8x32x2048xbf16, #tpu.memory_space<vmem>> -> memref<1x32x2048xbf16, #tpu.memory_space<vmem>>
    %21 = tpu.memref_squeeze %20 : memref<1x32x2048xbf16, #tpu.memory_space<vmem>> -> memref<32x2048xbf16, #tpu.memory_space<vmem>>
    %22 = tpu.memref_slice %arg21[%c3_i32_19] : memref<8x!tpu.dma_semaphore, #tpu.memory_space<semaphore_mem>> -> memref<1x!tpu.dma_semaphore, #tpu.memory_space<semaphore_mem>>
    %23 = tpu.memref_squeeze %22 : memref<1x!tpu.dma_semaphore, #tpu.memory_space<semaphore_mem>> -> memref<!tpu.dma_semaphore, #tpu.memory_space<semaphore_mem>>
    tpu.enqueue_dma source(%19 : memref<32x2048xbf16, #tpu.memory_space<any>>) target(%21 : memref<32x2048xbf16, #tpu.memory_space<vmem>>) target_semaphore(%23 : memref<!tpu.dma_semaphore, #tpu.memory_space<semaphore_mem>>)
    %c4_i32 = arith.constant 4 : i32
    %c4_i32_24 = arith.constant 4 : i32
    %c4_i32_25 = arith.constant 4 : i32
    %c0_i32_26 = arith.constant 0 : i32
    %c0_i32_27 = arith.constant 0 : i32
    %24 = tpu.memref_slice %arg16[%c4_i32, %c0_i32_26, %c0_i32_27] : memref<8x32x2048xbf16, #tpu.memory_space<any>> -> memref<1x32x2048xbf16, #tpu.memory_space<any>>
    %25 = tpu.memref_squeeze %24 : memref<1x32x2048xbf16, #tpu.memory_space<any>> -> memref<32x2048xbf16, #tpu.memory_space<any>>
    %c0_i32_28 = arith.constant 0 : i32
    %c0_i32_29 = arith.constant 0 : i32
    %26 = tpu.memref_slice %arg20[%c4_i32_24, %c0_i32_28, %c0_i32_29] : memref<8x32x2048xbf16, #tpu.memory_space<vmem>> -> memref<1x32x2048xbf16, #tpu.memory_space<vmem>>
    %27 = tpu.memref_squeeze %26 : memref<1x32x2048xbf16, #tpu.memory_space<vmem>> -> memref<32x2048xbf16, #tpu.memory_space<vmem>>
    %28 = tpu.memref_slice %arg21[%c4_i32_25] : memref<8x!tpu.dma_semaphore, #tpu.memory_space<semaphore_mem>> -> memref<1x!tpu.dma_semaphore, #tpu.memory_space<semaphore_mem>>
    %29 = tpu.memref_squeeze %28 : memref<1x!tpu.dma_semaphore, #tpu.memory_space<semaphore_mem>> -> memref<!tpu.dma_semaphore, #tpu.memory_space<semaphore_mem>>
    tpu.enqueue_dma source(%25 : memref<32x2048xbf16, #tpu.memory_space<any>>) target(%27 : memref<32x2048xbf16, #tpu.memory_space<vmem>>) target_semaphore(%29 : memref<!tpu.dma_semaphore, #tpu.memory_space<semaphore_mem>>)
    %c5_i32 = arith.constant 5 : i32
    %c5_i32_30 = arith.constant 5 : i32
    %c5_i32_31 = arith.constant 5 : i32
    %c0_i32_32 = arith.constant 0 : i32
    %c0_i32_33 = arith.constant 0 : i32
    %30 = tpu.memref_slice %arg16[%c5_i32, %c0_i32_32, %c0_i32_33] : memref<8x32x2048xbf16, #tpu.memory_space<any>> -> memref<1x32x2048xbf16, #tpu.memory_space<any>>
    %31 = tpu.memref_squeeze %30 : memref<1x32x2048xbf16, #tpu.memory_space<any>> -> memref<32x2048xbf16, #tpu.memory_space<any>>
    %c0_i32_34 = arith.constant 0 : i32
    %c0_i32_35 = arith.constant 0 : i32
    %32 = tpu.memref_slice %arg20[%c5_i32_30, %c0_i32_34, %c0_i32_35] : memref<8x32x2048xbf16, #tpu.memory_space<vmem>> -> memref<1x32x2048xbf16, #tpu.memory_space<vmem>>
    %33 = tpu.memref_squeeze %32 : memref<1x32x2048xbf16, #tpu.memory_space<vmem>> -> memref<32x2048xbf16, #tpu.memory_space<vmem>>
    %34 = tpu.memref_slice %arg21[%c5_i32_31] : memref<8x!tpu.dma_semaphore, #tpu.memory_space<semaphore_mem>> -> memref<1x!tpu.dma_semaphore, #tpu.memory_space<semaphore_mem>>
    %35 = tpu.memref_squeeze %34 : memref<1x!tpu.dma_semaphore, #tpu.memory_space<semaphore_mem>> -> memref<!tpu.dma_semaphore, #tpu.memory_space<semaphore_mem>>
    tpu.enqueue_dma source(%31 : memref<32x2048xbf16, #tpu.memory_space<any>>) target(%33 : memref<32x2048xbf16, #tpu.memory_space<vmem>>) target_semaphore(%35 : memref<!tpu.dma_semaphore, #tpu.memory_space<semaphore_mem>>)
    %c6_i32 = arith.constant 6 : i32
    %c6_i32_36 = arith.constant 6 : i32
    %c6_i32_37 = arith.constant 6 : i32
    %c0_i32_38 = arith.constant 0 : i32
    %c0_i32_39 = arith.constant 0 : i32
    %36 = tpu.memref_slice %arg16[%c6_i32, %c0_i32_38, %c0_i32_39] : memref<8x32x2048xbf16, #tpu.memory_space<any>> -> memref<1x32x2048xbf16, #tpu.memory_space<any>>
    %37 = tpu.memref_squeeze %36 : memref<1x32x2048xbf16, #tpu.memory_space<any>> -> memref<32x2048xbf16, #tpu.memory_space<any>>
    %c0_i32_40 = arith.constant 0 : i32
    %c0_i32_41 = arith.constant 0 : i32
    %38 = tpu.memref_slice %arg20[%c6_i32_36, %c0_i32_40, %c0_i32_41] : memref<8x32x2048xbf16, #tpu.memory_space<vmem>> -> memref<1x32x2048xbf16, #tpu.memory_space<vmem>>
    %39 = tpu.memref_squeeze %38 : memref<1x32x2048xbf16, #tpu.memory_space<vmem>> -> memref<32x2048xbf16, #tpu.memory_space<vmem>>
    %40 = tpu.memref_slice %arg21[%c6_i32_37] : memref<8x!tpu.dma_semaphore, #tpu.memory_space<semaphore_mem>> -> memref<1x!tpu.dma_semaphore, #tpu.memory_space<semaphore_mem>>
    %41 = tpu.memref_squeeze %40 : memref<1x!tpu.dma_semaphore, #tpu.memory_space<semaphore_mem>> -> memref<!tpu.dma_semaphore, #tpu.memory_space<semaphore_mem>>
    tpu.enqueue_dma source(%37 : memref<32x2048xbf16, #tpu.memory_space<any>>) target(%39 : memref<32x2048xbf16, #tpu.memory_space<vmem>>) target_semaphore(%41 : memref<!tpu.dma_semaphore, #tpu.memory_space<semaphore_mem>>)
    %c7_i32 = arith.constant 7 : i32
    %c7_i32_42 = arith.constant 7 : i32
    %c7_i32_43 = arith.constant 7 : i32
    %c0_i32_44 = arith.constant 0 : i32
    %c0_i32_45 = arith.constant 0 : i32
    %42 = tpu.memref_slice %arg16[%c7_i32, %c0_i32_44, %c0_i32_45] : memref<8x32x2048xbf16, #tpu.memory_space<any>> -> memref<1x32x2048xbf16, #tpu.memory_space<any>>
    %43 = tpu.memref_squeeze %42 : memref<1x32x2048xbf16, #tpu.memory_space<any>> -> memref<32x2048xbf16, #tpu.memory_space<any>>
    %c0_i32_46 = arith.constant 0 : i32
    %c0_i32_47 = arith.constant 0 : i32
    %44 = tpu.memref_slice %arg20[%c7_i32_42, %c0_i32_46, %c0_i32_47] : memref<8x32x2048xbf16, #tpu.memory_space<vmem>> -> memref<1x32x2048xbf16, #tpu.memory_space<vmem>>
    %45 = tpu.memref_squeeze %44 : memref<1x32x2048xbf16, #tpu.memory_space<vmem>> -> memref<32x2048xbf16, #tpu.memory_space<vmem>>
    %46 = tpu.memref_slice %arg21[%c7_i32_43] : memref<8x!tpu.dma_semaphore, #tpu.memory_space<semaphore_mem>> -> memref<1x!tpu.dma_semaphore, #tpu.memory_space<semaphore_mem>>
    %47 = tpu.memref_squeeze %46 : memref<1x!tpu.dma_semaphore, #tpu.memory_space<semaphore_mem>> -> memref<!tpu.dma_semaphore, #tpu.memory_space<semaphore_mem>>
    tpu.enqueue_dma source(%43 : memref<32x2048xbf16, #tpu.memory_space<any>>) target(%45 : memref<32x2048xbf16, #tpu.memory_space<vmem>>) target_semaphore(%47 : memref<!tpu.dma_semaphore, #tpu.memory_space<semaphore_mem>>)
    %c0 = arith.constant 0 : index
    %c0_48 = arith.constant 0 : index
    %48 = vector.load %arg0[%c0, %c0_48] : memref<16x16xf32, #tpu.memory_space<vmem>>, vector<16x16xf32>
    %c0_49 = arith.constant 0 : index
    %c0_50 = arith.constant 0 : index
    %49 = vector.load %arg1[%c0_49, %c0_50] : memref<16x32xf32, #tpu.memory_space<vmem>>, vector<16x32xf32>
    %cst = arith.constant dense<0.000000e+00> : vector<16x32xf32>
    %50 = tpu.matmul %48, %49, %cst {dimension_numbers = #tpu.dot_dimension_numbers<[1], [0], [0], [1], [0, 0, 1, 1], [], []>} : vector<16x16xf32>, vector<16x32xf32>, vector<16x32xf32> -> vector<16x32xf32>
    %c0_51 = arith.constant 0 : index
    %c0_52 = arith.constant 0 : index
    %51 = vector.load %arg2[%c0_51, %c0_52] : memref<1x32xf32, #tpu.memory_space<vmem>>, vector<1x32xf32>
    %52 = vector.broadcast %51 : vector<1x32xf32> to vector<16x32xf32>
    %53 = arith.addf %50, %52 : vector<16x32xf32>
    %c0_53 = arith.constant 0 : index
    %c0_54 = arith.constant 0 : index
    %54 = vector.load %arg3[%c0_53, %c0_54] : memref<16x32xf32, #tpu.memory_space<vmem>>, vector<16x32xf32>
    %55 = arith.addf %53, %54 : vector<16x32xf32>
    %c0_55 = arith.constant 0 : index
    %c0_56 = arith.constant 0 : index
    %c0_57 = arith.constant 0 : index
    %56 = vector.load %arg4[%c0_55, %c0_56, %c0_57] : memref<1x32x32xf32, #tpu.memory_space<vmem>>, vector<1x32x32xf32>
    %57 = vector.shape_cast %56 : vector<1x32x32xf32> to vector<32x32xf32>
    %cst_58 = arith.constant dense<0.000000e+00> : vector<16x32xf32>
    %58 = tpu.matmul %55, %57, %cst_58 {dimension_numbers = #tpu.dot_dimension_numbers<[1], [0], [0], [1], [0, 0, 1, 1], [], []>} : vector<16x32xf32>, vector<32x32xf32>, vector<16x32xf32> -> vector<16x32xf32>
    %c0_59 = arith.constant 0 : index
    %c0_60 = arith.constant 0 : index
    %c0_61 = arith.constant 0 : index
    %59 = vector.load %arg5[%c0_59, %c0_60, %c0_61] : memref<1x32x32xf32, #tpu.memory_space<vmem>>, vector<1x32x32xf32>
    %60 = vector.shape_cast %59 : vector<1x32x32xf32> to vector<32x32xf32>
    %cst_62 = arith.constant dense<0.000000e+00> : vector<16x32xf32>
    %61 = tpu.matmul %55, %60, %cst_62 {dimension_numbers = #tpu.dot_dimension_numbers<[1], [0], [0], [1], [0, 0, 1, 1], [], []>} : vector<16x32xf32>, vector<32x32xf32>, vector<16x32xf32> -> vector<16x32xf32>
    %c0_63 = arith.constant 0 : index
    %c0_64 = arith.constant 0 : index
    %c0_65 = arith.constant 0 : index
    %62 = vector.load %arg6[%c0_63, %c0_64, %c0_65] : memref<1x32x32xf32, #tpu.memory_space<vmem>>, vector<1x32x32xf32>
    %63 = vector.shape_cast %62 : vector<1x32x32xf32> to vector<32x32xf32>
    %cst_66 = arith.constant dense<0.000000e+00> : vector<16x32xf32>
    %64 = tpu.matmul %55, %63, %cst_66 {dimension_numbers = #tpu.dot_dimension_numbers<[1], [0], [0], [1], [0, 0, 1, 1], [], []>} : vector<16x32xf32>, vector<32x32xf32>, vector<16x32xf32> -> vector<16x32xf32>
    %65 = vector.shape_cast %58 : vector<16x32xf32> to vector<2x8x32xf32>
    %66 = vector.shape_cast %61 : vector<16x32xf32> to vector<2x8x32xf32>
    %67 = vector.shape_cast %64 : vector<16x32xf32> to vector<2x8x32xf32>
    %c0_67 = arith.constant 0 : index
    %c0_68 = arith.constant 0 : index
    %c0_69 = arith.constant 0 : index
    %68 = vector.load %arg7[%c0_67, %c0_68, %c0_69] : memref<1x32x32xf32, #tpu.memory_space<vmem>>, vector<1x32x32xf32>
    %69 = vector.shape_cast %68 : vector<1x32x32xf32> to vector<32x32xf32>
    %cst_70 = arith.constant 0.000000e+00 : f32
    %70 = vector.broadcast %cst_70 : f32 to vector<16x32xf32>
    %71 = vector.extract_strided_slice %65 {offsets = [0, 0, 0], sizes = [2, 8, 8], strides = [1, 1, 1]} : vector<2x8x32xf32> to vector<2x8x8xf32>
    %72 = vector.extract_strided_slice %66 {offsets = [0, 0, 0], sizes = [2, 8, 8], strides = [1, 1, 1]} : vector<2x8x32xf32> to vector<2x8x8xf32>
    %73 = vector.extract_strided_slice %67 {offsets = [0, 0, 0], sizes = [2, 8, 8], strides = [1, 1, 1]} : vector<2x8x32xf32> to vector<2x8x8xf32>
    "tpu.trace_start"() <{level = 10 : i32, message = "nqd,nkd->nqk"}> : () -> ()
    %cst_71 = arith.constant dense<0.000000e+00> : vector<2x8x8xf32>
    %74 = tpu.matmul %71, %72, %cst_71 {dimension_numbers = #tpu.dot_dimension_numbers<[2], [2], [1], [1], [0, 0, 0, 1, 1, 1], [0], [0]>} : vector<2x8x8xf32>, vector<2x8x8xf32>, vector<2x8x8xf32> -> vector<2x8x8xf32>
    "tpu.trace_stop"() : () -> ()
    %cst_72 = arith.constant 0.176776692 : f32
    %75 = vector.broadcast %cst_72 : f32 to vector<2x8x8xf32>
    %76 = arith.mulf %74, %75 : vector<2x8x8xf32>
    %cst_73 = arith.constant dense<0xFF800000> : vector<2x8xf32>
    %77 = vector.multi_reduction <maximumf>, %76, %cst_73 [2] : vector<2x8x8xf32> to vector<2x8xf32>
    %78 = vector.shape_cast %77 : vector<2x8xf32> to vector<2x8x1xf32>
    %79 = vector.broadcast %78 : vector<2x8x1xf32> to vector<2x8x8xf32>
    %80 = arith.subf %76, %79 : vector<2x8x8xf32>
    %81 = math.exp %80 : vector<2x8x8xf32>
    %cst_74 = arith.constant dense<0.000000e+00> : vector<2x8xf32>
    %82 = vector.multi_reduction <add>, %81, %cst_74 [2] : vector<2x8x8xf32> to vector<2x8xf32>
    %83 = vector.shape_cast %82 : vector<2x8xf32> to vector<2x8x1xf32>
    %84 = vector.broadcast %83 : vector<2x8x1xf32> to vector<2x8x8xf32>
    %85 = arith.divf %81, %84 : vector<2x8x8xf32>
    "tpu.trace_start"() <{level = 10 : i32, message = "nqk,nkd->nqd"}> : () -> ()
    %cst_75 = arith.constant dense<0.000000e+00> : vector<2x8x8xf32>
    %86 = tpu.matmul %85, %73, %cst_75 {dimension_numbers = #tpu.dot_dimension_numbers<[2], [1], [1], [2], [0, 0, 0, 1, 1, 2], [0], [0]>} : vector<2x8x8xf32>, vector<2x8x8xf32>, vector<2x8x8xf32> -> vector<2x8x8xf32>
    "tpu.trace_stop"() : () -> ()
    %87 = vector.shape_cast %86 : vector<2x8x8xf32> to vector<16x8xf32>
    %88 = vector.extract_strided_slice %69 {offsets = [0, 0], sizes = [8, 32], strides = [1, 1]} : vector<32x32xf32> to vector<8x32xf32>
    %cst_76 = arith.constant dense<0.000000e+00> : vector<16x32xf32>
    %89 = tpu.matmul %87, %88, %cst_76 {dimension_numbers = #tpu.dot_dimension_numbers<[1], [0], [0], [1], [0, 0, 1, 1], [], []>} : vector<16x8xf32>, vector<8x32xf32>, vector<16x32xf32> -> vector<16x32xf32>
    %90 = arith.addf %70, %89 : vector<16x32xf32>
    %91 = vector.extract_strided_slice %65 {offsets = [0, 0, 8], sizes = [2, 8, 8], strides = [1, 1, 1]} : vector<2x8x32xf32> to vector<2x8x8xf32>
    %92 = vector.extract_strided_slice %66 {offsets = [0, 0, 8], sizes = [2, 8, 8], strides = [1, 1, 1]} : vector<2x8x32xf32> to vector<2x8x8xf32>
    %93 = vector.extract_strided_slice %67 {offsets = [0, 0, 8], sizes = [2, 8, 8], strides = [1, 1, 1]} : vector<2x8x32xf32> to vector<2x8x8xf32>
    "tpu.trace_start"() <{level = 10 : i32, message = "nqd,nkd->nqk"}> : () -> ()
    %cst_77 = arith.constant dense<0.000000e+00> : vector<2x8x8xf32>
    %94 = tpu.matmul %91, %92, %cst_77 {dimension_numbers = #tpu.dot_dimension_numbers<[2], [2], [1], [1], [0, 0, 0, 1, 1, 1], [0], [0]>} : vector<2x8x8xf32>, vector<2x8x8xf32>, vector<2x8x8xf32> -> vector<2x8x8xf32>
    "tpu.trace_stop"() : () -> ()
    %cst_78 = arith.constant 0.176776692 : f32
    %95 = vector.broadcast %cst_78 : f32 to vector<2x8x8xf32>
    %96 = arith.mulf %94, %95 : vector<2x8x8xf32>
    %cst_79 = arith.constant dense<0xFF800000> : vector<2x8xf32>
    %97 = vector.multi_reduction <maximumf>, %96, %cst_79 [2] : vector<2x8x8xf32> to vector<2x8xf32>
    %98 = vector.shape_cast %97 : vector<2x8xf32> to vector<2x8x1xf32>
    %99 = vector.broadcast %98 : vector<2x8x1xf32> to vector<2x8x8xf32>
    %100 = arith.subf %96, %99 : vector<2x8x8xf32>
    %101 = math.exp %100 : vector<2x8x8xf32>
    %cst_80 = arith.constant dense<0.000000e+00> : vector<2x8xf32>
    %102 = vector.multi_reduction <add>, %101, %cst_80 [2] : vector<2x8x8xf32> to vector<2x8xf32>
    %103 = vector.shape_cast %102 : vector<2x8xf32> to vector<2x8x1xf32>
    %104 = vector.broadcast %103 : vector<2x8x1xf32> to vector<2x8x8xf32>
    %105 = arith.divf %101, %104 : vector<2x8x8xf32>
    "tpu.trace_start"() <{level = 10 : i32, message = "nqk,nkd->nqd"}> : () -> ()
    %cst_81 = arith.constant dense<0.000000e+00> : vector<2x8x8xf32>
    %106 = tpu.matmul %105, %93, %cst_81 {dimension_numbers = #tpu.dot_dimension_numbers<[2], [1], [1], [2], [0, 0, 0, 1, 1, 2], [0], [0]>} : vector<2x8x8xf32>, vector<2x8x8xf32>, vector<2x8x8xf32> -> vector<2x8x8xf32>
    "tpu.trace_stop"() : () -> ()
    %107 = vector.shape_cast %106 : vector<2x8x8xf32> to vector<16x8xf32>
    %108 = vector.extract_strided_slice %69 {offsets = [8, 0], sizes = [8, 32], strides = [1, 1]} : vector<32x32xf32> to vector<8x32xf32>
    %cst_82 = arith.constant dense<0.000000e+00> : vector<16x32xf32>
    %109 = tpu.matmul %107, %108, %cst_82 {dimension_numbers = #tpu.dot_dimension_numbers<[1], [0], [0], [1], [0, 0, 1, 1], [], []>} : vector<16x8xf32>, vector<8x32xf32>, vector<16x32xf32> -> vector<16x32xf32>
    %110 = arith.addf %90, %109 : vector<16x32xf32>
    %111 = vector.extract_strided_slice %65 {offsets = [0, 0, 16], sizes = [2, 8, 8], strides = [1, 1, 1]} : vector<2x8x32xf32> to vector<2x8x8xf32>
    %112 = vector.extract_strided_slice %66 {offsets = [0, 0, 16], sizes = [2, 8, 8], strides = [1, 1, 1]} : vector<2x8x32xf32> to vector<2x8x8xf32>
    %113 = vector.extract_strided_slice %67 {offsets = [0, 0, 16], sizes = [2, 8, 8], strides = [1, 1, 1]} : vector<2x8x32xf32> to vector<2x8x8xf32>
    "tpu.trace_start"() <{level = 10 : i32, message = "nqd,nkd->nqk"}> : () -> ()
    %cst_83 = arith.constant dense<0.000000e+00> : vector<2x8x8xf32>
    %114 = tpu.matmul %111, %112, %cst_83 {dimension_numbers = #tpu.dot_dimension_numbers<[2], [2], [1], [1], [0, 0, 0, 1, 1, 1], [0], [0]>} : vector<2x8x8xf32>, vector<2x8x8xf32>, vector<2x8x8xf32> -> vector<2x8x8xf32>
    "tpu.trace_stop"() : () -> ()
    %cst_84 = arith.constant 0.176776692 : f32
    %115 = vector.broadcast %cst_84 : f32 to vector<2x8x8xf32>
    %116 = arith.mulf %114, %115 : vector<2x8x8xf32>
    %cst_85 = arith.constant dense<0xFF800000> : vector<2x8xf32>
    %117 = vector.multi_reduction <maximumf>, %116, %cst_85 [2] : vector<2x8x8xf32> to vector<2x8xf32>
    %118 = vector.shape_cast %117 : vector<2x8xf32> to vector<2x8x1xf32>
    %119 = vector.broadcast %118 : vector<2x8x1xf32> to vector<2x8x8xf32>
    %120 = arith.subf %116, %119 : vector<2x8x8xf32>
    %121 = math.exp %120 : vector<2x8x8xf32>
    %cst_86 = arith.constant dense<0.000000e+00> : vector<2x8xf32>
    %122 = vector.multi_reduction <add>, %121, %cst_86 [2] : vector<2x8x8xf32> to vector<2x8xf32>
    %123 = vector.shape_cast %122 : vector<2x8xf32> to vector<2x8x1xf32>
    %124 = vector.broadcast %123 : vector<2x8x1xf32> to vector<2x8x8xf32>
    %125 = arith.divf %121, %124 : vector<2x8x8xf32>
    "tpu.trace_start"() <{level = 10 : i32, message = "nqk,nkd->nqd"}> : () -> ()
    %cst_87 = arith.constant dense<0.000000e+00> : vector<2x8x8xf32>
    %126 = tpu.matmul %125, %113, %cst_87 {dimension_numbers = #tpu.dot_dimension_numbers<[2], [1], [1], [2], [0, 0, 0, 1, 1, 2], [0], [0]>} : vector<2x8x8xf32>, vector<2x8x8xf32>, vector<2x8x8xf32> -> vector<2x8x8xf32>
    "tpu.trace_stop"() : () -> ()
    %127 = vector.shape_cast %126 : vector<2x8x8xf32> to vector<16x8xf32>
    %128 = vector.extract_strided_slice %69 {offsets = [16, 0], sizes = [8, 32], strides = [1, 1]} : vector<32x32xf32> to vector<8x32xf32>
    %cst_88 = arith.constant dense<0.000000e+00> : vector<16x32xf32>
    %129 = tpu.matmul %127, %128, %cst_88 {dimension_numbers = #tpu.dot_dimension_numbers<[1], [0], [0], [1], [0, 0, 1, 1], [], []>} : vector<16x8xf32>, vector<8x32xf32>, vector<16x32xf32> -> vector<16x32xf32>
    %130 = arith.addf %110, %129 : vector<16x32xf32>
    %131 = vector.extract_strided_slice %65 {offsets = [0, 0, 24], sizes = [2, 8, 8], strides = [1, 1, 1]} : vector<2x8x32xf32> to vector<2x8x8xf32>
    %132 = vector.extract_strided_slice %66 {offsets = [0, 0, 24], sizes = [2, 8, 8], strides = [1, 1, 1]} : vector<2x8x32xf32> to vector<2x8x8xf32>
    %133 = vector.extract_strided_slice %67 {offsets = [0, 0, 24], sizes = [2, 8, 8], strides = [1, 1, 1]} : vector<2x8x32xf32> to vector<2x8x8xf32>
    "tpu.trace_start"() <{level = 10 : i32, message = "nqd,nkd->nqk"}> : () -> ()
    %cst_89 = arith.constant dense<0.000000e+00> : vector<2x8x8xf32>
    %134 = tpu.matmul %131, %132, %cst_89 {dimension_numbers = #tpu.dot_dimension_numbers<[2], [2], [1], [1], [0, 0, 0, 1, 1, 1], [0], [0]>} : vector<2x8x8xf32>, vector<2x8x8xf32>, vector<2x8x8xf32> -> vector<2x8x8xf32>
    "tpu.trace_stop"() : () -> ()
    %cst_90 = arith.constant 0.176776692 : f32
    %135 = vector.broadcast %cst_90 : f32 to vector<2x8x8xf32>
    %136 = arith.mulf %134, %135 : vector<2x8x8xf32>
    %cst_91 = arith.constant dense<0xFF800000> : vector<2x8xf32>
    %137 = vector.multi_reduction <maximumf>, %136, %cst_91 [2] : vector<2x8x8xf32> to vector<2x8xf32>
    %138 = vector.shape_cast %137 : vector<2x8xf32> to vector<2x8x1xf32>
    %139 = vector.broadcast %138 : vector<2x8x1xf32> to vector<2x8x8xf32>
    %140 = arith.subf %136, %139 : vector<2x8x8xf32>
    %141 = math.exp %140 : vector<2x8x8xf32>
    %cst_92 = arith.constant dense<0.000000e+00> : vector<2x8xf32>
    %142 = vector.multi_reduction <add>, %141, %cst_92 [2] : vector<2x8x8xf32> to vector<2x8xf32>
    %143 = vector.shape_cast %142 : vector<2x8xf32> to vector<2x8x1xf32>
    %144 = vector.broadcast %143 : vector<2x8x1xf32> to vector<2x8x8xf32>
    %145 = arith.divf %141, %144 : vector<2x8x8xf32>
    "tpu.trace_start"() <{level = 10 : i32, message = "nqk,nkd->nqd"}> : () -> ()
    %cst_93 = arith.constant dense<0.000000e+00> : vector<2x8x8xf32>
    %146 = tpu.matmul %145, %133, %cst_93 {dimension_numbers = #tpu.dot_dimension_numbers<[2], [1], [1], [2], [0, 0, 0, 1, 1, 2], [0], [0]>} : vector<2x8x8xf32>, vector<2x8x8xf32>, vector<2x8x8xf32> -> vector<2x8x8xf32>
    "tpu.trace_stop"() : () -> ()
    %147 = vector.shape_cast %146 : vector<2x8x8xf32> to vector<16x8xf32>
    %148 = vector.extract_strided_slice %69 {offsets = [24, 0], sizes = [8, 32], strides = [1, 1]} : vector<32x32xf32> to vector<8x32xf32>
    %cst_94 = arith.constant dense<0.000000e+00> : vector<16x32xf32>
    %149 = tpu.matmul %147, %148, %cst_94 {dimension_numbers = #tpu.dot_dimension_numbers<[1], [0], [0], [1], [0, 0, 1, 1], [], []>} : vector<16x8xf32>, vector<8x32xf32>, vector<16x32xf32> -> vector<16x32xf32>
    %150 = arith.addf %130, %149 : vector<16x32xf32>
    %151 = arith.addf %150, %55 : vector<16x32xf32>
    %c0_95 = arith.constant 0 : index
    %c0_96 = arith.constant 0 : index
    %c0_97 = arith.constant 0 : index
    %152 = vector.load %arg8[%c0_95, %c0_96, %c0_97] : memref<1x1x32xf32, #tpu.memory_space<vmem>>, vector<1x1x32xf32>
    %153 = vector.shape_cast %152 : vector<1x1x32xf32> to vector<1x32xf32>
    %c0_98 = arith.constant 0 : index
    %c0_99 = arith.constant 0 : index
    %c0_100 = arith.constant 0 : index
    %154 = vector.load %arg9[%c0_98, %c0_99, %c0_100] : memref<1x1x32xf32, #tpu.memory_space<vmem>>, vector<1x1x32xf32>
    %155 = vector.shape_cast %154 : vector<1x1x32xf32> to vector<1x32xf32>
    %cst_101 = arith.constant dense<0.000000e+00> : vector<16xf32>
    %156 = vector.multi_reduction <add>, %151, %cst_101 [1] : vector<16x32xf32> to vector<16xf32>
    %157 = vector.shape_cast %156 : vector<16xf32> to vector<16x1xf32>
    %cst_102 = arith.constant 3.200000e+01 : f32
    %158 = vector.broadcast %cst_102 : f32 to vector<16x1xf32>
    %159 = arith.divf %157, %158 : vector<16x1xf32>
    %160 = vector.broadcast %159 : vector<16x1xf32> to vector<16x32xf32>
    %161 = arith.subf %151, %160 : vector<16x32xf32>
    %162 = arith.mulf %161, %161 : vector<16x32xf32>
    %cst_103 = arith.constant dense<0.000000e+00> : vector<16xf32>
    %163 = vector.multi_reduction <add>, %162, %cst_103 [1] : vector<16x32xf32> to vector<16xf32>
    %164 = vector.shape_cast %163 : vector<16xf32> to vector<16x1xf32>
    %cst_104 = arith.constant 3.200000e+01 : f32
    %165 = vector.broadcast %cst_104 : f32 to vector<16x1xf32>
    %166 = arith.divf %164, %165 : vector<16x1xf32>
    %167 = vector.broadcast %159 : vector<16x1xf32> to vector<16x32xf32>
    %168 = arith.subf %151, %167 : vector<16x32xf32>
    %cst_105 = arith.constant 9.99999974E-6 : f32
    %169 = vector.broadcast %cst_105 : f32 to vector<16x1xf32>
    %170 = arith.addf %166, %169 : vector<16x1xf32>
    %171 = math.rsqrt %170 : vector<16x1xf32>
    %172 = vector.broadcast %171 : vector<16x1xf32> to vector<16x32xf32>
    %173 = arith.mulf %168, %172 : vector<16x32xf32>
    %174 = vector.broadcast %153 : vector<1x32xf32> to vector<16x32xf32>
    %175 = arith.mulf %173, %174 : vector<16x32xf32>
    %176 = vector.broadcast %155 : vector<1x32xf32> to vector<16x32xf32>
    %177 = arith.addf %175, %176 : vector<16x32xf32>
    %c0_106 = arith.constant 0 : index
    %c0_107 = arith.constant 0 : index
    %c0_108 = arith.constant 0 : index
    %178 = vector.load %arg10[%c0_106, %c0_107, %c0_108] : memref<1x32x128xf32, #tpu.memory_space<vmem>>, vector<1x32x128xf32>
    %179 = vector.shape_cast %178 : vector<1x32x128xf32> to vector<32x128xf32>
    %cst_109 = arith.constant dense<0.000000e+00> : vector<16x128xf32>
    %180 = tpu.matmul %177, %179, %cst_109 {dimension_numbers = #tpu.dot_dimension_numbers<[1], [0], [0], [1], [0, 0, 1, 1], [], []>} : vector<16x32xf32>, vector<32x128xf32>, vector<16x128xf32> -> vector<16x128xf32>
    %c0_110 = arith.constant 0 : index
    %c0_111 = arith.constant 0 : index
    %c0_112 = arith.constant 0 : index
    %181 = vector.load %arg11[%c0_110, %c0_111, %c0_112] : memref<1x1x128xf32, #tpu.memory_space<vmem>>, vector<1x1x128xf32>
    %182 = vector.shape_cast %181 : vector<1x1x128xf32> to vector<1x128xf32>
    %183 = vector.broadcast %182 : vector<1x128xf32> to vector<16x128xf32>
    %184 = arith.addf %180, %183 : vector<16x128xf32>
    %cst_113 = arith.constant 0.000000e+00 : f32
    %185 = vector.broadcast %cst_113 : f32 to vector<16x128xf32>
    %186 = arith.maximumf %184, %185 : vector<16x128xf32>
    %c0_114 = arith.constant 0 : index
    %c0_115 = arith.constant 0 : index
    %c0_116 = arith.constant 0 : index
    %187 = vector.load %arg12[%c0_114, %c0_115, %c0_116] : memref<1x128x32xf32, #tpu.memory_space<vmem>>, vector<1x128x32xf32>
    %188 = vector.shape_cast %187 : vector<1x128x32xf32> to vector<128x32xf32>
    %cst_117 = arith.constant dense<0.000000e+00> : vector<16x32xf32>
    %189 = tpu.matmul %186, %188, %cst_117 {dimension_numbers = #tpu.dot_dimension_numbers<[1], [0], [0], [1], [0, 0, 1, 1], [], []>} : vector<16x128xf32>, vector<128x32xf32>, vector<16x32xf32> -> vector<16x32xf32>
    %c0_118 = arith.constant 0 : index
    %c0_119 = arith.constant 0 : index
    %c0_120 = arith.constant 0 : index
    %190 = vector.load %arg13[%c0_118, %c0_119, %c0_120] : memref<1x1x32xf32, #tpu.memory_space<vmem>>, vector<1x1x32xf32>
    %191 = vector.shape_cast %190 : vector<1x1x32xf32> to vector<1x32xf32>
    %192 = vector.broadcast %191 : vector<1x32xf32> to vector<16x32xf32>
    %193 = arith.addf %189, %192 : vector<16x32xf32>
    %194 = arith.addf %193, %177 : vector<16x32xf32>
    %c0_121 = arith.constant 0 : index
    %c0_122 = arith.constant 0 : index
    %c0_123 = arith.constant 0 : index
    %195 = vector.load %arg14[%c0_121, %c0_122, %c0_123] : memref<1x1x32xf32, #tpu.memory_space<vmem>>, vector<1x1x32xf32>
    %196 = vector.shape_cast %195 : vector<1x1x32xf32> to vector<1x32xf32>
    %c0_124 = arith.constant 0 : index
    %c0_125 = arith.constant 0 : index
    %c0_126 = arith.constant 0 : index
    %197 = vector.load %arg15[%c0_124, %c0_125, %c0_126] : memref<1x1x32xf32, #tpu.memory_space<vmem>>, vector<1x1x32xf32>
    %198 = vector.shape_cast %197 : vector<1x1x32xf32> to vector<1x32xf32>
    %cst_127 = arith.constant dense<0.000000e+00> : vector<16xf32>
    %199 = vector.multi_reduction <add>, %194, %cst_127 [1] : vector<16x32xf32> to vector<16xf32>
    %200 = vector.shape_cast %199 : vector<16xf32> to vector<16x1xf32>
    %cst_128 = arith.constant 3.200000e+01 : f32
    %201 = vector.broadcast %cst_128 : f32 to vector<16x1xf32>
    %202 = arith.divf %200, %201 : vector<16x1xf32>
    %203 = vector.broadcast %202 : vector<16x1xf32> to vector<16x32xf32>
    %204 = arith.subf %194, %203 : vector<16x32xf32>
    %205 = arith.mulf %204, %204 : vector<16x32xf32>
    %cst_129 = arith.constant dense<0.000000e+00> : vector<16xf32>
    %206 = vector.multi_reduction <add>, %205, %cst_129 [1] : vector<16x32xf32> to vector<16xf32>
    %207 = vector.shape_cast %206 : vector<16xf32> to vector<16x1xf32>
    %cst_130 = arith.constant 3.200000e+01 : f32
    %208 = vector.broadcast %cst_130 : f32 to vector<16x1xf32>
    %209 = arith.divf %207, %208 : vector<16x1xf32>
    %210 = vector.broadcast %202 : vector<16x1xf32> to vector<16x32xf32>
    %211 = arith.subf %194, %210 : vector<16x32xf32>
    %cst_131 = arith.constant 9.99999974E-6 : f32
    %212 = vector.broadcast %cst_131 : f32 to vector<16x1xf32>
    %213 = arith.addf %209, %212 : vector<16x1xf32>
    %214 = math.rsqrt %213 : vector<16x1xf32>
    %215 = vector.broadcast %214 : vector<16x1xf32> to vector<16x32xf32>
    %216 = arith.mulf %211, %215 : vector<16x32xf32>
    %217 = vector.broadcast %196 : vector<1x32xf32> to vector<16x32xf32>
    %218 = arith.mulf %216, %217 : vector<16x32xf32>
    %219 = vector.broadcast %198 : vector<1x32xf32> to vector<16x32xf32>
    %220 = arith.addf %218, %219 : vector<16x32xf32>
    %221 = arith.truncf %220 : vector<16x32xf32> to vector<16x32xbf16>
    %222 = vector.shape_cast %221 : vector<16x32xbf16> to vector<2x8x32xbf16>
    %cst_132 = arith.constant 0.000000e+00 : f32
    %223 = vector.broadcast %cst_132 : f32 to vector<2x2048xf32>
    %c0_i32_133 = arith.constant 0 : i32
    %c0_i32_134 = arith.constant 0 : i32
    %c0_i32_135 = arith.constant 0 : i32
    %c0_i32_136 = arith.constant 0 : i32
    %c0_i32_137 = arith.constant 0 : i32
    %224 = tpu.memref_slice %arg16[%c0_i32_133, %c0_i32_136, %c0_i32_137] : memref<8x32x2048xbf16, #tpu.memory_space<any>> -> memref<1x32x2048xbf16, #tpu.memory_space<any>>
    %225 = tpu.memref_squeeze %224 : memref<1x32x2048xbf16, #tpu.memory_space<any>> -> memref<32x2048xbf16, #tpu.memory_space<any>>
    %c0_i32_138 = arith.constant 0 : i32
    %c0_i32_139 = arith.constant 0 : i32
    %226 = tpu.memref_slice %arg20[%c0_i32_134, %c0_i32_138, %c0_i32_139] : memref<8x32x2048xbf16, #tpu.memory_space<vmem>> -> memref<1x32x2048xbf16, #tpu.memory_space<vmem>>
    %227 = tpu.memref_squeeze %226 : memref<1x32x2048xbf16, #tpu.memory_space<vmem>> -> memref<32x2048xbf16, #tpu.memory_space<vmem>>
    %228 = tpu.memref_slice %arg21[%c0_i32_135] : memref<8x!tpu.dma_semaphore, #tpu.memory_space<semaphore_mem>> -> memref<1x!tpu.dma_semaphore, #tpu.memory_space<semaphore_mem>>
    %229 = tpu.memref_squeeze %228 : memref<1x!tpu.dma_semaphore, #tpu.memory_space<semaphore_mem>> -> memref<!tpu.dma_semaphore, #tpu.memory_space<semaphore_mem>>
    tpu.wait_dma2 semaphore(%229 : memref<!tpu.dma_semaphore, #tpu.memory_space<semaphore_mem>>) src(%225 : memref<32x2048xbf16, #tpu.memory_space<any>>) dst(%227 : memref<32x2048xbf16, #tpu.memory_space<vmem>>)
    %230 = vector.extract_strided_slice %222 {offsets = [0, 0, 0], sizes = [2, 1, 32], strides = [1, 1, 1]} : vector<2x8x32xbf16> to vector<2x1x32xbf16>
    %231 = vector.shape_cast %230 : vector<2x1x32xbf16> to vector<2x32xbf16>
    %c0_140 = arith.constant 0 : index
    %c0_141 = arith.constant 0 : index
    %c0_142 = arith.constant 0 : index
    %232 = vector.load %arg20[%c0_140, %c0_141, %c0_142] : memref<8x32x2048xbf16, #tpu.memory_space<vmem>>, vector<1x32x2048xbf16>
    %233 = vector.shape_cast %232 : vector<1x32x2048xbf16> to vector<32x2048xbf16>
    %cst_143 = arith.constant dense<0.000000e+00> : vector<2x2048xf32>
    %234 = tpu.matmul %231, %233, %cst_143 {dimension_numbers = #tpu.dot_dimension_numbers<[1], [0], [0], [1], [0, 0, 1, 1], [], []>} : vector<2x32xbf16>, vector<32x2048xbf16>, vector<2x2048xf32> -> vector<2x2048xf32>
    %235 = arith.addf %223, %234 : vector<2x2048xf32>
    %c1_i32_144 = arith.constant 1 : i32
    %c1_i32_145 = arith.constant 1 : i32
    %c1_i32_146 = arith.constant 1 : i32
    %c0_i32_147 = arith.constant 0 : i32
    %c0_i32_148 = arith.constant 0 : i32
    %236 = tpu.memref_slice %arg16[%c1_i32_144, %c0_i32_147, %c0_i32_148] : memref<8x32x2048xbf16, #tpu.memory_space<any>> -> memref<1x32x2048xbf16, #tpu.memory_space<any>>
    %237 = tpu.memref_squeeze %236 : memref<1x32x2048xbf16, #tpu.memory_space<any>> -> memref<32x2048xbf16, #tpu.memory_space<any>>
    %c0_i32_149 = arith.constant 0 : i32
    %c0_i32_150 = arith.constant 0 : i32
    %238 = tpu.memref_slice %arg20[%c1_i32_145, %c0_i32_149, %c0_i32_150] : memref<8x32x2048xbf16, #tpu.memory_space<vmem>> -> memref<1x32x2048xbf16, #tpu.memory_space<vmem>>
    %239 = tpu.memref_squeeze %238 : memref<1x32x2048xbf16, #tpu.memory_space<vmem>> -> memref<32x2048xbf16, #tpu.memory_space<vmem>>
    %240 = tpu.memref_slice %arg21[%c1_i32_146] : memref<8x!tpu.dma_semaphore, #tpu.memory_space<semaphore_mem>> -> memref<1x!tpu.dma_semaphore, #tpu.memory_space<semaphore_mem>>
    %241 = tpu.memref_squeeze %240 : memref<1x!tpu.dma_semaphore, #tpu.memory_space<semaphore_mem>> -> memref<!tpu.dma_semaphore, #tpu.memory_space<semaphore_mem>>
    tpu.wait_dma2 semaphore(%241 : memref<!tpu.dma_semaphore, #tpu.memory_space<semaphore_mem>>) src(%237 : memref<32x2048xbf16, #tpu.memory_space<any>>) dst(%239 : memref<32x2048xbf16, #tpu.memory_space<vmem>>)
    %242 = vector.extract_strided_slice %222 {offsets = [0, 1, 0], sizes = [2, 1, 32], strides = [1, 1, 1]} : vector<2x8x32xbf16> to vector<2x1x32xbf16>
    %243 = vector.shape_cast %242 : vector<2x1x32xbf16> to vector<2x32xbf16>
    %c1 = arith.constant 1 : index
    %c0_151 = arith.constant 0 : index
    %c0_152 = arith.constant 0 : index
    %244 = vector.load %arg20[%c1, %c0_151, %c0_152] : memref<8x32x2048xbf16, #tpu.memory_space<vmem>>, vector<1x32x2048xbf16>
    %245 = vector.shape_cast %244 : vector<1x32x2048xbf16> to vector<32x2048xbf16>
    %cst_153 = arith.constant dense<0.000000e+00> : vector<2x2048xf32>
    %246 = tpu.matmul %243, %245, %cst_153 {dimension_numbers = #tpu.dot_dimension_numbers<[1], [0], [0], [1], [0, 0, 1, 1], [], []>} : vector<2x32xbf16>, vector<32x2048xbf16>, vector<2x2048xf32> -> vector<2x2048xf32>
    %247 = arith.addf %235, %246 : vector<2x2048xf32>
    %c2_i32_154 = arith.constant 2 : i32
    %c2_i32_155 = arith.constant 2 : i32
    %c2_i32_156 = arith.constant 2 : i32
    %c0_i32_157 = arith.constant 0 : i32
    %c0_i32_158 = arith.constant 0 : i32
    %248 = tpu.memref_slice %arg16[%c2_i32_154, %c0_i32_157, %c0_i32_158] : memref<8x32x2048xbf16, #tpu.memory_space<any>> -> memref<1x32x2048xbf16, #tpu.memory_space<any>>
    %249 = tpu.memref_squeeze %248 : memref<1x32x2048xbf16, #tpu.memory_space<any>> -> memref<32x2048xbf16, #tpu.memory_space<any>>
    %c0_i32_159 = arith.constant 0 : i32
    %c0_i32_160 = arith.constant 0 : i32
    %250 = tpu.memref_slice %arg20[%c2_i32_155, %c0_i32_159, %c0_i32_160] : memref<8x32x2048xbf16, #tpu.memory_space<vmem>> -> memref<1x32x2048xbf16, #tpu.memory_space<vmem>>
    %251 = tpu.memref_squeeze %250 : memref<1x32x2048xbf16, #tpu.memory_space<vmem>> -> memref<32x2048xbf16, #tpu.memory_space<vmem>>
    %252 = tpu.memref_slice %arg21[%c2_i32_156] : memref<8x!tpu.dma_semaphore, #tpu.memory_space<semaphore_mem>> -> memref<1x!tpu.dma_semaphore, #tpu.memory_space<semaphore_mem>>
    %253 = tpu.memref_squeeze %252 : memref<1x!tpu.dma_semaphore, #tpu.memory_space<semaphore_mem>> -> memref<!tpu.dma_semaphore, #tpu.memory_space<semaphore_mem>>
    tpu.wait_dma2 semaphore(%253 : memref<!tpu.dma_semaphore, #tpu.memory_space<semaphore_mem>>) src(%249 : memref<32x2048xbf16, #tpu.memory_space<any>>) dst(%251 : memref<32x2048xbf16, #tpu.memory_space<vmem>>)
    %254 = vector.extract_strided_slice %222 {offsets = [0, 2, 0], sizes = [2, 1, 32], strides = [1, 1, 1]} : vector<2x8x32xbf16> to vector<2x1x32xbf16>
    %255 = vector.shape_cast %254 : vector<2x1x32xbf16> to vector<2x32xbf16>
    %c2 = arith.constant 2 : index
    %c0_161 = arith.constant 0 : index
    %c0_162 = arith.constant 0 : index
    %256 = vector.load %arg20[%c2, %c0_161, %c0_162] : memref<8x32x2048xbf16, #tpu.memory_space<vmem>>, vector<1x32x2048xbf16>
    %257 = vector.shape_cast %256 : vector<1x32x2048xbf16> to vector<32x2048xbf16>
    %cst_163 = arith.constant dense<0.000000e+00> : vector<2x2048xf32>
    %258 = tpu.matmul %255, %257, %cst_163 {dimension_numbers = #tpu.dot_dimension_numbers<[1], [0], [0], [1], [0, 0, 1, 1], [], []>} : vector<2x32xbf16>, vector<32x2048xbf16>, vector<2x2048xf32> -> vector<2x2048xf32>
    %259 = arith.addf %247, %258 : vector<2x2048xf32>
    %c3_i32_164 = arith.constant 3 : i32
    %c3_i32_165 = arith.constant 3 : i32
    %c3_i32_166 = arith.constant 3 : i32
    %c0_i32_167 = arith.constant 0 : i32
    %c0_i32_168 = arith.constant 0 : i32
    %260 = tpu.memref_slice %arg16[%c3_i32_164, %c0_i32_167, %c0_i32_168] : memref<8x32x2048xbf16, #tpu.memory_space<any>> -> memref<1x32x2048xbf16, #tpu.memory_space<any>>
    %261 = tpu.memref_squeeze %260 : memref<1x32x2048xbf16, #tpu.memory_space<any>> -> memref<32x2048xbf16, #tpu.memory_space<any>>
    %c0_i32_169 = arith.constant 0 : i32
    %c0_i32_170 = arith.constant 0 : i32
    %262 = tpu.memref_slice %arg20[%c3_i32_165, %c0_i32_169, %c0_i32_170] : memref<8x32x2048xbf16, #tpu.memory_space<vmem>> -> memref<1x32x2048xbf16, #tpu.memory_space<vmem>>
    %263 = tpu.memref_squeeze %262 : memref<1x32x2048xbf16, #tpu.memory_space<vmem>> -> memref<32x2048xbf16, #tpu.memory_space<vmem>>
    %264 = tpu.memref_slice %arg21[%c3_i32_166] : memref<8x!tpu.dma_semaphore, #tpu.memory_space<semaphore_mem>> -> memref<1x!tpu.dma_semaphore, #tpu.memory_space<semaphore_mem>>
    %265 = tpu.memref_squeeze %264 : memref<1x!tpu.dma_semaphore, #tpu.memory_space<semaphore_mem>> -> memref<!tpu.dma_semaphore, #tpu.memory_space<semaphore_mem>>
    tpu.wait_dma2 semaphore(%265 : memref<!tpu.dma_semaphore, #tpu.memory_space<semaphore_mem>>) src(%261 : memref<32x2048xbf16, #tpu.memory_space<any>>) dst(%263 : memref<32x2048xbf16, #tpu.memory_space<vmem>>)
    %266 = vector.extract_strided_slice %222 {offsets = [0, 3, 0], sizes = [2, 1, 32], strides = [1, 1, 1]} : vector<2x8x32xbf16> to vector<2x1x32xbf16>
    %267 = vector.shape_cast %266 : vector<2x1x32xbf16> to vector<2x32xbf16>
    %c3 = arith.constant 3 : index
    %c0_171 = arith.constant 0 : index
    %c0_172 = arith.constant 0 : index
    %268 = vector.load %arg20[%c3, %c0_171, %c0_172] : memref<8x32x2048xbf16, #tpu.memory_space<vmem>>, vector<1x32x2048xbf16>
    %269 = vector.shape_cast %268 : vector<1x32x2048xbf16> to vector<32x2048xbf16>
    %cst_173 = arith.constant dense<0.000000e+00> : vector<2x2048xf32>
    %270 = tpu.matmul %267, %269, %cst_173 {dimension_numbers = #tpu.dot_dimension_numbers<[1], [0], [0], [1], [0, 0, 1, 1], [], []>} : vector<2x32xbf16>, vector<32x2048xbf16>, vector<2x2048xf32> -> vector<2x2048xf32>
    %271 = arith.addf %259, %270 : vector<2x2048xf32>
    %c4_i32_174 = arith.constant 4 : i32
    %c4_i32_175 = arith.constant 4 : i32
    %c4_i32_176 = arith.constant 4 : i32
    %c0_i32_177 = arith.constant 0 : i32
    %c0_i32_178 = arith.constant 0 : i32
    %272 = tpu.memref_slice %arg16[%c4_i32_174, %c0_i32_177, %c0_i32_178] : memref<8x32x2048xbf16, #tpu.memory_space<any>> -> memref<1x32x2048xbf16, #tpu.memory_space<any>>
    %273 = tpu.memref_squeeze %272 : memref<1x32x2048xbf16, #tpu.memory_space<any>> -> memref<32x2048xbf16, #tpu.memory_space<any>>
    %c0_i32_179 = arith.constant 0 : i32
    %c0_i32_180 = arith.constant 0 : i32
    %274 = tpu.memref_slice %arg20[%c4_i32_175, %c0_i32_179, %c0_i32_180] : memref<8x32x2048xbf16, #tpu.memory_space<vmem>> -> memref<1x32x2048xbf16, #tpu.memory_space<vmem>>
    %275 = tpu.memref_squeeze %274 : memref<1x32x2048xbf16, #tpu.memory_space<vmem>> -> memref<32x2048xbf16, #tpu.memory_space<vmem>>
    %276 = tpu.memref_slice %arg21[%c4_i32_176] : memref<8x!tpu.dma_semaphore, #tpu.memory_space<semaphore_mem>> -> memref<1x!tpu.dma_semaphore, #tpu.memory_space<semaphore_mem>>
    %277 = tpu.memref_squeeze %276 : memref<1x!tpu.dma_semaphore, #tpu.memory_space<semaphore_mem>> -> memref<!tpu.dma_semaphore, #tpu.memory_space<semaphore_mem>>
    tpu.wait_dma2 semaphore(%277 : memref<!tpu.dma_semaphore, #tpu.memory_space<semaphore_mem>>) src(%273 : memref<32x2048xbf16, #tpu.memory_space<any>>) dst(%275 : memref<32x2048xbf16, #tpu.memory_space<vmem>>)
    %278 = vector.extract_strided_slice %222 {offsets = [0, 4, 0], sizes = [2, 1, 32], strides = [1, 1, 1]} : vector<2x8x32xbf16> to vector<2x1x32xbf16>
    %279 = vector.shape_cast %278 : vector<2x1x32xbf16> to vector<2x32xbf16>
    %c4 = arith.constant 4 : index
    %c0_181 = arith.constant 0 : index
    %c0_182 = arith.constant 0 : index
    %280 = vector.load %arg20[%c4, %c0_181, %c0_182] : memref<8x32x2048xbf16, #tpu.memory_space<vmem>>, vector<1x32x2048xbf16>
    %281 = vector.shape_cast %280 : vector<1x32x2048xbf16> to vector<32x2048xbf16>
    %cst_183 = arith.constant dense<0.000000e+00> : vector<2x2048xf32>
    %282 = tpu.matmul %279, %281, %cst_183 {dimension_numbers = #tpu.dot_dimension_numbers<[1], [0], [0], [1], [0, 0, 1, 1], [], []>} : vector<2x32xbf16>, vector<32x2048xbf16>, vector<2x2048xf32> -> vector<2x2048xf32>
    %283 = arith.addf %271, %282 : vector<2x2048xf32>
    %c5_i32_184 = arith.constant 5 : i32
    %c5_i32_185 = arith.constant 5 : i32
    %c5_i32_186 = arith.constant 5 : i32
    %c0_i32_187 = arith.constant 0 : i32
    %c0_i32_188 = arith.constant 0 : i32
    %284 = tpu.memref_slice %arg16[%c5_i32_184, %c0_i32_187, %c0_i32_188] : memref<8x32x2048xbf16, #tpu.memory_space<any>> -> memref<1x32x2048xbf16, #tpu.memory_space<any>>
    %285 = tpu.memref_squeeze %284 : memref<1x32x2048xbf16, #tpu.memory_space<any>> -> memref<32x2048xbf16, #tpu.memory_space<any>>
    %c0_i32_189 = arith.constant 0 : i32
    %c0_i32_190 = arith.constant 0 : i32
    %286 = tpu.memref_slice %arg20[%c5_i32_185, %c0_i32_189, %c0_i32_190] : memref<8x32x2048xbf16, #tpu.memory_space<vmem>> -> memref<1x32x2048xbf16, #tpu.memory_space<vmem>>
    %287 = tpu.memref_squeeze %286 : memref<1x32x2048xbf16, #tpu.memory_space<vmem>> -> memref<32x2048xbf16, #tpu.memory_space<vmem>>
    %288 = tpu.memref_slice %arg21[%c5_i32_186] : memref<8x!tpu.dma_semaphore, #tpu.memory_space<semaphore_mem>> -> memref<1x!tpu.dma_semaphore, #tpu.memory_space<semaphore_mem>>
    %289 = tpu.memref_squeeze %288 : memref<1x!tpu.dma_semaphore, #tpu.memory_space<semaphore_mem>> -> memref<!tpu.dma_semaphore, #tpu.memory_space<semaphore_mem>>
    tpu.wait_dma2 semaphore(%289 : memref<!tpu.dma_semaphore, #tpu.memory_space<semaphore_mem>>) src(%285 : memref<32x2048xbf16, #tpu.memory_space<any>>) dst(%287 : memref<32x2048xbf16, #tpu.memory_space<vmem>>)
    %290 = vector.extract_strided_slice %222 {offsets = [0, 5, 0], sizes = [2, 1, 32], strides = [1, 1, 1]} : vector<2x8x32xbf16> to vector<2x1x32xbf16>
    %291 = vector.shape_cast %290 : vector<2x1x32xbf16> to vector<2x32xbf16>
    %c5 = arith.constant 5 : index
    %c0_191 = arith.constant 0 : index
    %c0_192 = arith.constant 0 : index
    %292 = vector.load %arg20[%c5, %c0_191, %c0_192] : memref<8x32x2048xbf16, #tpu.memory_space<vmem>>, vector<1x32x2048xbf16>
    %293 = vector.shape_cast %292 : vector<1x32x2048xbf16> to vector<32x2048xbf16>
    %cst_193 = arith.constant dense<0.000000e+00> : vector<2x2048xf32>
    %294 = tpu.matmul %291, %293, %cst_193 {dimension_numbers = #tpu.dot_dimension_numbers<[1], [0], [0], [1], [0, 0, 1, 1], [], []>} : vector<2x32xbf16>, vector<32x2048xbf16>, vector<2x2048xf32> -> vector<2x2048xf32>
    %295 = arith.addf %283, %294 : vector<2x2048xf32>
    %c6_i32_194 = arith.constant 6 : i32
    %c6_i32_195 = arith.constant 6 : i32
    %c6_i32_196 = arith.constant 6 : i32
    %c0_i32_197 = arith.constant 0 : i32
    %c0_i32_198 = arith.constant 0 : i32
    %296 = tpu.memref_slice %arg16[%c6_i32_194, %c0_i32_197, %c0_i32_198] : memref<8x32x2048xbf16, #tpu.memory_space<any>> -> memref<1x32x2048xbf16, #tpu.memory_space<any>>
    %297 = tpu.memref_squeeze %296 : memref<1x32x2048xbf16, #tpu.memory_space<any>> -> memref<32x2048xbf16, #tpu.memory_space<any>>
    %c0_i32_199 = arith.constant 0 : i32
    %c0_i32_200 = arith.constant 0 : i32
    %298 = tpu.memref_slice %arg20[%c6_i32_195, %c0_i32_199, %c0_i32_200] : memref<8x32x2048xbf16, #tpu.memory_space<vmem>> -> memref<1x32x2048xbf16, #tpu.memory_space<vmem>>
    %299 = tpu.memref_squeeze %298 : memref<1x32x2048xbf16, #tpu.memory_space<vmem>> -> memref<32x2048xbf16, #tpu.memory_space<vmem>>
    %300 = tpu.memref_slice %arg21[%c6_i32_196] : memref<8x!tpu.dma_semaphore, #tpu.memory_space<semaphore_mem>> -> memref<1x!tpu.dma_semaphore, #tpu.memory_space<semaphore_mem>>
    %301 = tpu.memref_squeeze %300 : memref<1x!tpu.dma_semaphore, #tpu.memory_space<semaphore_mem>> -> memref<!tpu.dma_semaphore, #tpu.memory_space<semaphore_mem>>
    tpu.wait_dma2 semaphore(%301 : memref<!tpu.dma_semaphore, #tpu.memory_space<semaphore_mem>>) src(%297 : memref<32x2048xbf16, #tpu.memory_space<any>>) dst(%299 : memref<32x2048xbf16, #tpu.memory_space<vmem>>)
    %302 = vector.extract_strided_slice %222 {offsets = [0, 6, 0], sizes = [2, 1, 32], strides = [1, 1, 1]} : vector<2x8x32xbf16> to vector<2x1x32xbf16>
    %303 = vector.shape_cast %302 : vector<2x1x32xbf16> to vector<2x32xbf16>
    %c6 = arith.constant 6 : index
    %c0_201 = arith.constant 0 : index
    %c0_202 = arith.constant 0 : index
    %304 = vector.load %arg20[%c6, %c0_201, %c0_202] : memref<8x32x2048xbf16, #tpu.memory_space<vmem>>, vector<1x32x2048xbf16>
    %305 = vector.shape_cast %304 : vector<1x32x2048xbf16> to vector<32x2048xbf16>
    %cst_203 = arith.constant dense<0.000000e+00> : vector<2x2048xf32>
    %306 = tpu.matmul %303, %305, %cst_203 {dimension_numbers = #tpu.dot_dimension_numbers<[1], [0], [0], [1], [0, 0, 1, 1], [], []>} : vector<2x32xbf16>, vector<32x2048xbf16>, vector<2x2048xf32> -> vector<2x2048xf32>
    %307 = arith.addf %295, %306 : vector<2x2048xf32>
    %c7_i32_204 = arith.constant 7 : i32
    %c7_i32_205 = arith.constant 7 : i32
    %c7_i32_206 = arith.constant 7 : i32
    %c0_i32_207 = arith.constant 0 : i32
    %c0_i32_208 = arith.constant 0 : i32
    %308 = tpu.memref_slice %arg16[%c7_i32_204, %c0_i32_207, %c0_i32_208] : memref<8x32x2048xbf16, #tpu.memory_space<any>> -> memref<1x32x2048xbf16, #tpu.memory_space<any>>
    %309 = tpu.memref_squeeze %308 : memref<1x32x2048xbf16, #tpu.memory_space<any>> -> memref<32x2048xbf16, #tpu.memory_space<any>>
    %c0_i32_209 = arith.constant 0 : i32
    %c0_i32_210 = arith.constant 0 : i32
    %310 = tpu.memref_slice %arg20[%c7_i32_205, %c0_i32_209, %c0_i32_210] : memref<8x32x2048xbf16, #tpu.memory_space<vmem>> -> memref<1x32x2048xbf16, #tpu.memory_space<vmem>>
    %311 = tpu.memref_squeeze %310 : memref<1x32x2048xbf16, #tpu.memory_space<vmem>> -> memref<32x2048xbf16, #tpu.memory_space<vmem>>
    %312 = tpu.memref_slice %arg21[%c7_i32_206] : memref<8x!tpu.dma_semaphore, #tpu.memory_space<semaphore_mem>> -> memref<1x!tpu.dma_semaphore, #tpu.memory_space<semaphore_mem>>
    %313 = tpu.memref_squeeze %312 : memref<1x!tpu.dma_semaphore, #tpu.memory_space<semaphore_mem>> -> memref<!tpu.dma_semaphore, #tpu.memory_space<semaphore_mem>>
    tpu.wait_dma2 semaphore(%313 : memref<!tpu.dma_semaphore, #tpu.memory_space<semaphore_mem>>) src(%309 : memref<32x2048xbf16, #tpu.memory_space<any>>) dst(%311 : memref<32x2048xbf16, #tpu.memory_space<vmem>>)
    %314 = vector.extract_strided_slice %222 {offsets = [0, 7, 0], sizes = [2, 1, 32], strides = [1, 1, 1]} : vector<2x8x32xbf16> to vector<2x1x32xbf16>
    %315 = vector.shape_cast %314 : vector<2x1x32xbf16> to vector<2x32xbf16>
    %c7 = arith.constant 7 : index
    %c0_211 = arith.constant 0 : index
    %c0_212 = arith.constant 0 : index
    %316 = vector.load %arg20[%c7, %c0_211, %c0_212] : memref<8x32x2048xbf16, #tpu.memory_space<vmem>>, vector<1x32x2048xbf16>
    %317 = vector.shape_cast %316 : vector<1x32x2048xbf16> to vector<32x2048xbf16>
    %cst_213 = arith.constant dense<0.000000e+00> : vector<2x2048xf32>
    %318 = tpu.matmul %315, %317, %cst_213 {dimension_numbers = #tpu.dot_dimension_numbers<[1], [0], [0], [1], [0, 0, 1, 1], [], []>} : vector<2x32xbf16>, vector<32x2048xbf16>, vector<2x2048xf32> -> vector<2x2048xf32>
    %319 = arith.addf %307, %318 : vector<2x2048xf32>
    %c0_214 = arith.constant 0 : index
    %c0_215 = arith.constant 0 : index
    %320 = vector.load %arg17[%c0_214, %c0_215] : memref<2048x2xf32, #tpu.memory_space<vmem>>, vector<2048x2xf32>
    %cst_216 = arith.constant dense<0.000000e+00> : vector<2x2xf32>
    %321 = tpu.matmul %319, %320, %cst_216 {dimension_numbers = #tpu.dot_dimension_numbers<[1], [0], [0], [1], [0, 0, 1, 1], [], []>} : vector<2x2048xf32>, vector<2048x2xf32>, vector<2x2xf32> -> vector<2x2xf32>
    %c0_217 = arith.constant 0 : index
    %c0_218 = arith.constant 0 : index
    %322 = vector.load %arg18[%c0_217, %c0_218] : memref<1x2xf32, #tpu.memory_space<vmem>>, vector<1x2xf32>
    %323 = vector.broadcast %322 : vector<1x2xf32> to vector<2x2xf32>
    %324 = arith.addf %321, %323 : vector<2x2xf32>
    %c0_219 = arith.constant 0 : index
    %c0_220 = arith.constant 0 : index
    %325 = vector.load %arg19[%c0_219, %c0_220] : memref<2x2xf32, #tpu.memory_space<vmem>>, vector<2x2xf32>
    tpu.vector_store %arg19[%c0_219, %c0_220], %324 {strides = array<i32>} : memref<2x2xf32, #tpu.memory_space<vmem>>, vector<2x2xf32>,
    return
  }
}

</mosaic_0001>

<bundles_post_ra>
// kernel: transformer_forward.1
= control target key start
LH: loop header
LB: loop body
LE: loop exit
PB: predicated region body
PF: predicated region fallthrough
CT: control target
= control target key end

     0   :  { %s14441_s0 = inlined_call_operand.vmem [shape: f32[16,16], index: 0, kind: input, shape index: {}]   ;;  %s14442_s1 = inlined_call_operand.hbm [shape: f32[16,32], index: 1, kind: input, shape index: {}]   ;;  %s14443_s2 = inlined_call_operand.vmem [shape: f32[1,32], index: 2, kind: input, shape index: {}]   ;;  %s14444_s3 = inlined_call_operand.hbm [shape: f32[16,32], index: 3, kind: input, shape index: {}]   ;;  %s14445_s4 = inlined_call_operand.vmem [shape: f32[1,32,32], index: 4, kind: input, shape index: {}]   ;;  %s14446_s5 = inlined_call_operand.vmem [shape: f32[1,32,32], index: 5, kind: input, shape index: {}]   ;;  %s14447_s6 = inlined_call_operand.vmem [shape: f32[1,32,32], index: 6, kind: input, shape index: {}]   ;;  %s14448_s7 = inlined_call_operand.vmem [shape: f32[1,32,32], index: 7, kind: input, shape index: {}]   ;;  %s14449_s8 = inlined_call_operand.vmem [shape: f32[1,1,32], index: 8, kind: input, shape index: {}]   ;;  %s14450_s9 = inlined_call_operand.vmem [shape: f32[1,1,32], index: 9, kind: input, shape index: {}]   ;;  %s14451_s10 = inlined_call_operand.vmem [shape: f32[1,32,128], index: 10, kind: input, shape index: {}]   ;;  %s14452_s11 = inlined_call_operand.vmem [shape: f32[1,1,128], index: 11, kind: input, shape index: {}]   ;;  %s14453_s12 = inlined_call_operand.vmem [shape: f32[1,128,32], index: 12, kind: input, shape index: {}]   ;;  %s14454_s13 = inlined_call_operand.vmem [shape: f32[1,1,32], index: 13, kind: input, shape index: {}]   ;;  %s14455_s14 = inlined_call_operand.hbm [shape: f32[1,1,32], index: 14, kind: input, shape index: {}]   ;;  %s14456_s15 = inlined_call_operand.hbm [shape: f32[1,1,32], index: 15, kind: input, shape index: {}]   ;;  %s14457_s16 = inlined_call_operand.vmem [shape: bf16[8,32,2048], index: 16, kind: input, shape index: {}]   ;;  %s14458_s17 = inlined_call_operand.vmem [shape: f32[2048,2], index: 17, kind: input, shape index: {}]   ;;  %s14459_s18 = inlined_call_operand.hbm [shape: f32[1,2], index: 18, kind: input, shape index: {}]   ;;  %s14460_s19 = inlined_call_operand.hbm [shape: f32[2,2], index: 19, kind: output, shape index: {}]  }
   0x1   :  { %14466 = sst [smem:[#allocation34_spill]] %s14441_s0 }
   0x2   :  { %14467 = sst [smem:[#allocation35_spill]] %s14442_s1 }
   0x3   :  { %14468 = sst [smem:[#allocation36_spill]] %s14443_s2 }
   0x4   :  { %14469 = sst [smem:[#allocation37_spill]] %s14444_s3 }
   0x5   :  { %24 = vsyncpa [#allocation5], 0 }
   0x6   :  { %25 = vsyncpa [#allocation8], 0 }
   0x7   :  { %26 = vsyncpa [#allocation11], 0 }
   0x8   :  { %27 = vsyncpa [#allocation6], 0  ;;  %s11278_s0 = smov [#allocation7]   ;;  %s11279_s20 = smov [#allocation10]  }
   0x9   :  { %s49_s30 = sshll.u32 %s11278_s0, 4  ;;  %s92_s21 = sshll.u32 %s11279_s20, 4  ;;  %s50_s30 = int_to_ptr.vmem [resolvable:$true] %s49_s30  ;;  %s11392_s21 = int_to_ptr.vmem [resolvable:$true] %s92_s21 }
   0xa   :  { %s14470_s2 = sld [smem:[#allocation37_spill]] }
  0x10   :  { %s11122_s23 = scalar_lea.hbm %s14470_s2, 256 }
  0x11   :  { %p11123_p0 = scmp.ne.s32.totalorder %s14470_s2, %s11122_s23  ;;  %p11126_p1 = scmp.lt.u32.totalorder %s11122_s23, %s14470_s2 }
  0x13   :  { %p11128_p2 = pnand %p11126_p1, %p11123_p0 }
  0x15   :  { %11131 = shalt.err (!%p11128_p2)
}
  0x16   :  { %s11132_s27 = scalar_lea.vmem %s50_s30, 256  ;;  %p11137_p4 = scmp.lt.s32.totalorder %s50_s30, %s50_s30 }
  0x17   :  { %p11133_p3 = scmp.ne.s32.totalorder %s50_s30, %s11132_s27  ;;  %p11138_p5 = scmp.lt.s32.totalorder %s11132_s27, %s11132_s27 }
  0x19   :  { %p11139_p6 = por %p11138_p5, %p11137_p4 }
  0x1b   :  { %p11140_p7 = pnand %p11139_p6, %p11133_p3 }
  0x1d   :  { %11143 = shalt.err (!%p11140_p7)
}
  0x1e   :  { %s14464_s28 = smov 128   ;;  %s14465_s29 = smov 8  }
  0x1f   :  { %55 = dma.hbm_to_vmem [thread:$0]  %s14470_s2, 256, %s50_s30, [#allocation8], %s14464_s28, %s14464_s28, %s14465_s29  }
  0x20   :  { %s11144_s23 = scalar_lea.hbm %s14456_s15, 16 }
  0x21   :  { %p11145_p8 = scmp.ne.s32.totalorder %s14456_s15, %s11144_s23  ;;  %p11148_p9 = scmp.lt.u32.totalorder %s11144_s23, %s14456_s15 }
  0x23   :  { %p11150_p10 = pnand %p11148_p9, %p11145_p8 }
  0x25   :  { %11153 = shalt.err (!%p11150_p10)
}
  0x26   :  { %s11154_s27 = scalar_lea.vmem %s11392_s21, 16  ;;  %s11158_s30 = scalar_lea.vmem %s11392_s21, 32 }
  0x27   :  { %p11155_p11 = scmp.ne.s32.totalorder %s11392_s21, %s11154_s27  ;;  %p11159_p12 = scmp.lt.s32.totalorder %s11392_s21, %s11392_s21 }
  0x28   :  { %p11160_p13 = scmp.lt.s32.totalorder %s11158_s30, %s11154_s27 }
  0x2a   :  { %p11161_p0 = por %p11160_p13, %p11159_p12 }
  0x2c   :  { %p11162_p1 = pnand %p11161_p0, %p11155_p11 }
  0x2e   :  { %11165 = shalt.err (!%p11162_p1)
}
  0x2f   :  { %95 = dma.hbm_to_vmem [thread:$0]  %s14456_s15, 16, %s11392_s21, [#allocation11]  }
  0x30   :  { %s11282_s20 = smov [#allocation4]   ;;  %s11283_s22 = smov [#allocation9]  }
  0x31   :  { %s35_s1 = sshll.u32 %s11282_s20, 4  ;;  %s82_s23 = sshll.u32 %s11283_s22, 4  ;;  %s36_s1 = int_to_ptr.vmem [resolvable:$true] %s35_s1  ;;  %s83_s23 = int_to_ptr.vmem [resolvable:$true] %s82_s23 }
  0x32   :  { %s14471_s3 = sld [smem:[#allocation35_spill]] }
  0x38   :  { %s11166_s26 = scalar_lea.hbm %s14471_s3, 256 }
  0x39   :  { %p11167_p2 = scmp.ne.s32.totalorder %s14471_s3, %s11166_s26  ;;  %p11170_p3 = scmp.lt.u32.totalorder %s11166_s26, %s14471_s3 }
  0x3b   :  { %p11172_p4 = pnand %p11170_p3, %p11167_p2 }
  0x3d   :  { %11175 = shalt.err (!%p11172_p4)
}
  0x3e   :  { %s11176_s15 = scalar_lea.vmem %s36_s1, 256  ;;  %p11181_p6 = scmp.lt.s32.totalorder %s36_s1, %s36_s1 }
  0x3f   :  { %p11177_p5 = scmp.ne.s32.totalorder %s36_s1, %s11176_s15  ;;  %p11182_p7 = scmp.lt.s32.totalorder %s11176_s15, %s11176_s15 }
  0x41   :  { %p11183_p8 = por %p11182_p7, %p11181_p6 }
  0x43   :  { %p11184_p9 = pnand %p11183_p8, %p11177_p5 }
  0x45   :  { %11187 = shalt.err (!%p11184_p9)
}
  0x46   :  { %s14472_s21 = smov 8   ;;  %s14473_s2 = smov 128  }
  0x47   :  { %41 = dma.hbm_to_vmem [thread:$0]  %s14471_s3, 256, %s36_s1, [#allocation5], %s14473_s2, %s14473_s2, %s14472_s21  }
  0x48   :  { %s11188_s29 = scalar_lea.hbm %s14455_s14, 16 }
  0x49   :  { %p11189_p10 = scmp.ne.s32.totalorder %s14455_s14, %s11188_s29  ;;  %p11192_p11 = scmp.lt.u32.totalorder %s11188_s29, %s14455_s14 }
  0x4b   :  { %p11194_p12 = pnand %p11192_p11, %p11189_p10 }
  0x4d   :  { %11197 = shalt.err (!%p11194_p12)
}
  0x4e   :  { %s11198_s30 = scalar_lea.vmem %s83_s23, 16  ;;  %s11202_s15 = scalar_lea.vmem %s83_s23, 32 }
  0x4f   :  { %p11199_p13 = scmp.ne.s32.totalorder %s83_s23, %s11198_s30  ;;  %p11203_p0 = scmp.lt.s32.totalorder %s83_s23, %s83_s23 }
  0x50   :  { %p11204_p1 = scmp.lt.s32.totalorder %s11202_s15, %s11198_s30 }
  0x52   :  { %p11205_p2 = por %p11204_p1, %p11203_p0 }
  0x54   :  { %p11206_p3 = pnand %p11205_p2, %p11199_p13 }
  0x56   :  { %11209 = shalt.err (!%p11206_p3)
}
  0x57   :  { %85 = dma.hbm_to_vmem [thread:$0]  %s14455_s14, 16, %s83_s23, [#allocation8]  }
  0x58   :  { %s11284_s21 = smov [#allocation12]   ;;  %s11210_s28 = scalar_lea.hbm %s14459_s18, 16 }
  0x59   :  { %s104_s2 = sshll.u32 %s11284_s21, 4  ;;  %p11211_p4 = scmp.ne.s32.totalorder %s14459_s18, %s11210_s28  ;;  %s105_s2 = int_to_ptr.vmem [resolvable:$true] %s104_s2 }
  0x5a   :  { %p11214_p5 = scmp.lt.u32.totalorder %s11210_s28, %s14459_s18 }
  0x5c   :  { %p11216_p6 = pnand %p11214_p5, %p11211_p4 }
  0x5e   :  { %11219 = shalt.err (!%p11216_p6)
}
  0x5f   :  { %s11220_s26 = scalar_lea.vmem %s105_s2, 16  ;;  %s11224_s14 = scalar_lea.vmem %s105_s2, 32 }
  0x60   :  { %p11221_p7 = scmp.ne.s32.totalorder %s105_s2, %s11220_s26  ;;  %p11225_p8 = scmp.lt.s32.totalorder %s105_s2, %s105_s2 }
  0x61   :  { %p11226_p9 = scmp.lt.s32.totalorder %s11224_s14, %s11220_s26 }
  0x63   :  { %p11227_p10 = por %p11226_p9, %p11225_p8 }
  0x65   :  { %p11228_p11 = pnand %p11227_p10, %p11221_p7 }
  0x67   :  { %11231 = shalt.err (!%p11228_p11)
}
  0x68   :  { %107 = dma.hbm_to_vmem [thread:$0]  %s14459_s18, 16, %s105_s2, [#allocation11]  }
  0x69   :  { %11254 = dma.done.wait [#allocation5], 256  }
  0x6a   :  { %11255 = vsyncadd [#allocation5], 4294967040 }
  0x6b   :  { %11256 = dma.done.wait [#allocation8], 272  }
  0x6c   :  { %11257 = vsyncadd [#allocation8], 4294967024 }
  0x6d   :  { %11258 = dma.done.wait [#allocation11], 32  }
  0x6e   :  { %11259 = vsyncadd [#allocation11], 4294967264  ;;  %v141_v0 = vld [vmem:[%s14457_s16] sm:$0xf]  ;;  %v145_v2 = vld [vmem:[%s14457_s16 + $0x4] sm:$0xf] }
  0x6f   :  { %v143_v1 = vld [vmem:[%s14457_s16 + $0x40] sm:$0xf]  ;;  %142 = vst [vmem:[#allocation2] sm:$0xf] %v141_v0  ;;  %146 = vst [vmem:[#allocation2 + $0x8] sm:$0xf] %v145_v2 }
  0x70   :  { %144 = vst [vmem:[#allocation2 + $0x4] sm:$0xf] %v143_v1  ;;  %v147_v3 = vld [vmem:[%s14457_s16 + $0x44] sm:$0xf]  ;;  %v149_v4 = vld [vmem:[%s14457_s16 + $0x8] sm:$0xf] }
  0x71   :  { %v151_v5 = vld [vmem:[%s14457_s16 + $0x48] sm:$0xf]  ;;  %148 = vst [vmem:[#allocation2 + $0xc] sm:$0xf] %v147_v3  ;;  %150 = vst [vmem:[#allocation2 + $0x10] sm:$0xf] %v149_v4 }
  0x72   :  { %152 = vst [vmem:[#allocation2 + $0x14] sm:$0xf] %v151_v5  ;;  %v153_v6 = vld [vmem:[%s14457_s16 + $0xc] sm:$0xf]  ;;  %v157_v8 = vld [vmem:[%s14457_s16 + $0x10] sm:$0xf] }
  0x73   :  { %v155_v7 = vld [vmem:[%s14457_s16 + $0x4c] sm:$0xf]  ;;  %154 = vst [vmem:[#allocation2 + $0x18] sm:$0xf] %v153_v6  ;;  %158 = vst [vmem:[#allocation2 + $0x20] sm:$0xf] %v157_v8 }
  0x74   :  { %156 = vst [vmem:[#allocation2 + $0x1c] sm:$0xf] %v155_v7  ;;  %v159_v9 = vld [vmem:[%s14457_s16 + $0x50] sm:$0xf]  ;;  %v161_v10 = vld [vmem:[%s14457_s16 + $0x14] sm:$0xf] }
  0x75   :  { %v163_v11 = vld [vmem:[%s14457_s16 + $0x54] sm:$0xf]  ;;  %160 = vst [vmem:[#allocation2 + $0x24] sm:$0xf] %v159_v9  ;;  %162 = vst [vmem:[#allocation2 + $0x28] sm:$0xf] %v161_v10 }
  0x76   :  { %164 = vst [vmem:[#allocation2 + $0x2c] sm:$0xf] %v163_v11  ;;  %v165_v12 = vld [vmem:[%s14457_s16 + $0x18] sm:$0xf]  ;;  %v169_v14 = vld [vmem:[%s14457_s16 + $0x1c] sm:$0xf] }
  0x77   :  { %v167_v13 = vld [vmem:[%s14457_s16 + $0x58] sm:$0xf]  ;;  %166 = vst [vmem:[#allocation2 + $0x30] sm:$0xf] %v165_v12  ;;  %170 = vst [vmem:[#allocation2 + $0x38] sm:$0xf] %v169_v14 }
  0x78   :  { %168 = vst [vmem:[#allocation2 + $0x34] sm:$0xf] %v167_v13  ;;  %v171_v15 = vld [vmem:[%s14457_s16 + $0x5c] sm:$0xf]  ;;  %v173_v16 = vld [vmem:[%s14457_s16 + $0x20] sm:$0xf] }
  0x79   :  { %v175_v17 = vld [vmem:[%s14457_s16 + $0x60] sm:$0xf]  ;;  %172 = vst [vmem:[#allocation2 + $0x3c] sm:$0xf] %v171_v15  ;;  %174 = vst [vmem:[#allocation2 + $0x40] sm:$0xf] %v173_v16 }
  0x7a   :  { %176 = vst [vmem:[#allocation2 + $0x44] sm:$0xf] %v175_v17  ;;  %v177_v18 = vld [vmem:[%s14457_s16 + $0x24] sm:$0xf]  ;;  %v181_v20 = vld [vmem:[%s14457_s16 + $0x28] sm:$0xf] }
  0x7b   :  { %v179_v19 = vld [vmem:[%s14457_s16 + $0x64] sm:$0xf]  ;;  %178 = vst [vmem:[#allocation2 + $0x48] sm:$0xf] %v177_v18  ;;  %182 = vst [vmem:[#allocation2 + $0x50] sm:$0xf] %v181_v20 }
  0x7c   :  { %180 = vst [vmem:[#allocation2 + $0x4c] sm:$0xf] %v179_v19  ;;  %v183_v21 = vld [vmem:[%s14457_s16 + $0x68] sm:$0xf]  ;;  %v185_v22 = vld [vmem:[%s14457_s16 + $0x2c] sm:$0xf] }
  0x7d   :  { %v187_v23 = vld [vmem:[%s14457_s16 + $0x6c] sm:$0xf]  ;;  %184 = vst [vmem:[#allocation2 + $0x54] sm:$0xf] %v183_v21  ;;  %186 = vst [vmem:[#allocation2 + $0x58] sm:$0xf] %v185_v22 }
  0x7e   :  { %188 = vst [vmem:[#allocation2 + $0x5c] sm:$0xf] %v187_v23  ;;  %v189_v24 = vld [vmem:[%s14457_s16 + $0x30] sm:$0xf]  ;;  %v193_v26 = vld [vmem:[%s14457_s16 + $0x34] sm:$0xf] }
  0x7f   :  { %v191_v25 = vld [vmem:[%s14457_s16 + $0x70] sm:$0xf]  ;;  %190 = vst [vmem:[#allocation2 + $0x60] sm:$0xf] %v189_v24  ;;  %194 = vst [vmem:[#allocation2 + $0x68] sm:$0xf] %v193_v26 }
  0x80   :  { %192 = vst [vmem:[#allocation2 + $0x64] sm:$0xf] %v191_v25  ;;  %v195_v27 = vld [vmem:[%s14457_s16 + $0x74] sm:$0xf]  ;;  %v197_v28 = vld [vmem:[%s14457_s16 + $0x38] sm:$0xf] }
  0x81   :  { %v199_v29 = vld [vmem:[%s14457_s16 + $0x78] sm:$0xf]  ;;  %196 = vst [vmem:[#allocation2 + $0x6c] sm:$0xf] %v195_v27  ;;  %198 = vst [vmem:[#allocation2 + $0x70] sm:$0xf] %v197_v28 }
  0x82   :  { %200 = vst [vmem:[#allocation2 + $0x74] sm:$0xf] %v199_v29  ;;  %v201_v30 = vld [vmem:[%s14457_s16 + $0x3c] sm:$0xf]  ;;  %v207_v32 = vld [vmem:[%s14457_s16 + $0xc0] sm:$0xf] }
  0x83   :  { %v203_v31 = vld [vmem:[%s14457_s16 + $0x7c] sm:$0xff]   ;;  %202 = vst [vmem:[#allocation2 + $0x78] sm:$0xf] %v201_v30  ;;  %208 = vst [vmem:[#allocation2 + $0x84] sm:$0xf] %v207_v32 }
  0x84   :  { %204 = vst [vmem:[#allocation2 + $0x7c] sm:$0xff] %v203_v31   ;;  %v209_v33 = vld [vmem:[%s14457_s16 + $0x84] sm:$0xf]  ;;  %v213_v35 = vld [vmem:[%s14457_s16 + $0x88] sm:$0xf] }
  0x85   :  { %v211_v34 = vld [vmem:[%s14457_s16 + $0xc4] sm:$0xf]  ;;  %210 = vst [vmem:[#allocation2 + $0x88] sm:$0xf] %v209_v33  ;;  %214 = vst [vmem:[#allocation2 + $0x90] sm:$0xf] %v213_v35 }
  0x86   :  { %212 = vst [vmem:[#allocation2 + $0x8c] sm:$0xf] %v211_v34  ;;  %v215_v36 = vld [vmem:[%s14457_s16 + $0xc8] sm:$0xf]  ;;  %v217_v37 = vld [vmem:[%s14457_s16 + $0x8c] sm:$0xf] }
  0x87   :  { %v219_v38 = vld [vmem:[%s14457_s16 + $0xcc] sm:$0xf]  ;;  %216 = vst [vmem:[#allocation2 + $0x94] sm:$0xf] %v215_v36  ;;  %218 = vst [vmem:[#allocation2 + $0x98] sm:$0xf] %v217_v37 }
  0x88   :  { %220 = vst [vmem:[#allocation2 + $0x9c] sm:$0xf] %v219_v38  ;;  %v221_v39 = vld [vmem:[%s14457_s16 + $0x90] sm:$0xf]  ;;  %v225_v41 = vld [vmem:[%s14457_s16 + $0x94] sm:$0xf] }
  0x89   :  { %v223_v40 = vld [vmem:[%s14457_s16 + $0xd0] sm:$0xf]  ;;  %222 = vst [vmem:[#allocation2 + $0xa0] sm:$0xf] %v221_v39  ;;  %226 = vst [vmem:[#allocation2 + $0xa8] sm:$0xf] %v225_v41 }
  0x8a   :  { %224 = vst [vmem:[#allocation2 + $0xa4] sm:$0xf] %v223_v40  ;;  %v227_v42 = vld [vmem:[%s14457_s16 + $0xd4] sm:$0xf]  ;;  %v229_v43 = vld [vmem:[%s14457_s16 + $0x98] sm:$0xf] }
  0x8b   :  { %v231_v44 = vld [vmem:[%s14457_s16 + $0xd8] sm:$0xf]  ;;  %228 = vst [vmem:[#allocation2 + $0xac] sm:$0xf] %v227_v42  ;;  %230 = vst [vmem:[#allocation2 + $0xb0] sm:$0xf] %v229_v43 }
  0x8c   :  { %232 = vst [vmem:[#allocation2 + $0xb4] sm:$0xf] %v231_v44  ;;  %v233_v45 = vld [vmem:[%s14457_s16 + $0x9c] sm:$0xf]  ;;  %v237_v47 = vld [vmem:[%s14457_s16 + $0xa0] sm:$0xf] }
  0x8d   :  { %v235_v46 = vld [vmem:[%s14457_s16 + $0xdc] sm:$0xf]  ;;  %234 = vst [vmem:[#allocation2 + $0xb8] sm:$0xf] %v233_v45  ;;  %238 = vst [vmem:[#allocation2 + $0xc0] sm:$0xf] %v237_v47 }
  0x8e   :  { %236 = vst [vmem:[#allocation2 + $0xbc] sm:$0xf] %v235_v46  ;;  %v239_v48 = vld [vmem:[%s14457_s16 + $0xe0] sm:$0xf]  ;;  %v241_v49 = vld [vmem:[%s14457_s16 + $0xa4] sm:$0xf] }
  0x8f   :  { %v243_v50 = vld [vmem:[%s14457_s16 + $0xe4] sm:$0xf]  ;;  %240 = vst [vmem:[#allocation2 + $0xc4] sm:$0xf] %v239_v48  ;;  %242 = vst [vmem:[#allocation2 + $0xc8] sm:$0xf] %v241_v49 }
  0x90   :  { %244 = vst [vmem:[#allocation2 + $0xcc] sm:$0xf] %v243_v50  ;;  %v245_v51 = vld [vmem:[%s14457_s16 + $0xa8] sm:$0xf]  ;;  %v249_v53 = vld [vmem:[%s14457_s16 + $0xac] sm:$0xf] }
  0x91   :  { %v247_v52 = vld [vmem:[%s14457_s16 + $0xe8] sm:$0xf]  ;;  %246 = vst [vmem:[#allocation2 + $0xd0] sm:$0xf] %v245_v51  ;;  %250 = vst [vmem:[#allocation2 + $0xd8] sm:$0xf] %v249_v53 }
  0x92   :  { %248 = vst [vmem:[#allocation2 + $0xd4] sm:$0xf] %v247_v52  ;;  %v251_v54 = vld [vmem:[%s14457_s16 + $0xec] sm:$0xf]  ;;  %v253_v55 = vld [vmem:[%s14457_s16 + $0xb0] sm:$0xf] }
  0x93   :  { %v255_v56 = vld [vmem:[%s14457_s16 + $0xf0] sm:$0xf]  ;;  %252 = vst [vmem:[#allocation2 + $0xdc] sm:$0xf] %v251_v54  ;;  %254 = vst [vmem:[#allocation2 + $0xe0] sm:$0xf] %v253_v55 }
  0x94   :  { %256 = vst [vmem:[#allocation2 + $0xe4] sm:$0xf] %v255_v56  ;;  %v257_v57 = vld [vmem:[%s14457_s16 + $0xb4] sm:$0xf]  ;;  %v261_v59 = vld [vmem:[%s14457_s16 + $0xb8] sm:$0xf] }
  0x95   :  { %v259_v58 = vld [vmem:[%s14457_s16 + $0xf4] sm:$0xf]  ;;  %258 = vst [vmem:[#allocation2 + $0xe8] sm:$0xf] %v257_v57  ;;  %262 = vst [vmem:[#allocation2 + $0xf0] sm:$0xf] %v261_v59 }
  0x96   :  { %260 = vst [vmem:[#allocation2 + $0xec] sm:$0xf] %v259_v58  ;;  %v263_v60 = vld [vmem:[%s14457_s16 + $0xf8] sm:$0xf]  ;;  %v265_v61 = vld [vmem:[%s14457_s16 + $0xbc] sm:$0xf] }
  0x97   :  { %v267_v62 = vld [vmem:[%s14457_s16 + $0xfc] sm:$0xf]  ;;  %264 = vst [vmem:[#allocation2 + $0xf4] sm:$0xf] %v263_v60  ;;  %266 = vst [vmem:[#allocation2 + $0xf8] sm:$0xf] %v265_v61 }
  0x98   :  { %268 = vst [vmem:[#allocation2 + $0xfc] sm:$0xf] %v267_v62 }
  0x99   :  { %427 = vsyncadd [#allocation3], 4096  ;;  %v9000_v63 = vld [vmem:[%s14457_s16 + $0x100] sm:$0xf]  ;;  %v9002_v1 = vld [vmem:[%s14457_s16 + $0x104] sm:$0xf] }
  0x9a   :  { %v9001_v0 = vld [vmem:[%s14457_s16 + $0x140] sm:$0xf]  ;;  %449 = vst [vmem:[#allocation2 + $0x100] sm:$0xf] %v9000_v63  ;;  %v9003_v2 = vld [vmem:[%s14457_s16 + $0x144] sm:$0xf] }
  0x9b   :  { %451 = vst [vmem:[#allocation2 + $0x104] sm:$0xf] %v9001_v0  ;;  %v9004_v3 = vld [vmem:[%s14457_s16 + $0x108] sm:$0xf]  ;;  %453 = vst [vmem:[#allocation2 + $0x108] sm:$0xf] %v9002_v1 }
  0x9c   :  { %455 = vst [vmem:[#allocation2 + $0x10c] sm:$0xf] %v9003_v2  ;;  %457 = vst [vmem:[#allocation2 + $0x110] sm:$0xf] %v9004_v3  ;;  %v9005_v4 = vld [vmem:[%s14457_s16 + $0x148] sm:$0xf] }
  0x9d   :  { %v9006_v5 = vld [vmem:[%s14457_s16 + $0x10c] sm:$0xf]  ;;  %459 = vst [vmem:[#allocation2 + $0x114] sm:$0xf] %v9005_v4  ;;  %v9008_v7 = vld [vmem:[%s14457_s16 + $0x110] sm:$0xf] }
  0x9e   :  { %v9007_v6 = vld [vmem:[%s14457_s16 + $0x14c] sm:$0xf]  ;;  %461 = vst [vmem:[#allocation2 + $0x118] sm:$0xf] %v9006_v5  ;;  %v9009_v8 = vld [vmem:[%s14457_s16 + $0x150] sm:$0xf] }
  0x9f   :  { %463 = vst [vmem:[#allocation2 + $0x11c] sm:$0xf] %v9007_v6  ;;  %v9010_v9 = vld [vmem:[%s14457_s16 + $0x114] sm:$0xf]  ;;  %465 = vst [vmem:[#allocation2 + $0x120] sm:$0xf] %v9008_v7 }
  0xa0   :  { %467 = vst [vmem:[#allocation2 + $0x124] sm:$0xf] %v9009_v8  ;;  %469 = vst [vmem:[#allocation2 + $0x128] sm:$0xf] %v9010_v9  ;;  %v9011_v10 = vld [vmem:[%s14457_s16 + $0x154] sm:$0xf] }
  0xa1   :  { %v9012_v11 = vld [vmem:[%s14457_s16 + $0x118] sm:$0xf]  ;;  %471 = vst [vmem:[#allocation2 + $0x12c] sm:$0xf] %v9011_v10  ;;  %v9014_v13 = vld [vmem:[%s14457_s16 + $0x11c] sm:$0xf] }
  0xa2   :  { %v9013_v12 = vld [vmem:[%s14457_s16 + $0x158] sm:$0xf]  ;;  %473 = vst [vmem:[#allocation2 + $0x130] sm:$0xf] %v9012_v11  ;;  %v9015_v14 = vld [vmem:[%s14457_s16 + $0x15c] sm:$0xf] }
  0xa3   :  { %475 = vst [vmem:[#allocation2 + $0x134] sm:$0xf] %v9013_v12  ;;  %v9016_v15 = vld [vmem:[%s14457_s16 + $0x120] sm:$0xf]  ;;  %477 = vst [vmem:[#allocation2 + $0x138] sm:$0xf] %v9014_v13 }
  0xa4   :  { %479 = vst [vmem:[#allocation2 + $0x13c] sm:$0xf] %v9015_v14  ;;  %481 = vst [vmem:[#allocation2 + $0x140] sm:$0xf] %v9016_v15  ;;  %v9017_v16 = vld [vmem:[%s14457_s16 + $0x160] sm:$0xf] }
  0xa5   :  { %v9018_v17 = vld [vmem:[%s14457_s16 + $0x124] sm:$0xf]  ;;  %483 = vst [vmem:[#allocation2 + $0x144] sm:$0xf] %v9017_v16  ;;  %v9020_v19 = vld [vmem:[%s14457_s16 + $0x128] sm:$0xf] }
  0xa6   :  { %v9019_v18 = vld [vmem:[%s14457_s16 + $0x164] sm:$0xf]  ;;  %485 = vst [vmem:[#allocation2 + $0x148] sm:$0xf] %v9018_v17  ;;  %v9021_v20 = vld [vmem:[%s14457_s16 + $0x168] sm:$0xf] }
  0xa7   :  { %487 = vst [vmem:[#allocation2 + $0x14c] sm:$0xf] %v9019_v18  ;;  %v9022_v21 = vld [vmem:[%s14457_s16 + $0x12c] sm:$0xf]  ;;  %489 = vst [vmem:[#allocation2 + $0x150] sm:$0xf] %v9020_v19 }
  0xa8   :  { %491 = vst [vmem:[#allocation2 + $0x154] sm:$0xf] %v9021_v20  ;;  %493 = vst [vmem:[#allocation2 + $0x158] sm:$0xf] %v9022_v21  ;;  %v9023_v22 = vld [vmem:[%s14457_s16 + $0x16c] sm:$0xf] }
  0xa9   :  { %v9024_v23 = vld [vmem:[%s14457_s16 + $0x130] sm:$0xf]  ;;  %495 = vst [vmem:[#allocation2 + $0x15c] sm:$0xf] %v9023_v22  ;;  %v9026_v25 = vld [vmem:[%s14457_s16 + $0x134] sm:$0xf] }
  0xaa   :  { %v9025_v24 = vld [vmem:[%s14457_s16 + $0x170] sm:$0xf]  ;;  %497 = vst [vmem:[#allocation2 + $0x160] sm:$0xf] %v9024_v23  ;;  %v9027_v26 = vld [vmem:[%s14457_s16 + $0x174] sm:$0xf] }
  0xab   :  { %499 = vst [vmem:[#allocation2 + $0x164] sm:$0xf] %v9025_v24  ;;  %v9028_v27 = vld [vmem:[%s14457_s16 + $0x138] sm:$0xf]  ;;  %501 = vst [vmem:[#allocation2 + $0x168] sm:$0xf] %v9026_v25 }
  0xac   :  { %503 = vst [vmem:[#allocation2 + $0x16c] sm:$0xf] %v9027_v26  ;;  %505 = vst [vmem:[#allocation2 + $0x170] sm:$0xf] %v9028_v27  ;;  %v9029_v28 = vld [vmem:[%s14457_s16 + $0x178] sm:$0xf] }
  0xad   :  { %v9030_v29 = vld [vmem:[%s14457_s16 + $0x13c] sm:$0xf]  ;;  %507 = vst [vmem:[#allocation2 + $0x174] sm:$0xf] %v9029_v28  ;;  %v9033_v31 = vld [vmem:[%s14457_s16 + $0x1c0] sm:$0xf] }
  0xae   :  { %v9031_v30 = vld [vmem:[%s14457_s16 + $0x17c] sm:$0xff]   ;;  %509 = vst [vmem:[#allocation2 + $0x178] sm:$0xf] %v9030_v29  ;;  %v9034_v32 = vld [vmem:[%s14457_s16 + $0x184] sm:$0xf] }
  0xaf   :  { %511 = vst [vmem:[#allocation2 + $0x17c] sm:$0xff] %v9031_v30   ;;  %v9035_v33 = vld [vmem:[%s14457_s16 + $0x1c4] sm:$0xf]  ;;  %515 = vst [vmem:[#allocation2 + $0x184] sm:$0xf] %v9033_v31 }
  0xb0   :  { %517 = vst [vmem:[#allocation2 + $0x188] sm:$0xf] %v9034_v32  ;;  %519 = vst [vmem:[#allocation2 + $0x18c] sm:$0xf] %v9035_v33  ;;  %v9036_v34 = vld [vmem:[%s14457_s16 + $0x188] sm:$0xf] }
  0xb1   :  { %v9037_v35 = vld [vmem:[%s14457_s16 + $0x1c8] sm:$0xf]  ;;  %v9038_v36 = vld [vmem:[%s14457_s16 + $0x18c] sm:$0xf]  ;;  %521 = vst [vmem:[#allocation2 + $0x190] sm:$0xf] %v9036_v34 }
  0xb2   :  { %523 = vst [vmem:[#allocation2 + $0x194] sm:$0xf] %v9037_v35  ;;  %525 = vst [vmem:[#allocation2 + $0x198] sm:$0xf] %v9038_v36  ;;  %v9039_v37 = vld [vmem:[%s14457_s16 + $0x1cc] sm:$0xf] }
  0xb3   :  { %v9040_v38 = vld [vmem:[%s14457_s16 + $0x190] sm:$0xf]  ;;  %527 = vst [vmem:[#allocation2 + $0x19c] sm:$0xf] %v9039_v37  ;;  %v9042_v40 = vld [vmem:[%s14457_s16 + $0x194] sm:$0xf] }
  0xb4   :  { %v9041_v39 = vld [vmem:[%s14457_s16 + $0x1d0] sm:$0xf]  ;;  %529 = vst [vmem:[#allocation2 + $0x1a0] sm:$0xf] %v9040_v38  ;;  %v9043_v41 = vld [vmem:[%s14457_s16 + $0x1d4] sm:$0xf] }
  0xb5   :  { %531 = vst [vmem:[#allocation2 + $0x1a4] sm:$0xf] %v9041_v39  ;;  %v9044_v42 = vld [vmem:[%s14457_s16 + $0x198] sm:$0xf]  ;;  %533 = vst [vmem:[#allocation2 + $0x1a8] sm:$0xf] %v9042_v40 }
  0xb6   :  { %535 = vst [vmem:[#allocation2 + $0x1ac] sm:$0xf] %v9043_v41  ;;  %537 = vst [vmem:[#allocation2 + $0x1b0] sm:$0xf] %v9044_v42  ;;  %v9045_v43 = vld [vmem:[%s14457_s16 + $0x1d8] sm:$0xf] }
  0xb7   :  { %v9046_v44 = vld [vmem:[%s14457_s16 + $0x19c] sm:$0xf]  ;;  %539 = vst [vmem:[#allocation2 + $0x1b4] sm:$0xf] %v9045_v43  ;;  %v9048_v46 = vld [vmem:[%s14457_s16 + $0x1a0] sm:$0xf] }
  0xb8   :  { %v9047_v45 = vld [vmem:[%s14457_s16 + $0x1dc] sm:$0xf]  ;;  %541 = vst [vmem:[#allocation2 + $0x1b8] sm:$0xf] %v9046_v44  ;;  %v9049_v47 = vld [vmem:[%s14457_s16 + $0x1e0] sm:$0xf] }
  0xb9   :  { %543 = vst [vmem:[#allocation2 + $0x1bc] sm:$0xf] %v9047_v45  ;;  %v9050_v48 = vld [vmem:[%s14457_s16 + $0x1a4] sm:$0xf]  ;;  %545 = vst [vmem:[#allocation2 + $0x1c0] sm:$0xf] %v9048_v46 }
  0xba   :  { %547 = vst [vmem:[#allocation2 + $0x1c4] sm:$0xf] %v9049_v47  ;;  %549 = vst [vmem:[#allocation2 + $0x1c8] sm:$0xf] %v9050_v48  ;;  %v9051_v49 = vld [vmem:[%s14457_s16 + $0x1e4] sm:$0xf] }
  0xbb   :  { %v9052_v50 = vld [vmem:[%s14457_s16 + $0x1a8] sm:$0xf]  ;;  %551 = vst [vmem:[#allocation2 + $0x1cc] sm:$0xf] %v9051_v49  ;;  %v9054_v52 = vld [vmem:[%s14457_s16 + $0x1ac] sm:$0xf] }
  0xbc   :  { %v9053_v51 = vld [vmem:[%s14457_s16 + $0x1e8] sm:$0xf]  ;;  %553 = vst [vmem:[#allocation2 + $0x1d0] sm:$0xf] %v9052_v50  ;;  %v9055_v53 = vld [vmem:[%s14457_s16 + $0x1ec] sm:$0xf] }
  0xbd   :  { %555 = vst [vmem:[#allocation2 + $0x1d4] sm:$0xf] %v9053_v51  ;;  %v9056_v54 = vld [vmem:[%s14457_s16 + $0x1b0] sm:$0xf]  ;;  %557 = vst [vmem:[#allocation2 + $0x1d8] sm:$0xf] %v9054_v52 }
  0xbe   :  { %559 = vst [vmem:[#allocation2 + $0x1dc] sm:$0xf] %v9055_v53  ;;  %561 = vst [vmem:[#allocation2 + $0x1e0] sm:$0xf] %v9056_v54  ;;  %v9057_v55 = vld [vmem:[%s14457_s16 + $0x1f0] sm:$0xf] }
  0xbf   :  { %v9058_v56 = vld [vmem:[%s14457_s16 + $0x1b4] sm:$0xf]  ;;  %563 = vst [vmem:[#allocation2 + $0x1e4] sm:$0xf] %v9057_v55  ;;  %v9060_v58 = vld [vmem:[%s14457_s16 + $0x1b8] sm:$0xf] }
  0xc0   :  { %v9059_v57 = vld [vmem:[%s14457_s16 + $0x1f4] sm:$0xf]  ;;  %565 = vst [vmem:[#allocation2 + $0x1e8] sm:$0xf] %v9058_v56  ;;  %v9061_v59 = vld [vmem:[%s14457_s16 + $0x1f8] sm:$0xf] }
  0xc1   :  { %567 = vst [vmem:[#allocation2 + $0x1ec] sm:$0xf] %v9059_v57  ;;  %v9062_v60 = vld [vmem:[%s14457_s16 + $0x1bc] sm:$0xf]  ;;  %569 = vst [vmem:[#allocation2 + $0x1f0] sm:$0xf] %v9060_v58 }
  0xc2   :  { %571 = vst [vmem:[#allocation2 + $0x1f4] sm:$0xf] %v9061_v59  ;;  %573 = vst [vmem:[#allocation2 + $0x1f8] sm:$0xf] %v9062_v60  ;;  %v9063_v61 = vld [vmem:[%s14457_s16 + $0x1fc] sm:$0xf] }
  0xc3   :  { %575 = vst [vmem:[#allocation2 + $0x1fc] sm:$0xf] %v9063_v61 }
  0xc4   :  { %734 = vsyncadd [#allocation3 + $0x1], 4096  ;;  %v9128_v62 = vld [vmem:[%s14457_s16 + $0x200] sm:$0xf]  ;;  %v9130_v0 = vld [vmem:[%s14457_s16 + $0x204] sm:$0xf] }
  0xc5   :  { %v9129_v63 = vld [vmem:[%s14457_s16 + $0x240] sm:$0xf]  ;;  %756 = vst [vmem:[#allocation2 + $0x200] sm:$0xf] %v9128_v62  ;;  %v9131_v1 = vld [vmem:[%s14457_s16 + $0x244] sm:$0xf] }
  0xc6   :  { %758 = vst [vmem:[#allocation2 + $0x204] sm:$0xf] %v9129_v63  ;;  %v9132_v2 = vld [vmem:[%s14457_s16 + $0x208] sm:$0xf]  ;;  %760 = vst [vmem:[#allocation2 + $0x208] sm:$0xf] %v9130_v0 }
  0xc7   :  { %762 = vst [vmem:[#allocation2 + $0x20c] sm:$0xf] %v9131_v1  ;;  %764 = vst [vmem:[#allocation2 + $0x210] sm:$0xf] %v9132_v2  ;;  %v9133_v3 = vld [vmem:[%s14457_s16 + $0x248] sm:$0xf] }
  0xc8   :  { %v9134_v4 = vld [vmem:[%s14457_s16 + $0x20c] sm:$0xf]  ;;  %766 = vst [vmem:[#allocation2 + $0x214] sm:$0xf] %v9133_v3  ;;  %v9136_v6 = vld [vmem:[%s14457_s16 + $0x210] sm:$0xf] }
  0xc9   :  { %v9135_v5 = vld [vmem:[%s14457_s16 + $0x24c] sm:$0xf]  ;;  %768 = vst [vmem:[#allocation2 + $0x218] sm:$0xf] %v9134_v4  ;;  %v9137_v7 = vld [vmem:[%s14457_s16 + $0x250] sm:$0xf] }
  0xca   :  { %770 = vst [vmem:[#allocation2 + $0x21c] sm:$0xf] %v9135_v5  ;;  %v9138_v8 = vld [vmem:[%s14457_s16 + $0x214] sm:$0xf]  ;;  %772 = vst [vmem:[#allocation2 + $0x220] sm:$0xf] %v9136_v6 }
  0xcb   :  { %774 = vst [vmem:[#allocation2 + $0x224] sm:$0xf] %v9137_v7  ;;  %776 = vst [vmem:[#allocation2 + $0x228] sm:$0xf] %v9138_v8  ;;  %v9139_v9 = vld [vmem:[%s14457_s16 + $0x254] sm:$0xf] }
  0xcc   :  { %v9140_v10 = vld [vmem:[%s14457_s16 + $0x218] sm:$0xf]  ;;  %778 = vst [vmem:[#allocation2 + $0x22c] sm:$0xf] %v9139_v9  ;;  %v9142_v12 = vld [vmem:[%s14457_s16 + $0x21c] sm:$0xf] }
  0xcd   :  { %v9141_v11 = vld [vmem:[%s14457_s16 + $0x258] sm:$0xf]  ;;  %780 = vst [vmem:[#allocation2 + $0x230] sm:$0xf] %v9140_v10  ;;  %v9143_v13 = vld [vmem:[%s14457_s16 + $0x25c] sm:$0xf] }
  0xce   :  { %782 = vst [vmem:[#allocation2 + $0x234] sm:$0xf] %v9141_v11  ;;  %v9144_v14 = vld [vmem:[%s14457_s16 + $0x220] sm:$0xf]  ;;  %784 = vst [vmem:[#allocation2 + $0x238] sm:$0xf] %v9142_v12 }
  0xcf   :  { %786 = vst [vmem:[#allocation2 + $0x23c] sm:$0xf] %v9143_v13  ;;  %788 = vst [vmem:[#allocation2 + $0x240] sm:$0xf] %v9144_v14  ;;  %v9145_v15 = vld [vmem:[%s14457_s16 + $0x260] sm:$0xf] }
  0xd0   :  { %v9146_v16 = vld [vmem:[%s14457_s16 + $0x224] sm:$0xf]  ;;  %790 = vst [vmem:[#allocation2 + $0x244] sm:$0xf] %v9145_v15  ;;  %v9148_v18 = vld [vmem:[%s14457_s16 + $0x228] sm:$0xf] }
  0xd1   :  { %v9147_v17 = vld [vmem:[%s14457_s16 + $0x264] sm:$0xf]  ;;  %792 = vst [vmem:[#allocation2 + $0x248] sm:$0xf] %v9146_v16  ;;  %v9149_v19 = vld [vmem:[%s14457_s16 + $0x268] sm:$0xf] }
  0xd2   :  { %794 = vst [vmem:[#allocation2 + $0x24c] sm:$0xf] %v9147_v17  ;;  %v9150_v20 = vld [vmem:[%s14457_s16 + $0x22c] sm:$0xf]  ;;  %796 = vst [vmem:[#allocation2 + $0x250] sm:$0xf] %v9148_v18 }
  0xd3   :  { %798 = vst [vmem:[#allocation2 + $0x254] sm:$0xf] %v9149_v19  ;;  %800 = vst [vmem:[#allocation2 + $0x258] sm:$0xf] %v9150_v20  ;;  %v9151_v21 = vld [vmem:[%s14457_s16 + $0x26c] sm:$0xf] }
  0xd4   :  { %v9152_v22 = vld [vmem:[%s14457_s16 + $0x230] sm:$0xf]  ;;  %802 = vst [vmem:[#allocation2 + $0x25c] sm:$0xf] %v9151_v21  ;;  %v9154_v24 = vld [vmem:[%s14457_s16 + $0x234] sm:$0xf] }
  0xd5   :  { %v9153_v23 = vld [vmem:[%s14457_s16 + $0x270] sm:$0xf]  ;;  %804 = vst [vmem:[#allocation2 + $0x260] sm:$0xf] %v9152_v22  ;;  %v9155_v25 = vld [vmem:[%s14457_s16 + $0x274] sm:$0xf] }
  0xd6   :  { %806 = vst [vmem:[#allocation2 + $0x264] sm:$0xf] %v9153_v23  ;;  %v9156_v26 = vld [vmem:[%s14457_s16 + $0x238] sm:$0xf]  ;;  %808 = vst [vmem:[#allocation2 + $0x268] sm:$0xf] %v9154_v24 }
  0xd7   :  { %810 = vst [vmem:[#allocation2 + $0x26c] sm:$0xf] %v9155_v25  ;;  %812 = vst [vmem:[#allocation2 + $0x270] sm:$0xf] %v9156_v26  ;;  %v9157_v27 = vld [vmem:[%s14457_s16 + $0x278] sm:$0xf] }
  0xd8   :  { %v9158_v28 = vld [vmem:[%s14457_s16 + $0x23c] sm:$0xf]  ;;  %814 = vst [vmem:[#allocation2 + $0x274] sm:$0xf] %v9157_v27  ;;  %v9161_v30 = vld [vmem:[%s14457_s16 + $0x2c0] sm:$0xf] }
  0xd9   :  { %v9159_v29 = vld [vmem:[%s14457_s16 + $0x27c] sm:$0xff]   ;;  %816 = vst [vmem:[#allocation2 + $0x278] sm:$0xf] %v9158_v28  ;;  %v9162_v31 = vld [vmem:[%s14457_s16 + $0x284] sm:$0xf] }
  0xda   :  { %818 = vst [vmem:[#allocation2 + $0x27c] sm:$0xff] %v9159_v29   ;;  %v9163_v32 = vld [vmem:[%s14457_s16 + $0x2c4] sm:$0xf]  ;;  %822 = vst [vmem:[#allocation2 + $0x284] sm:$0xf] %v9161_v30 }
  0xdb   :  { %824 = vst [vmem:[#allocation2 + $0x288] sm:$0xf] %v9162_v31  ;;  %826 = vst [vmem:[#allocation2 + $0x28c] sm:$0xf] %v9163_v32  ;;  %v9164_v33 = vld [vmem:[%s14457_s16 + $0x288] sm:$0xf] }
  0xdc   :  { %v9165_v34 = vld [vmem:[%s14457_s16 + $0x2c8] sm:$0xf]  ;;  %v9166_v35 = vld [vmem:[%s14457_s16 + $0x28c] sm:$0xf]  ;;  %828 = vst [vmem:[#allocation2 + $0x290] sm:$0xf] %v9164_v33 }
  0xdd   :  { %830 = vst [vmem:[#allocation2 + $0x294] sm:$0xf] %v9165_v34  ;;  %832 = vst [vmem:[#allocation2 + $0x298] sm:$0xf] %v9166_v35  ;;  %v9167_v36 = vld [vmem:[%s14457_s16 + $0x2cc] sm:$0xf] }
  0xde   :  { %v9168_v37 = vld [vmem:[%s14457_s16 + $0x290] sm:$0xf]  ;;  %834 = vst [vmem:[#allocation2 + $0x29c] sm:$0xf] %v9167_v36  ;;  %v9170_v39 = vld [vmem:[%s14457_s16 + $0x294] sm:$0xf] }
  0xdf   :  { %v9169_v38 = vld [vmem:[%s14457_s16 + $0x2d0] sm:$0xf]  ;;  %836 = vst [vmem:[#allocation2 + $0x2a0] sm:$0xf] %v9168_v37  ;;  %v9171_v40 = vld [vmem:[%s14457_s16 + $0x2d4] sm:$0xf] }
  0xe0   :  { %838 = vst [vmem:[#allocation2 + $0x2a4] sm:$0xf] %v9169_v38  ;;  %v9172_v41 = vld [vmem:[%s14457_s16 + $0x298] sm:$0xf]  ;;  %840 = vst [vmem:[#allocation2 + $0x2a8] sm:$0xf] %v9170_v39 }
  0xe1   :  { %842 = vst [vmem:[#allocation2 + $0x2ac] sm:$0xf] %v9171_v40  ;;  %844 = vst [vmem:[#allocation2 + $0x2b0] sm:$0xf] %v9172_v41  ;;  %v9173_v42 = vld [vmem:[%s14457_s16 + $0x2d8] sm:$0xf] }
  0xe2   :  { %v9174_v43 = vld [vmem:[%s14457_s16 + $0x29c] sm:$0xf]  ;;  %846 = vst [vmem:[#allocation2 + $0x2b4] sm:$0xf] %v9173_v42  ;;  %v9176_v45 = vld [vmem:[%s14457_s16 + $0x2a0] sm:$0xf] }
  0xe3   :  { %v9175_v44 = vld [vmem:[%s14457_s16 + $0x2dc] sm:$0xf]  ;;  %848 = vst [vmem:[#allocation2 + $0x2b8] sm:$0xf] %v9174_v43  ;;  %v9177_v46 = vld [vmem:[%s14457_s16 + $0x2e0] sm:$0xf] }
  0xe4   :  { %850 = vst [vmem:[#allocation2 + $0x2bc] sm:$0xf] %v9175_v44  ;;  %v9178_v47 = vld [vmem:[%s14457_s16 + $0x2a4] sm:$0xf]  ;;  %852 = vst [vmem:[#allocation2 + $0x2c0] sm:$0xf] %v9176_v45 }
  0xe5   :  { %854 = vst [vmem:[#allocation2 + $0x2c4] sm:$0xf] %v9177_v46  ;;  %856 = vst [vmem:[#allocation2 + $0x2c8] sm:$0xf] %v9178_v47  ;;  %v9179_v48 = vld [vmem:[%s14457_s16 + $0x2e4] sm:$0xf] }
  0xe6   :  { %v9180_v49 = vld [vmem:[%s14457_s16 + $0x2a8] sm:$0xf]  ;;  %858 = vst [vmem:[#allocation2 + $0x2cc] sm:$0xf] %v9179_v48  ;;  %v9182_v51 = vld [vmem:[%s14457_s16 + $0x2ac] sm:$0xf] }
  0xe7   :  { %v9181_v50 = vld [vmem:[%s14457_s16 + $0x2e8] sm:$0xf]  ;;  %860 = vst [vmem:[#allocation2 + $0x2d0] sm:$0xf] %v9180_v49  ;;  %v9183_v52 = vld [vmem:[%s14457_s16 + $0x2ec] sm:$0xf] }
  0xe8   :  { %862 = vst [vmem:[#allocation2 + $0x2d4] sm:$0xf] %v9181_v50  ;;  %v9184_v53 = vld [vmem:[%s14457_s16 + $0x2b0] sm:$0xf]  ;;  %864 = vst [vmem:[#allocation2 + $0x2d8] sm:$0xf] %v9182_v51 }
  0xe9   :  { %866 = vst [vmem:[#allocation2 + $0x2dc] sm:$0xf] %v9183_v52  ;;  %868 = vst [vmem:[#allocation2 + $0x2e0] sm:$0xf] %v9184_v53  ;;  %v9185_v54 = vld [vmem:[%s14457_s16 + $0x2f0] sm:$0xf] }
  0xea   :  { %v9186_v55 = vld [vmem:[%s14457_s16 + $0x2b4] sm:$0xf]  ;;  %870 = vst [vmem:[#allocation2 + $0x2e4] sm:$0xf] %v9185_v54  ;;  %v9188_v57 = vld [vmem:[%s14457_s16 + $0x2b8] sm:$0xf] }
  0xeb   :  { %v9187_v56 = vld [vmem:[%s14457_s16 + $0x2f4] sm:$0xf]  ;;  %872 = vst [vmem:[#allocation2 + $0x2e8] sm:$0xf] %v9186_v55  ;;  %v9189_v58 = vld [vmem:[%s14457_s16 + $0x2f8] sm:$0xf] }
  0xec   :  { %874 = vst [vmem:[#allocation2 + $0x2ec] sm:$0xf] %v9187_v56  ;;  %v9190_v59 = vld [vmem:[%s14457_s16 + $0x2bc] sm:$0xf]  ;;  %876 = vst [vmem:[#allocation2 + $0x2f0] sm:$0xf] %v9188_v57 }
  0xed   :  { %878 = vst [vmem:[#allocation2 + $0x2f4] sm:$0xf] %v9189_v58  ;;  %880 = vst [vmem:[#allocation2 + $0x2f8] sm:$0xf] %v9190_v59  ;;  %v9191_v60 = vld [vmem:[%s14457_s16 + $0x2fc] sm:$0xf] }
  0xee   :  { %882 = vst [vmem:[#allocation2 + $0x2fc] sm:$0xf] %v9191_v60 }
  0xef   :  { %1041 = vsyncadd [#allocation3 + $0x2], 4096  ;;  %v9256_v61 = vld [vmem:[%s14457_s16 + $0x300] sm:$0xf]  ;;  %v9258_v63 = vld [vmem:[%s14457_s16 + $0x304] sm:$0xf] }
  0xf0   :  { %v9257_v62 = vld [vmem:[%s14457_s16 + $0x340] sm:$0xf]  ;;  %1063 = vst [vmem:[#allocation2 + $0x300] sm:$0xf] %v9256_v61  ;;  %v9259_v0 = vld [vmem:[%s14457_s16 + $0x344] sm:$0xf] }
  0xf1   :  { %1065 = vst [vmem:[#allocation2 + $0x304] sm:$0xf] %v9257_v62  ;;  %v9260_v1 = vld [vmem:[%s14457_s16 + $0x308] sm:$0xf]  ;;  %1067 = vst [vmem:[#allocation2 + $0x308] sm:$0xf] %v9258_v63 }
  0xf2   :  { %1069 = vst [vmem:[#allocation2 + $0x30c] sm:$0xf] %v9259_v0  ;;  %1071 = vst [vmem:[#allocation2 + $0x310] sm:$0xf] %v9260_v1  ;;  %v9261_v2 = vld [vmem:[%s14457_s16 + $0x348] sm:$0xf] }
  0xf3   :  { %v9262_v3 = vld [vmem:[%s14457_s16 + $0x30c] sm:$0xf]  ;;  %1073 = vst [vmem:[#allocation2 + $0x314] sm:$0xf] %v9261_v2  ;;  %v9264_v5 = vld [vmem:[%s14457_s16 + $0x310] sm:$0xf] }
  0xf4   :  { %v9263_v4 = vld [vmem:[%s14457_s16 + $0x34c] sm:$0xf]  ;;  %1075 = vst [vmem:[#allocation2 + $0x318] sm:$0xf] %v9262_v3  ;;  %v9265_v6 = vld [vmem:[%s14457_s16 + $0x350] sm:$0xf] }
  0xf5   :  { %1077 = vst [vmem:[#allocation2 + $0x31c] sm:$0xf] %v9263_v4  ;;  %v9266_v7 = vld [vmem:[%s14457_s16 + $0x314] sm:$0xf]  ;;  %1079 = vst [vmem:[#allocation2 + $0x320] sm:$0xf] %v9264_v5 }
  0xf6   :  { %1081 = vst [vmem:[#allocation2 + $0x324] sm:$0xf] %v9265_v6  ;;  %1083 = vst [vmem:[#allocation2 + $0x328] sm:$0xf] %v9266_v7  ;;  %v9267_v8 = vld [vmem:[%s14457_s16 + $0x354] sm:$0xf] }
  0xf7   :  { %v9268_v9 = vld [vmem:[%s14457_s16 + $0x318] sm:$0xf]  ;;  %1085 = vst [vmem:[#allocation2 + $0x32c] sm:$0xf] %v9267_v8  ;;  %v9270_v11 = vld [vmem:[%s14457_s16 + $0x31c] sm:$0xf] }
  0xf8   :  { %v9269_v10 = vld [vmem:[%s14457_s16 + $0x358] sm:$0xf]  ;;  %1087 = vst [vmem:[#allocation2 + $0x330] sm:$0xf] %v9268_v9  ;;  %v9271_v12 = vld [vmem:[%s14457_s16 + $0x35c] sm:$0xf] }
  0xf9   :  { %1089 = vst [vmem:[#allocation2 + $0x334] sm:$0xf] %v9269_v10  ;;  %v9272_v13 = vld [vmem:[%s14457_s16 + $0x320] sm:$0xf]  ;;  %1091 = vst [vmem:[#allocation2 + $0x338] sm:$0xf] %v9270_v11 }
  0xfa   :  { %1093 = vst [vmem:[#allocation2 + $0x33c] sm:$0xf] %v9271_v12  ;;  %1095 = vst [vmem:[#allocation2 + $0x340] sm:$0xf] %v9272_v13  ;;  %v9273_v14 = vld [vmem:[%s14457_s16 + $0x360] sm:$0xf] }
  0xfb   :  { %v9274_v15 = vld [vmem:[%s14457_s16 + $0x324] sm:$0xf]  ;;  %1097 = vst [vmem:[#allocation2 + $0x344] sm:$0xf] %v9273_v14  ;;  %v9276_v17 = vld [vmem:[%s14457_s16 + $0x328] sm:$0xf] }
  0xfc   :  { %v9275_v16 = vld [vmem:[%s14457_s16 + $0x364] sm:$0xf]  ;;  %1099 = vst [vmem:[#allocation2 + $0x348] sm:$0xf] %v9274_v15  ;;  %v9277_v18 = vld [vmem:[%s14457_s16 + $0x368] sm:$0xf] }
  0xfd   :  { %1101 = vst [vmem:[#allocation2 + $0x34c] sm:$0xf] %v9275_v16  ;;  %v9278_v19 = vld [vmem:[%s14457_s16 + $0x32c] sm:$0xf]  ;;  %1103 = vst [vmem:[#allocation2 + $0x350] sm:$0xf] %v9276_v17 }
  0xfe   :  { %1105 = vst [vmem:[#allocation2 + $0x354] sm:$0xf] %v9277_v18  ;;  %1107 = vst [vmem:[#allocation2 + $0x358] sm:$0xf] %v9278_v19  ;;  %v9279_v20 = vld [vmem:[%s14457_s16 + $0x36c] sm:$0xf] }
  0xff   :  { %v9280_v21 = vld [vmem:[%s14457_s16 + $0x330] sm:$0xf]  ;;  %1109 = vst [vmem:[#allocation2 + $0x35c] sm:$0xf] %v9279_v20  ;;  %v9282_v23 = vld [vmem:[%s14457_s16 + $0x334] sm:$0xf] }
 0x100   :  { %v9281_v22 = vld [vmem:[%s14457_s16 + $0x370] sm:$0xf]  ;;  %1111 = vst [vmem:[#allocation2 + $0x360] sm:$0xf] %v9280_v21  ;;  %v9283_v24 = vld [vmem:[%s14457_s16 + $0x374] sm:$0xf] }
 0x101   :  { %1113 = vst [vmem:[#allocation2 + $0x364] sm:$0xf] %v9281_v22  ;;  %v9284_v25 = vld [vmem:[%s14457_s16 + $0x338] sm:$0xf]  ;;  %1115 = vst [vmem:[#allocation2 + $0x368] sm:$0xf] %v9282_v23 }
 0x102   :  { %1117 = vst [vmem:[#allocation2 + $0x36c] sm:$0xf] %v9283_v24  ;;  %1119 = vst [vmem:[#allocation2 + $0x370] sm:$0xf] %v9284_v25  ;;  %v9285_v26 = vld [vmem:[%s14457_s16 + $0x378] sm:$0xf] }
 0x103   :  { %v9286_v27 = vld [vmem:[%s14457_s16 + $0x33c] sm:$0xf]  ;;  %1121 = vst [vmem:[#allocation2 + $0x374] sm:$0xf] %v9285_v26  ;;  %v9289_v29 = vld [vmem:[%s14457_s16 + $0x3c0] sm:$0xf] }
 0x104   :  { %v9287_v28 = vld [vmem:[%s14457_s16 + $0x37c] sm:$0xff]   ;;  %1123 = vst [vmem:[#allocation2 + $0x378] sm:$0xf] %v9286_v27  ;;  %v9290_v30 = vld [vmem:[%s14457_s16 + $0x384] sm:$0xf] }
 0x105   :  { %1125 = vst [vmem:[#allocation2 + $0x37c] sm:$0xff] %v9287_v28   ;;  %v9291_v31 = vld [vmem:[%s14457_s16 + $0x3c4] sm:$0xf]  ;;  %1129 = vst [vmem:[#allocation2 + $0x384] sm:$0xf] %v9289_v29 }
 0x106   :  { %1131 = vst [vmem:[#allocation2 + $0x388] sm:$0xf] %v9290_v30  ;;  %1133 = vst [vmem:[#allocation2 + $0x38c] sm:$0xf] %v9291_v31  ;;  %v9292_v32 = vld [vmem:[%s14457_s16 + $0x388] sm:$0xf] }
 0x107   :  { %v9293_v33 = vld [vmem:[%s14457_s16 + $0x3c8] sm:$0xf]  ;;  %v9294_v34 = vld [vmem:[%s14457_s16 + $0x38c] sm:$0xf]  ;;  %1135 = vst [vmem:[#allocation2 + $0x390] sm:$0xf] %v9292_v32 }
 0x108   :  { %1137 = vst [vmem:[#allocation2 + $0x394] sm:$0xf] %v9293_v33  ;;  %1139 = vst [vmem:[#allocation2 + $0x398] sm:$0xf] %v9294_v34  ;;  %v9295_v35 = vld [vmem:[%s14457_s16 + $0x3cc] sm:$0xf] }
 0x109   :  { %v9296_v36 = vld [vmem:[%s14457_s16 + $0x390] sm:$0xf]  ;;  %1141 = vst [vmem:[#allocation2 + $0x39c] sm:$0xf] %v9295_v35  ;;  %v9298_v38 = vld [vmem:[%s14457_s16 + $0x394] sm:$0xf] }
 0x10a   :  { %v9297_v37 = vld [vmem:[%s14457_s16 + $0x3d0] sm:$0xf]  ;;  %1143 = vst [vmem:[#allocation2 + $0x3a0] sm:$0xf] %v9296_v36  ;;  %v9299_v39 = vld [vmem:[%s14457_s16 + $0x3d4] sm:$0xf] }
 0x10b   :  { %1145 = vst [vmem:[#allocation2 + $0x3a4] sm:$0xf] %v9297_v37  ;;  %v9300_v40 = vld [vmem:[%s14457_s16 + $0x398] sm:$0xf]  ;;  %1147 = vst [vmem:[#allocation2 + $0x3a8] sm:$0xf] %v9298_v38 }
 0x10c   :  { %1149 = vst [vmem:[#allocation2 + $0x3ac] sm:$0xf] %v9299_v39  ;;  %1151 = vst [vmem:[#allocation2 + $0x3b0] sm:$0xf] %v9300_v40  ;;  %v9301_v41 = vld [vmem:[%s14457_s16 + $0x3d8] sm:$0xf] }
 0x10d   :  { %v9302_v42 = vld [vmem:[%s14457_s16 + $0x39c] sm:$0xf]  ;;  %1153 = vst [vmem:[#allocation2 + $0x3b4] sm:$0xf] %v9301_v41  ;;  %v9304_v44 = vld [vmem:[%s14457_s16 + $0x3a0] sm:$0xf] }
 0x10e   :  { %v9303_v43 = vld [vmem:[%s14457_s16 + $0x3dc] sm:$0xf]  ;;  %1155 = vst [vmem:[#allocation2 + $0x3b8] sm:$0xf] %v9302_v42  ;;  %v9305_v45 = vld [vmem:[%s14457_s16 + $0x3e0] sm:$0xf] }
 0x10f   :  { %1157 = vst [vmem:[#allocation2 + $0x3bc] sm:$0xf] %v9303_v43  ;;  %v9306_v46 = vld [vmem:[%s14457_s16 + $0x3a4] sm:$0xf]  ;;  %1159 = vst [vmem:[#allocation2 + $0x3c0] sm:$0xf] %v9304_v44 }
 0x110   :  { %1161 = vst [vmem:[#allocation2 + $0x3c4] sm:$0xf] %v9305_v45  ;;  %1163 = vst [vmem:[#allocation2 + $0x3c8] sm:$0xf] %v9306_v46  ;;  %v9307_v47 = vld [vmem:[%s14457_s16 + $0x3e4] sm:$0xf] }
 0x111   :  { %v9308_v48 = vld [vmem:[%s14457_s16 + $0x3a8] sm:$0xf]  ;;  %1165 = vst [vmem:[#allocation2 + $0x3cc] sm:$0xf] %v9307_v47  ;;  %v9310_v50 = vld [vmem:[%s14457_s16 + $0x3ac] sm:$0xf] }
 0x112   :  { %v9309_v49 = vld [vmem:[%s14457_s16 + $0x3e8] sm:$0xf]  ;;  %1167 = vst [vmem:[#allocation2 + $0x3d0] sm:$0xf] %v9308_v48  ;;  %v9311_v51 = vld [vmem:[%s14457_s16 + $0x3ec] sm:$0xf] }
 0x113   :  { %1169 = vst [vmem:[#allocation2 + $0x3d4] sm:$0xf] %v9309_v49  ;;  %v9312_v52 = vld [vmem:[%s14457_s16 + $0x3b0] sm:$0xf]  ;;  %1171 = vst [vmem:[#allocation2 + $0x3d8] sm:$0xf] %v9310_v50 }
 0x114   :  { %1173 = vst [vmem:[#allocation2 + $0x3dc] sm:$0xf] %v9311_v51  ;;  %1175 = vst [vmem:[#allocation2 + $0x3e0] sm:$0xf] %v9312_v52  ;;  %v9313_v53 = vld [vmem:[%s14457_s16 + $0x3f0] sm:$0xf] }
 0x115   :  { %v9314_v54 = vld [vmem:[%s14457_s16 + $0x3b4] sm:$0xf]  ;;  %1177 = vst [vmem:[#allocation2 + $0x3e4] sm:$0xf] %v9313_v53  ;;  %v9316_v56 = vld [vmem:[%s14457_s16 + $0x3b8] sm:$0xf] }
 0x116   :  { %v9315_v55 = vld [vmem:[%s14457_s16 + $0x3f4] sm:$0xf]  ;;  %1179 = vst [vmem:[#allocation2 + $0x3e8] sm:$0xf] %v9314_v54  ;;  %v9317_v57 = vld [vmem:[%s14457_s16 + $0x3f8] sm:$0xf] }
 0x117   :  { %1181 = vst [vmem:[#allocation2 + $0x3ec] sm:$0xf] %v9315_v55  ;;  %v9318_v58 = vld [vmem:[%s14457_s16 + $0x3bc] sm:$0xf]  ;;  %1183 = vst [vmem:[#allocation2 + $0x3f0] sm:$0xf] %v9316_v56 }
 0x118   :  { %1185 = vst [vmem:[#allocation2 + $0x3f4] sm:$0xf] %v9317_v57  ;;  %1187 = vst [vmem:[#allocation2 + $0x3f8] sm:$0xf] %v9318_v58  ;;  %v9319_v59 = vld [vmem:[%s14457_s16 + $0x3fc] sm:$0xf] }
 0x119   :  { %1189 = vst [vmem:[#allocation2 + $0x3fc] sm:$0xf] %v9319_v59 }
 0x11a   :  { %1348 = vsyncadd [#allocation3 + $0x3], 4096  ;;  %v9384_v60 = vld [vmem:[%s14457_s16 + $0x400] sm:$0xf]  ;;  %v9386_v62 = vld [vmem:[%s14457_s16 + $0x404] sm:$0xf] }
 0x11b   :  { %v9385_v61 = vld [vmem:[%s14457_s16 + $0x440] sm:$0xf]  ;;  %1370 = vst [vmem:[#allocation2 + $0x400] sm:$0xf] %v9384_v60  ;;  %v9387_v63 = vld [vmem:[%s14457_s16 + $0x444] sm:$0xf] }
 0x11c   :  { %1372 = vst [vmem:[#allocation2 + $0x404] sm:$0xf] %v9385_v61  ;;  %v9388_v0 = vld [vmem:[%s14457_s16 + $0x408] sm:$0xf]  ;;  %1374 = vst [vmem:[#allocation2 + $0x408] sm:$0xf] %v9386_v62 }
 0x11d   :  { %1376 = vst [vmem:[#allocation2 + $0x40c] sm:$0xf] %v9387_v63  ;;  %1378 = vst [vmem:[#allocation2 + $0x410] sm:$0xf] %v9388_v0  ;;  %v9389_v1 = vld [vmem:[%s14457_s16 + $0x448] sm:$0xf] }
 0x11e   :  { %v9390_v2 = vld [vmem:[%s14457_s16 + $0x40c] sm:$0xf]  ;;  %1380 = vst [vmem:[#allocation2 + $0x414] sm:$0xf] %v9389_v1  ;;  %v9392_v4 = vld [vmem:[%s14457_s16 + $0x410] sm:$0xf] }
 0x11f   :  { %v9391_v3 = vld [vmem:[%s14457_s16 + $0x44c] sm:$0xf]  ;;  %1382 = vst [vmem:[#allocation2 + $0x418] sm:$0xf] %v9390_v2  ;;  %v9393_v5 = vld [vmem:[%s14457_s16 + $0x450] sm:$0xf] }
 0x120   :  { %1384 = vst [vmem:[#allocation2 + $0x41c] sm:$0xf] %v9391_v3  ;;  %v9394_v6 = vld [vmem:[%s14457_s16 + $0x414] sm:$0xf]  ;;  %1386 = vst [vmem:[#allocation2 + $0x420] sm:$0xf] %v9392_v4 }
 0x121   :  { %1388 = vst [vmem:[#allocation2 + $0x424] sm:$0xf] %v9393_v5  ;;  %1390 = vst [vmem:[#allocation2 + $0x428] sm:$0xf] %v9394_v6  ;;  %v9395_v7 = vld [vmem:[%s14457_s16 + $0x454] sm:$0xf] }
 0x122   :  { %v9396_v8 = vld [vmem:[%s14457_s16 + $0x418] sm:$0xf]  ;;  %1392 = vst [vmem:[#allocation2 + $0x42c] sm:$0xf] %v9395_v7  ;;  %v9398_v10 = vld [vmem:[%s14457_s16 + $0x41c] sm:$0xf] }
 0x123   :  { %v9397_v9 = vld [vmem:[%s14457_s16 + $0x458] sm:$0xf]  ;;  %1394 = vst [vmem:[#allocation2 + $0x430] sm:$0xf] %v9396_v8  ;;  %v9399_v11 = vld [vmem:[%s14457_s16 + $0x45c] sm:$0xf] }
 0x124   :  { %1396 = vst [vmem:[#allocation2 + $0x434] sm:$0xf] %v9397_v9  ;;  %v9400_v12 = vld [vmem:[%s14457_s16 + $0x420] sm:$0xf]  ;;  %1398 = vst [vmem:[#allocation2 + $0x438] sm:$0xf] %v9398_v10 }
 0x125   :  { %1400 = vst [vmem:[#allocation2 + $0x43c] sm:$0xf] %v9399_v11  ;;  %1402 = vst [vmem:[#allocation2 + $0x440] sm:$0xf] %v9400_v12  ;;  %v9401_v13 = vld [vmem:[%s14457_s16 + $0x460] sm:$0xf] }
 0x126   :  { %v9402_v14 = vld [vmem:[%s14457_s16 + $0x424] sm:$0xf]  ;;  %1404 = vst [vmem:[#allocation2 + $0x444] sm:$0xf] %v9401_v13  ;;  %v9404_v16 = vld [vmem:[%s14457_s16 + $0x428] sm:$0xf] }
 0x127   :  { %v9403_v15 = vld [vmem:[%s14457_s16 + $0x464] sm:$0xf]  ;;  %1406 = vst [vmem:[#allocation2 + $0x448] sm:$0xf] %v9402_v14  ;;  %v9405_v17 = vld [vmem:[%s14457_s16 + $0x468] sm:$0xf] }
 0x128   :  { %1408 = vst [vmem:[#allocation2 + $0x44c] sm:$0xf] %v9403_v15  ;;  %v9406_v18 = vld [vmem:[%s14457_s16 + $0x42c] sm:$0xf]  ;;  %1410 = vst [vmem:[#allocation2 + $0x450] sm:$0xf] %v9404_v16 }
 0x129   :  { %1412 = vst [vmem:[#allocation2 + $0x454] sm:$0xf] %v9405_v17  ;;  %1414 = vst [vmem:[#allocation2 + $0x458] sm:$0xf] %v9406_v18  ;;  %v9407_v19 = vld [vmem:[%s14457_s16 + $0x46c] sm:$0xf] }
 0x12a   :  { %v9408_v20 = vld [vmem:[%s14457_s16 + $0x430] sm:$0xf]  ;;  %1416 = vst [vmem:[#allocation2 + $0x45c] sm:$0xf] %v9407_v19  ;;  %v9410_v22 = vld [vmem:[%s14457_s16 + $0x434] sm:$0xf] }
 0x12b   :  { %v9409_v21 = vld [vmem:[%s14457_s16 + $0x470] sm:$0xf]  ;;  %1418 = vst [vmem:[#allocation2 + $0x460] sm:$0xf] %v9408_v20  ;;  %v9411_v23 = vld [vmem:[%s14457_s16 + $0x474] sm:$0xf] }
 0x12c   :  { %1420 = vst [vmem:[#allocation2 + $0x464] sm:$0xf] %v9409_v21  ;;  %v9412_v24 = vld [vmem:[%s14457_s16 + $0x438] sm:$0xf]  ;;  %1422 = vst [vmem:[#allocation2 + $0x468] sm:$0xf] %v9410_v22 }
 0x12d   :  { %1424 = vst [vmem:[#allocation2 + $0x46c] sm:$0xf] %v9411_v23  ;;  %1426 = vst [vmem:[#allocation2 + $0x470] sm:$0xf] %v9412_v24  ;;  %v9413_v25 = vld [vmem:[%s14457_s16 + $0x478] sm:$0xf] }
 0x12e   :  { %v9414_v26 = vld [vmem:[%s14457_s16 + $0x43c] sm:$0xf]  ;;  %1428 = vst [vmem:[#allocation2 + $0x474] sm:$0xf] %v9413_v25  ;;  %v9417_v28 = vld [vmem:[%s14457_s16 + $0x4c0] sm:$0xf] }
 0x12f   :  { %v9415_v27 = vld [vmem:[%s14457_s16 + $0x47c] sm:$0xff]   ;;  %1430 = vst [vmem:[#allocation2 + $0x478] sm:$0xf] %v9414_v26  ;;  %v9418_v29 = vld [vmem:[%s14457_s16 + $0x484] sm:$0xf] }
 0x130   :  { %1432 = vst [vmem:[#allocation2 + $0x47c] sm:$0xff] %v9415_v27   ;;  %v9419_v30 = vld [vmem:[%s14457_s16 + $0x4c4] sm:$0xf]  ;;  %1436 = vst [vmem:[#allocation2 + $0x484] sm:$0xf] %v9417_v28 }
 0x131   :  { %1438 = vst [vmem:[#allocation2 + $0x488] sm:$0xf] %v9418_v29  ;;  %1440 = vst [vmem:[#allocation2 + $0x48c] sm:$0xf] %v9419_v30  ;;  %v9420_v31 = vld [vmem:[%s14457_s16 + $0x488] sm:$0xf] }
 0x132   :  { %v9421_v32 = vld [vmem:[%s14457_s16 + $0x4c8] sm:$0xf]  ;;  %v9422_v33 = vld [vmem:[%s14457_s16 + $0x48c] sm:$0xf]  ;;  %1442 = vst [vmem:[#allocation2 + $0x490] sm:$0xf] %v9420_v31 }
 0x133   :  { %1444 = vst [vmem:[#allocation2 + $0x494] sm:$0xf] %v9421_v32  ;;  %1446 = vst [vmem:[#allocation2 + $0x498] sm:$0xf] %v9422_v33  ;;  %v9423_v34 = vld [vmem:[%s14457_s16 + $0x4cc] sm:$0xf] }
 0x134   :  { %v9424_v35 = vld [vmem:[%s14457_s16 + $0x490] sm:$0xf]  ;;  %1448 = vst [vmem:[#allocation2 + $0x49c] sm:$0xf] %v9423_v34  ;;  %v9426_v37 = vld [vmem:[%s14457_s16 + $0x494] sm:$0xf] }
 0x135   :  { %v9425_v36 = vld [vmem:[%s14457_s16 + $0x4d0] sm:$0xf]  ;;  %1450 = vst [vmem:[#allocation2 + $0x4a0] sm:$0xf] %v9424_v35  ;;  %v9427_v38 = vld [vmem:[%s14457_s16 + $0x4d4] sm:$0xf] }
 0x136   :  { %1452 = vst [vmem:[#allocation2 + $0x4a4] sm:$0xf] %v9425_v36  ;;  %v9428_v39 = vld [vmem:[%s14457_s16 + $0x498] sm:$0xf]  ;;  %1454 = vst [vmem:[#allocation2 + $0x4a8] sm:$0xf] %v9426_v37 }
 0x137   :  { %1456 = vst [vmem:[#allocation2 + $0x4ac] sm:$0xf] %v9427_v38  ;;  %1458 = vst [vmem:[#allocation2 + $0x4b0] sm:$0xf] %v9428_v39  ;;  %v9429_v40 = vld [vmem:[%s14457_s16 + $0x4d8] sm:$0xf] }
 0x138   :  { %v9430_v41 = vld [vmem:[%s14457_s16 + $0x49c] sm:$0xf]  ;;  %1460 = vst [vmem:[#allocation2 + $0x4b4] sm:$0xf] %v9429_v40  ;;  %v9432_v43 = vld [vmem:[%s14457_s16 + $0x4a0] sm:$0xf] }
 0x139   :  { %v9431_v42 = vld [vmem:[%s14457_s16 + $0x4dc] sm:$0xf]  ;;  %1462 = vst [vmem:[#allocation2 + $0x4b8] sm:$0xf] %v9430_v41  ;;  %v9433_v44 = vld [vmem:[%s14457_s16 + $0x4e0] sm:$0xf] }
 0x13a   :  { %1464 = vst [vmem:[#allocation2 + $0x4bc] sm:$0xf] %v9431_v42  ;;  %v9434_v45 = vld [vmem:[%s14457_s16 + $0x4a4] sm:$0xf]  ;;  %1466 = vst [vmem:[#allocation2 + $0x4c0] sm:$0xf] %v9432_v43 }
 0x13b   :  { %1468 = vst [vmem:[#allocation2 + $0x4c4] sm:$0xf] %v9433_v44  ;;  %1470 = vst [vmem:[#allocation2 + $0x4c8] sm:$0xf] %v9434_v45  ;;  %v9435_v46 = vld [vmem:[%s14457_s16 + $0x4e4] sm:$0xf] }
 0x13c   :  { %v9436_v47 = vld [vmem:[%s14457_s16 + $0x4a8] sm:$0xf]  ;;  %1472 = vst [vmem:[#allocation2 + $0x4cc] sm:$0xf] %v9435_v46  ;;  %v9438_v49 = vld [vmem:[%s14457_s16 + $0x4ac] sm:$0xf] }
 0x13d   :  { %v9437_v48 = vld [vmem:[%s14457_s16 + $0x4e8] sm:$0xf]  ;;  %1474 = vst [vmem:[#allocation2 + $0x4d0] sm:$0xf] %v9436_v47  ;;  %v9439_v50 = vld [vmem:[%s14457_s16 + $0x4ec] sm:$0xf] }
 0x13e   :  { %1476 = vst [vmem:[#allocation2 + $0x4d4] sm:$0xf] %v9437_v48  ;;  %v9440_v51 = vld [vmem:[%s14457_s16 + $0x4b0] sm:$0xf]  ;;  %1478 = vst [vmem:[#allocation2 + $0x4d8] sm:$0xf] %v9438_v49 }
 0x13f   :  { %1480 = vst [vmem:[#allocation2 + $0x4dc] sm:$0xf] %v9439_v50  ;;  %1482 = vst [vmem:[#allocation2 + $0x4e0] sm:$0xf] %v9440_v51  ;;  %v9441_v52 = vld [vmem:[%s14457_s16 + $0x4f0] sm:$0xf] }
 0x140   :  { %v9442_v53 = vld [vmem:[%s14457_s16 + $0x4b4] sm:$0xf]  ;;  %1484 = vst [vmem:[#allocation2 + $0x4e4] sm:$0xf] %v9441_v52  ;;  %v9444_v55 = vld [vmem:[%s14457_s16 + $0x4b8] sm:$0xf] }
 0x141   :  { %v9443_v54 = vld [vmem:[%s14457_s16 + $0x4f4] sm:$0xf]  ;;  %1486 = vst [vmem:[#allocation2 + $0x4e8] sm:$0xf] %v9442_v53  ;;  %v9445_v56 = vld [vmem:[%s14457_s16 + $0x4f8] sm:$0xf] }
 0x142   :  { %1488 = vst [vmem:[#allocation2 + $0x4ec] sm:$0xf] %v9443_v54  ;;  %v9446_v57 = vld [vmem:[%s14457_s16 + $0x4bc] sm:$0xf]  ;;  %1490 = vst [vmem:[#allocation2 + $0x4f0] sm:$0xf] %v9444_v55 }
 0x143   :  { %1492 = vst [vmem:[#allocation2 + $0x4f4] sm:$0xf] %v9445_v56  ;;  %1494 = vst [vmem:[#allocation2 + $0x4f8] sm:$0xf] %v9446_v57  ;;  %v9447_v58 = vld [vmem:[%s14457_s16 + $0x4fc] sm:$0xf] }
 0x144   :  { %1496 = vst [vmem:[#allocation2 + $0x4fc] sm:$0xf] %v9447_v58 }
 0x145   :  { %1655 = vsyncadd [#allocation3 + $0x4], 4096  ;;  %v9512_v59 = vld [vmem:[%s14457_s16 + $0x500] sm:$0xf]  ;;  %v9514_v61 = vld [vmem:[%s14457_s16 + $0x504] sm:$0xf] }
 0x146   :  { %v9513_v60 = vld [vmem:[%s14457_s16 + $0x540] sm:$0xf]  ;;  %1677 = vst [vmem:[#allocation2 + $0x500] sm:$0xf] %v9512_v59  ;;  %v9515_v62 = vld [vmem:[%s14457_s16 + $0x544] sm:$0xf] }
 0x147   :  { %1679 = vst [vmem:[#allocation2 + $0x504] sm:$0xf] %v9513_v60  ;;  %v9516_v63 = vld [vmem:[%s14457_s16 + $0x508] sm:$0xf]  ;;  %1681 = vst [vmem:[#allocation2 + $0x508] sm:$0xf] %v9514_v61 }
 0x148   :  { %1683 = vst [vmem:[#allocation2 + $0x50c] sm:$0xf] %v9515_v62  ;;  %1685 = vst [vmem:[#allocation2 + $0x510] sm:$0xf] %v9516_v63  ;;  %v9517_v0 = vld [vmem:[%s14457_s16 + $0x548] sm:$0xf] }
 0x149   :  { %v9518_v1 = vld [vmem:[%s14457_s16 + $0x50c] sm:$0xf]  ;;  %1687 = vst [vmem:[#allocation2 + $0x514] sm:$0xf] %v9517_v0  ;;  %v9520_v3 = vld [vmem:[%s14457_s16 + $0x510] sm:$0xf] }
 0x14a   :  { %v9519_v2 = vld [vmem:[%s14457_s16 + $0x54c] sm:$0xf]  ;;  %1689 = vst [vmem:[#allocation2 + $0x518] sm:$0xf] %v9518_v1  ;;  %v9521_v4 = vld [vmem:[%s14457_s16 + $0x550] sm:$0xf] }
 0x14b   :  { %1691 = vst [vmem:[#allocation2 + $0x51c] sm:$0xf] %v9519_v2  ;;  %v9522_v5 = vld [vmem:[%s14457_s16 + $0x514] sm:$0xf]  ;;  %1693 = vst [vmem:[#allocation2 + $0x520] sm:$0xf] %v9520_v3 }
 0x14c   :  { %1695 = vst [vmem:[#allocation2 + $0x524] sm:$0xf] %v9521_v4  ;;  %1697 = vst [vmem:[#allocation2 + $0x528] sm:$0xf] %v9522_v5  ;;  %v9523_v6 = vld [vmem:[%s14457_s16 + $0x554] sm:$0xf] }
 0x14d   :  { %v9524_v7 = vld [vmem:[%s14457_s16 + $0x518] sm:$0xf]  ;;  %1699 = vst [vmem:[#allocation2 + $0x52c] sm:$0xf] %v9523_v6  ;;  %v9526_v9 = vld [vmem:[%s14457_s16 + $0x51c] sm:$0xf] }
 0x14e   :  { %v9525_v8 = vld [vmem:[%s14457_s16 + $0x558] sm:$0xf]  ;;  %1701 = vst [vmem:[#allocation2 + $0x530] sm:$0xf] %v9524_v7  ;;  %v9527_v10 = vld [vmem:[%s14457_s16 + $0x55c] sm:$0xf] }
 0x14f   :  { %1703 = vst [vmem:[#allocation2 + $0x534] sm:$0xf] %v9525_v8  ;;  %v9528_v11 = vld [vmem:[%s14457_s16 + $0x520] sm:$0xf]  ;;  %1705 = vst [vmem:[#allocation2 + $0x538] sm:$0xf] %v9526_v9 }
 0x150   :  { %1707 = vst [vmem:[#allocation2 + $0x53c] sm:$0xf] %v9527_v10  ;;  %1709 = vst [vmem:[#allocation2 + $0x540] sm:$0xf] %v9528_v11  ;;  %v9529_v12 = vld [vmem:[%s14457_s16 + $0x560] sm:$0xf] }
 0x151   :  { %v9530_v13 = vld [vmem:[%s14457_s16 + $0x524] sm:$0xf]  ;;  %1711 = vst [vmem:[#allocation2 + $0x544] sm:$0xf] %v9529_v12  ;;  %v9532_v15 = vld [vmem:[%s14457_s16 + $0x528] sm:$0xf] }
 0x152   :  { %v9531_v14 = vld [vmem:[%s14457_s16 + $0x564] sm:$0xf]  ;;  %1713 = vst [vmem:[#allocation2 + $0x548] sm:$0xf] %v9530_v13  ;;  %v9533_v16 = vld [vmem:[%s14457_s16 + $0x568] sm:$0xf] }
 0x153   :  { %1715 = vst [vmem:[#allocation2 + $0x54c] sm:$0xf] %v9531_v14  ;;  %v9534_v17 = vld [vmem:[%s14457_s16 + $0x52c] sm:$0xf]  ;;  %1717 = vst [vmem:[#allocation2 + $0x550] sm:$0xf] %v9532_v15 }
 0x154   :  { %1719 = vst [vmem:[#allocation2 + $0x554] sm:$0xf] %v9533_v16  ;;  %1721 = vst [vmem:[#allocation2 + $0x558] sm:$0xf] %v9534_v17  ;;  %v9535_v18 = vld [vmem:[%s14457_s16 + $0x56c] sm:$0xf] }
 0x155   :  { %v9536_v19 = vld [vmem:[%s14457_s16 + $0x530] sm:$0xf]  ;;  %1723 = vst [vmem:[#allocation2 + $0x55c] sm:$0xf] %v9535_v18  ;;  %v9538_v21 = vld [vmem:[%s14457_s16 + $0x534] sm:$0xf] }
 0x156   :  { %v9537_v20 = vld [vmem:[%s14457_s16 + $0x570] sm:$0xf]  ;;  %1725 = vst [vmem:[#allocation2 + $0x560] sm:$0xf] %v9536_v19  ;;  %v9539_v22 = vld [vmem:[%s14457_s16 + $0x574] sm:$0xf] }
 0x157   :  { %1727 = vst [vmem:[#allocation2 + $0x564] sm:$0xf] %v9537_v20  ;;  %v9540_v23 = vld [vmem:[%s14457_s16 + $0x538] sm:$0xf]  ;;  %1729 = vst [vmem:[#allocation2 + $0x568] sm:$0xf] %v9538_v21 }
 0x158   :  { %1731 = vst [vmem:[#allocation2 + $0x56c] sm:$0xf] %v9539_v22  ;;  %1733 = vst [vmem:[#allocation2 + $0x570] sm:$0xf] %v9540_v23  ;;  %v9541_v24 = vld [vmem:[%s14457_s16 + $0x578] sm:$0xf] }
 0x159   :  { %v9542_v25 = vld [vmem:[%s14457_s16 + $0x53c] sm:$0xf]  ;;  %1735 = vst [vmem:[#allocation2 + $0x574] sm:$0xf] %v9541_v24  ;;  %v9545_v27 = vld [vmem:[%s14457_s16 + $0x5c0] sm:$0xf] }
 0x15a   :  { %v9543_v26 = vld [vmem:[%s14457_s16 + $0x57c] sm:$0xff]   ;;  %1737 = vst [vmem:[#allocation2 + $0x578] sm:$0xf] %v9542_v25  ;;  %v9546_v28 = vld [vmem:[%s14457_s16 + $0x584] sm:$0xf] }
 0x15b   :  { %1739 = vst [vmem:[#allocation2 + $0x57c] sm:$0xff] %v9543_v26   ;;  %v9547_v29 = vld [vmem:[%s14457_s16 + $0x5c4] sm:$0xf]  ;;  %1743 = vst [vmem:[#allocation2 + $0x584] sm:$0xf] %v9545_v27 }
 0x15c   :  { %1745 = vst [vmem:[#allocation2 + $0x588] sm:$0xf] %v9546_v28  ;;  %1747 = vst [vmem:[#allocation2 + $0x58c] sm:$0xf] %v9547_v29  ;;  %v9548_v30 = vld [vmem:[%s14457_s16 + $0x588] sm:$0xf] }
 0x15d   :  { %v9549_v31 = vld [vmem:[%s14457_s16 + $0x5c8] sm:$0xf]  ;;  %v9550_v32 = vld [vmem:[%s14457_s16 + $0x58c] sm:$0xf]  ;;  %1749 = vst [vmem:[#allocation2 + $0x590] sm:$0xf] %v9548_v30 }
 0x15e   :  { %1751 = vst [vmem:[#allocation2 + $0x594] sm:$0xf] %v9549_v31  ;;  %1753 = vst [vmem:[#allocation2 + $0x598] sm:$0xf] %v9550_v32  ;;  %v9551_v33 = vld [vmem:[%s14457_s16 + $0x5cc] sm:$0xf] }
 0x15f   :  { %v9552_v34 = vld [vmem:[%s14457_s16 + $0x590] sm:$0xf]  ;;  %1755 = vst [vmem:[#allocation2 + $0x59c] sm:$0xf] %v9551_v33  ;;  %v9554_v36 = vld [vmem:[%s14457_s16 + $0x594] sm:$0xf] }
 0x160   :  { %v9553_v35 = vld [vmem:[%s14457_s16 + $0x5d0] sm:$0xf]  ;;  %1757 = vst [vmem:[#allocation2 + $0x5a0] sm:$0xf] %v9552_v34  ;;  %v9555_v37 = vld [vmem:[%s14457_s16 + $0x5d4] sm:$0xf] }
 0x161   :  { %1759 = vst [vmem:[#allocation2 + $0x5a4] sm:$0xf] %v9553_v35  ;;  %v9556_v38 = vld [vmem:[%s14457_s16 + $0x598] sm:$0xf]  ;;  %1761 = vst [vmem:[#allocation2 + $0x5a8] sm:$0xf] %v9554_v36 }
 0x162   :  { %1763 = vst [vmem:[#allocation2 + $0x5ac] sm:$0xf] %v9555_v37  ;;  %1765 = vst [vmem:[#allocation2 + $0x5b0] sm:$0xf] %v9556_v38  ;;  %v9557_v39 = vld [vmem:[%s14457_s16 + $0x5d8] sm:$0xf] }
 0x163   :  { %v9558_v40 = vld [vmem:[%s14457_s16 + $0x59c] sm:$0xf]  ;;  %1767 = vst [vmem:[#allocation2 + $0x5b4] sm:$0xf] %v9557_v39  ;;  %v9560_v42 = vld [vmem:[%s14457_s16 + $0x5a0] sm:$0xf] }
 0x164   :  { %v9559_v41 = vld [vmem:[%s14457_s16 + $0x5dc] sm:$0xf]  ;;  %1769 = vst [vmem:[#allocation2 + $0x5b8] sm:$0xf] %v9558_v40  ;;  %v9561_v43 = vld [vmem:[%s14457_s16 + $0x5e0] sm:$0xf] }
 0x165   :  { %1771 = vst [vmem:[#allocation2 + $0x5bc] sm:$0xf] %v9559_v41  ;;  %v9562_v44 = vld [vmem:[%s14457_s16 + $0x5a4] sm:$0xf]  ;;  %1773 = vst [vmem:[#allocation2 + $0x5c0] sm:$0xf] %v9560_v42 }
 0x166   :  { %1775 = vst [vmem:[#allocation2 + $0x5c4] sm:$0xf] %v9561_v43  ;;  %1777 = vst [vmem:[#allocation2 + $0x5c8] sm:$0xf] %v9562_v44  ;;  %v9563_v45 = vld [vmem:[%s14457_s16 + $0x5e4] sm:$0xf] }
 0x167   :  { %v9564_v46 = vld [vmem:[%s14457_s16 + $0x5a8] sm:$0xf]  ;;  %1779 = vst [vmem:[#allocation2 + $0x5cc] sm:$0xf] %v9563_v45  ;;  %v9566_v48 = vld [vmem:[%s14457_s16 + $0x5ac] sm:$0xf] }
 0x168   :  { %v9565_v47 = vld [vmem:[%s14457_s16 + $0x5e8] sm:$0xf]  ;;  %1781 = vst [vmem:[#allocation2 + $0x5d0] sm:$0xf] %v9564_v46  ;;  %v9567_v49 = vld [vmem:[%s14457_s16 + $0x5ec] sm:$0xf] }
 0x169   :  { %1783 = vst [vmem:[#allocation2 + $0x5d4] sm:$0xf] %v9565_v47  ;;  %v9568_v50 = vld [vmem:[%s14457_s16 + $0x5b0] sm:$0xf]  ;;  %1785 = vst [vmem:[#allocation2 + $0x5d8] sm:$0xf] %v9566_v48 }
 0x16a   :  { %1787 = vst [vmem:[#allocation2 + $0x5dc] sm:$0xf] %v9567_v49  ;;  %1789 = vst [vmem:[#allocation2 + $0x5e0] sm:$0xf] %v9568_v50  ;;  %v9569_v51 = vld [vmem:[%s14457_s16 + $0x5f0] sm:$0xf] }
 0x16b   :  { %v9570_v52 = vld [vmem:[%s14457_s16 + $0x5b4] sm:$0xf]  ;;  %1791 = vst [vmem:[#allocation2 + $0x5e4] sm:$0xf] %v9569_v51  ;;  %v9572_v54 = vld [vmem:[%s14457_s16 + $0x5b8] sm:$0xf] }
 0x16c   :  { %v9571_v53 = vld [vmem:[%s14457_s16 + $0x5f4] sm:$0xf]  ;;  %1793 = vst [vmem:[#allocation2 + $0x5e8] sm:$0xf] %v9570_v52  ;;  %v9573_v55 = vld [vmem:[%s14457_s16 + $0x5f8] sm:$0xf] }
 0x16d   :  { %1795 = vst [vmem:[#allocation2 + $0x5ec] sm:$0xf] %v9571_v53  ;;  %v9574_v56 = vld [vmem:[%s14457_s16 + $0x5bc] sm:$0xf]  ;;  %1797 = vst [vmem:[#allocation2 + $0x5f0] sm:$0xf] %v9572_v54 }
 0x16e   :  { %1799 = vst [vmem:[#allocation2 + $0x5f4] sm:$0xf] %v9573_v55  ;;  %1801 = vst [vmem:[#allocation2 + $0x5f8] sm:$0xf] %v9574_v56  ;;  %v9575_v57 = vld [vmem:[%s14457_s16 + $0x5fc] sm:$0xf] }
 0x16f   :  { %1803 = vst [vmem:[#allocation2 + $0x5fc] sm:$0xf] %v9575_v57 }
 0x170   :  { %1962 = vsyncadd [#allocation3 + $0x5], 4096  ;;  %v9640_v58 = vld [vmem:[%s14457_s16 + $0x600] sm:$0xf]  ;;  %v9642_v60 = vld [vmem:[%s14457_s16 + $0x604] sm:$0xf] }
 0x171   :  { %v9641_v59 = vld [vmem:[%s14457_s16 + $0x640] sm:$0xf]  ;;  %1984 = vst [vmem:[#allocation2 + $0x600] sm:$0xf] %v9640_v58  ;;  %v9643_v61 = vld [vmem:[%s14457_s16 + $0x644] sm:$0xf] }
 0x172   :  { %1986 = vst [vmem:[#allocation2 + $0x604] sm:$0xf] %v9641_v59  ;;  %v9644_v62 = vld [vmem:[%s14457_s16 + $0x608] sm:$0xf]  ;;  %1988 = vst [vmem:[#allocation2 + $0x608] sm:$0xf] %v9642_v60 }
 0x173   :  { %1990 = vst [vmem:[#allocation2 + $0x60c] sm:$0xf] %v9643_v61  ;;  %1992 = vst [vmem:[#allocation2 + $0x610] sm:$0xf] %v9644_v62  ;;  %v9645_v63 = vld [vmem:[%s14457_s16 + $0x648] sm:$0xf] }
 0x174   :  { %v9646_v0 = vld [vmem:[%s14457_s16 + $0x60c] sm:$0xf]  ;;  %1994 = vst [vmem:[#allocation2 + $0x614] sm:$0xf] %v9645_v63  ;;  %v9648_v2 = vld [vmem:[%s14457_s16 + $0x610] sm:$0xf] }
 0x175   :  { %v9647_v1 = vld [vmem:[%s14457_s16 + $0x64c] sm:$0xf]  ;;  %1996 = vst [vmem:[#allocation2 + $0x618] sm:$0xf] %v9646_v0  ;;  %v9649_v3 = vld [vmem:[%s14457_s16 + $0x650] sm:$0xf] }
 0x176   :  { %1998 = vst [vmem:[#allocation2 + $0x61c] sm:$0xf] %v9647_v1  ;;  %v9650_v4 = vld [vmem:[%s14457_s16 + $0x614] sm:$0xf]  ;;  %2000 = vst [vmem:[#allocation2 + $0x620] sm:$0xf] %v9648_v2 }
 0x177   :  { %2002 = vst [vmem:[#allocation2 + $0x624] sm:$0xf] %v9649_v3  ;;  %2004 = vst [vmem:[#allocation2 + $0x628] sm:$0xf] %v9650_v4  ;;  %v9651_v5 = vld [vmem:[%s14457_s16 + $0x654] sm:$0xf] }
 0x178   :  { %v9652_v6 = vld [vmem:[%s14457_s16 + $0x618] sm:$0xf]  ;;  %2006 = vst [vmem:[#allocation2 + $0x62c] sm:$0xf] %v9651_v5  ;;  %v9654_v8 = vld [vmem:[%s14457_s16 + $0x61c] sm:$0xf] }
 0x179   :  { %v9653_v7 = vld [vmem:[%s14457_s16 + $0x658] sm:$0xf]  ;;  %2008 = vst [vmem:[#allocation2 + $0x630] sm:$0xf] %v9652_v6  ;;  %v9655_v9 = vld [vmem:[%s14457_s16 + $0x65c] sm:$0xf] }
 0x17a   :  { %2010 = vst [vmem:[#allocation2 + $0x634] sm:$0xf] %v9653_v7  ;;  %v9656_v10 = vld [vmem:[%s14457_s16 + $0x620] sm:$0xf]  ;;  %2012 = vst [vmem:[#allocation2 + $0x638] sm:$0xf] %v9654_v8 }
 0x17b   :  { %2014 = vst [vmem:[#allocation2 + $0x63c] sm:$0xf] %v9655_v9  ;;  %2016 = vst [vmem:[#allocation2 + $0x640] sm:$0xf] %v9656_v10  ;;  %v9657_v11 = vld [vmem:[%s14457_s16 + $0x660] sm:$0xf] }
 0x17c   :  { %v9658_v12 = vld [vmem:[%s14457_s16 + $0x624] sm:$0xf]  ;;  %2018 = vst [vmem:[#allocation2 + $0x644] sm:$0xf] %v9657_v11  ;;  %v9660_v14 = vld [vmem:[%s14457_s16 + $0x628] sm:$0xf] }
 0x17d   :  { %v9659_v13 = vld [vmem:[%s14457_s16 + $0x664] sm:$0xf]  ;;  %2020 = vst [vmem:[#allocation2 + $0x648] sm:$0xf] %v9658_v12  ;;  %v9661_v15 = vld [vmem:[%s14457_s16 + $0x668] sm:$0xf] }
 0x17e   :  { %2022 = vst [vmem:[#allocation2 + $0x64c] sm:$0xf] %v9659_v13  ;;  %v9662_v16 = vld [vmem:[%s14457_s16 + $0x62c] sm:$0xf]  ;;  %2024 = vst [vmem:[#allocation2 + $0x650] sm:$0xf] %v9660_v14 }
 0x17f   :  { %2026 = vst [vmem:[#allocation2 + $0x654] sm:$0xf] %v9661_v15  ;;  %2028 = vst [vmem:[#allocation2 + $0x658] sm:$0xf] %v9662_v16  ;;  %v9663_v17 = vld [vmem:[%s14457_s16 + $0x66c] sm:$0xf] }
 0x180   :  { %v9664_v18 = vld [vmem:[%s14457_s16 + $0x630] sm:$0xf]  ;;  %2030 = vst [vmem:[#allocation2 + $0x65c] sm:$0xf] %v9663_v17  ;;  %v9666_v20 = vld [vmem:[%s14457_s16 + $0x634] sm:$0xf] }
 0x181   :  { %v9665_v19 = vld [vmem:[%s14457_s16 + $0x670] sm:$0xf]  ;;  %2032 = vst [vmem:[#allocation2 + $0x660] sm:$0xf] %v9664_v18  ;;  %v9667_v21 = vld [vmem:[%s14457_s16 + $0x674] sm:$0xf] }
 0x182   :  { %2034 = vst [vmem:[#allocation2 + $0x664] sm:$0xf] %v9665_v19  ;;  %v9668_v22 = vld [vmem:[%s14457_s16 + $0x638] sm:$0xf]  ;;  %2036 = vst [vmem:[#allocation2 + $0x668] sm:$0xf] %v9666_v20 }
 0x183   :  { %2038 = vst [vmem:[#allocation2 + $0x66c] sm:$0xf] %v9667_v21  ;;  %2040 = vst [vmem:[#allocation2 + $0x670] sm:$0xf] %v9668_v22  ;;  %v9669_v23 = vld [vmem:[%s14457_s16 + $0x678] sm:$0xf] }
 0x184   :  { %v9670_v24 = vld [vmem:[%s14457_s16 + $0x63c] sm:$0xf]  ;;  %2042 = vst [vmem:[#allocation2 + $0x674] sm:$0xf] %v9669_v23  ;;  %v9673_v26 = vld [vmem:[%s14457_s16 + $0x6c0] sm:$0xf] }
 0x185   :  { %v9671_v25 = vld [vmem:[%s14457_s16 + $0x67c] sm:$0xff]   ;;  %2044 = vst [vmem:[#allocation2 + $0x678] sm:$0xf] %v9670_v24  ;;  %v9674_v27 = vld [vmem:[%s14457_s16 + $0x684] sm:$0xf] }
 0x186   :  { %2046 = vst [vmem:[#allocation2 + $0x67c] sm:$0xff] %v9671_v25   ;;  %v9675_v28 = vld [vmem:[%s14457_s16 + $0x6c4] sm:$0xf]  ;;  %2050 = vst [vmem:[#allocation2 + $0x684] sm:$0xf] %v9673_v26 }
 0x187   :  { %2052 = vst [vmem:[#allocation2 + $0x688] sm:$0xf] %v9674_v27  ;;  %2054 = vst [vmem:[#allocation2 + $0x68c] sm:$0xf] %v9675_v28  ;;  %v9676_v29 = vld [vmem:[%s14457_s16 + $0x688] sm:$0xf] }
 0x188   :  { %v9677_v30 = vld [vmem:[%s14457_s16 + $0x6c8] sm:$0xf]  ;;  %v9678_v31 = vld [vmem:[%s14457_s16 + $0x68c] sm:$0xf]  ;;  %2056 = vst [vmem:[#allocation2 + $0x690] sm:$0xf] %v9676_v29 }
 0x189   :  { %2058 = vst [vmem:[#allocation2 + $0x694] sm:$0xf] %v9677_v30  ;;  %2060 = vst [vmem:[#allocation2 + $0x698] sm:$0xf] %v9678_v31  ;;  %v9679_v32 = vld [vmem:[%s14457_s16 + $0x6cc] sm:$0xf] }
 0x18a   :  { %v9680_v33 = vld [vmem:[%s14457_s16 + $0x690] sm:$0xf]  ;;  %2062 = vst [vmem:[#allocation2 + $0x69c] sm:$0xf] %v9679_v32  ;;  %v9682_v35 = vld [vmem:[%s14457_s16 + $0x694] sm:$0xf] }
 0x18b   :  { %v9681_v34 = vld [vmem:[%s14457_s16 + $0x6d0] sm:$0xf]  ;;  %2064 = vst [vmem:[#allocation2 + $0x6a0] sm:$0xf] %v9680_v33  ;;  %v9683_v36 = vld [vmem:[%s14457_s16 + $0x6d4] sm:$0xf] }
 0x18c   :  { %2066 = vst [vmem:[#allocation2 + $0x6a4] sm:$0xf] %v9681_v34  ;;  %v9684_v37 = vld [vmem:[%s14457_s16 + $0x698] sm:$0xf]  ;;  %2068 = vst [vmem:[#allocation2 + $0x6a8] sm:$0xf] %v9682_v35 }
 0x18d   :  { %2070 = vst [vmem:[#allocation2 + $0x6ac] sm:$0xf] %v9683_v36  ;;  %2072 = vst [vmem:[#allocation2 + $0x6b0] sm:$0xf] %v9684_v37  ;;  %v9685_v38 = vld [vmem:[%s14457_s16 + $0x6d8] sm:$0xf] }
 0x18e   :  { %v9686_v39 = vld [vmem:[%s14457_s16 + $0x69c] sm:$0xf]  ;;  %2074 = vst [vmem:[#allocation2 + $0x6b4] sm:$0xf] %v9685_v38  ;;  %v9688_v41 = vld [vmem:[%s14457_s16 + $0x6a0] sm:$0xf] }
 0x18f   :  { %v9687_v40 = vld [vmem:[%s14457_s16 + $0x6dc] sm:$0xf]  ;;  %2076 = vst [vmem:[#allocation2 + $0x6b8] sm:$0xf] %v9686_v39  ;;  %v9689_v42 = vld [vmem:[%s14457_s16 + $0x6e0] sm:$0xf] }
 0x190   :  { %2078 = vst [vmem:[#allocation2 + $0x6bc] sm:$0xf] %v9687_v40  ;;  %v9690_v43 = vld [vmem:[%s14457_s16 + $0x6a4] sm:$0xf]  ;;  %2080 = vst [vmem:[#allocation2 + $0x6c0] sm:$0xf] %v9688_v41 }
 0x191   :  { %2082 = vst [vmem:[#allocation2 + $0x6c4] sm:$0xf] %v9689_v42  ;;  %2084 = vst [vmem:[#allocation2 + $0x6c8] sm:$0xf] %v9690_v43  ;;  %v9691_v44 = vld [vmem:[%s14457_s16 + $0x6e4] sm:$0xf] }
 0x192   :  { %v9692_v45 = vld [vmem:[%s14457_s16 + $0x6a8] sm:$0xf]  ;;  %2086 = vst [vmem:[#allocation2 + $0x6cc] sm:$0xf] %v9691_v44  ;;  %v9694_v47 = vld [vmem:[%s14457_s16 + $0x6ac] sm:$0xf] }
 0x193   :  { %v9693_v46 = vld [vmem:[%s14457_s16 + $0x6e8] sm:$0xf]  ;;  %2088 = vst [vmem:[#allocation2 + $0x6d0] sm:$0xf] %v9692_v45  ;;  %v9695_v48 = vld [vmem:[%s14457_s16 + $0x6ec] sm:$0xf] }
 0x194   :  { %2090 = vst [vmem:[#allocation2 + $0x6d4] sm:$0xf] %v9693_v46  ;;  %v9696_v49 = vld [vmem:[%s14457_s16 + $0x6b0] sm:$0xf]  ;;  %2092 = vst [vmem:[#allocation2 + $0x6d8] sm:$0xf] %v9694_v47 }
 0x195   :  { %2094 = vst [vmem:[#allocation2 + $0x6dc] sm:$0xf] %v9695_v48  ;;  %2096 = vst [vmem:[#allocation2 + $0x6e0] sm:$0xf] %v9696_v49  ;;  %v9697_v50 = vld [vmem:[%s14457_s16 + $0x6f0] sm:$0xf] }
 0x196   :  { %v9698_v51 = vld [vmem:[%s14457_s16 + $0x6b4] sm:$0xf]  ;;  %2098 = vst [vmem:[#allocation2 + $0x6e4] sm:$0xf] %v9697_v50  ;;  %v9700_v53 = vld [vmem:[%s14457_s16 + $0x6b8] sm:$0xf] }
 0x197   :  { %v9699_v52 = vld [vmem:[%s14457_s16 + $0x6f4] sm:$0xf]  ;;  %2100 = vst [vmem:[#allocation2 + $0x6e8] sm:$0xf] %v9698_v51  ;;  %v9701_v54 = vld [vmem:[%s14457_s16 + $0x6f8] sm:$0xf] }
 0x198   :  { %2102 = vst [vmem:[#allocation2 + $0x6ec] sm:$0xf] %v9699_v52  ;;  %v9702_v55 = vld [vmem:[%s14457_s16 + $0x6bc] sm:$0xf]  ;;  %2104 = vst [vmem:[#allocation2 + $0x6f0] sm:$0xf] %v9700_v53 }
 0x199   :  { %2106 = vst [vmem:[#allocation2 + $0x6f4] sm:$0xf] %v9701_v54  ;;  %2108 = vst [vmem:[#allocation2 + $0x6f8] sm:$0xf] %v9702_v55  ;;  %v9703_v56 = vld [vmem:[%s14457_s16 + $0x6fc] sm:$0xf] }
 0x19a   :  { %2110 = vst [vmem:[#allocation2 + $0x6fc] sm:$0xf] %v9703_v56 }
 0x19b   :  { %2269 = vsyncadd [#allocation3 + $0x6], 4096  ;;  %v9768_v57 = vld [vmem:[%s14457_s16 + $0x700] sm:$0xf]  ;;  %v9770_v59 = vld [vmem:[%s14457_s16 + $0x704] sm:$0xf] }
 0x19c   :  { %v9769_v58 = vld [vmem:[%s14457_s16 + $0x740] sm:$0xf]  ;;  %2291 = vst [vmem:[#allocation2 + $0x700] sm:$0xf] %v9768_v57  ;;  %v9771_v60 = vld [vmem:[%s14457_s16 + $0x744] sm:$0xf] }
 0x19d   :  { %2293 = vst [vmem:[#allocation2 + $0x704] sm:$0xf] %v9769_v58  ;;  %v9772_v61 = vld [vmem:[%s14457_s16 + $0x708] sm:$0xf]  ;;  %2295 = vst [vmem:[#allocation2 + $0x708] sm:$0xf] %v9770_v59 }
 0x19e   :  { %2297 = vst [vmem:[#allocation2 + $0x70c] sm:$0xf] %v9771_v60  ;;  %2299 = vst [vmem:[#allocation2 + $0x710] sm:$0xf] %v9772_v61  ;;  %v9773_v62 = vld [vmem:[%s14457_s16 + $0x748] sm:$0xf] }
 0x19f   :  { %v9774_v63 = vld [vmem:[%s14457_s16 + $0x70c] sm:$0xf]  ;;  %2301 = vst [vmem:[#allocation2 + $0x714] sm:$0xf] %v9773_v62  ;;  %v9776_v1 = vld [vmem:[%s14457_s16 + $0x710] sm:$0xf] }
 0x1a0   :  { %v9775_v0 = vld [vmem:[%s14457_s16 + $0x74c] sm:$0xf]  ;;  %2303 = vst [vmem:[#allocation2 + $0x718] sm:$0xf] %v9774_v63  ;;  %v9777_v2 = vld [vmem:[%s14457_s16 + $0x750] sm:$0xf] }
 0x1a1   :  { %2305 = vst [vmem:[#allocation2 + $0x71c] sm:$0xf] %v9775_v0  ;;  %v9778_v3 = vld [vmem:[%s14457_s16 + $0x714] sm:$0xf]  ;;  %2307 = vst [vmem:[#allocation2 + $0x720] sm:$0xf] %v9776_v1 }
 0x1a2   :  { %2309 = vst [vmem:[#allocation2 + $0x724] sm:$0xf] %v9777_v2  ;;  %2311 = vst [vmem:[#allocation2 + $0x728] sm:$0xf] %v9778_v3  ;;  %v9779_v4 = vld [vmem:[%s14457_s16 + $0x754] sm:$0xf] }
 0x1a3   :  { %v9780_v5 = vld [vmem:[%s14457_s16 + $0x718] sm:$0xf]  ;;  %2313 = vst [vmem:[#allocation2 + $0x72c] sm:$0xf] %v9779_v4  ;;  %v9782_v7 = vld [vmem:[%s14457_s16 + $0x71c] sm:$0xf] }
 0x1a4   :  { %v9781_v6 = vld [vmem:[%s14457_s16 + $0x758] sm:$0xf]  ;;  %2315 = vst [vmem:[#allocation2 + $0x730] sm:$0xf] %v9780_v5  ;;  %v9783_v8 = vld [vmem:[%s14457_s16 + $0x75c] sm:$0xf] }
 0x1a5   :  { %2317 = vst [vmem:[#allocation2 + $0x734] sm:$0xf] %v9781_v6  ;;  %v9784_v9 = vld [vmem:[%s14457_s16 + $0x720] sm:$0xf]  ;;  %2319 = vst [vmem:[#allocation2 + $0x738] sm:$0xf] %v9782_v7 }
 0x1a6   :  { %2321 = vst [vmem:[#allocation2 + $0x73c] sm:$0xf] %v9783_v8  ;;  %2323 = vst [vmem:[#allocation2 + $0x740] sm:$0xf] %v9784_v9  ;;  %v9785_v10 = vld [vmem:[%s14457_s16 + $0x760] sm:$0xf] }
 0x1a7   :  { %v9786_v11 = vld [vmem:[%s14457_s16 + $0x724] sm:$0xf]  ;;  %2325 = vst [vmem:[#allocation2 + $0x744] sm:$0xf] %v9785_v10  ;;  %v9788_v13 = vld [vmem:[%s14457_s16 + $0x728] sm:$0xf] }
 0x1a8   :  { %v9787_v12 = vld [vmem:[%s14457_s16 + $0x764] sm:$0xf]  ;;  %2327 = vst [vmem:[#allocation2 + $0x748] sm:$0xf] %v9786_v11  ;;  %v9789_v14 = vld [vmem:[%s14457_s16 + $0x768] sm:$0xf] }
 0x1a9   :  { %2329 = vst [vmem:[#allocation2 + $0x74c] sm:$0xf] %v9787_v12  ;;  %v9790_v15 = vld [vmem:[%s14457_s16 + $0x72c] sm:$0xf]  ;;  %2331 = vst [vmem:[#allocation2 + $0x750] sm:$0xf] %v9788_v13 }
 0x1aa   :  { %2333 = vst [vmem:[#allocation2 + $0x754] sm:$0xf] %v9789_v14  ;;  %2335 = vst [vmem:[#allocation2 + $0x758] sm:$0xf] %v9790_v15  ;;  %v9791_v16 = vld [vmem:[%s14457_s16 + $0x76c] sm:$0xf] }
 0x1ab   :  { %v9792_v17 = vld [vmem:[%s14457_s16 + $0x730] sm:$0xf]  ;;  %2337 = vst [vmem:[#allocation2 + $0x75c] sm:$0xf] %v9791_v16  ;;  %v9794_v19 = vld [vmem:[%s14457_s16 + $0x734] sm:$0xf] }
 0x1ac   :  { %v9793_v18 = vld [vmem:[%s14457_s16 + $0x770] sm:$0xf]  ;;  %2339 = vst [vmem:[#allocation2 + $0x760] sm:$0xf] %v9792_v17  ;;  %v9795_v20 = vld [vmem:[%s14457_s16 + $0x774] sm:$0xf] }
 0x1ad   :  { %2341 = vst [vmem:[#allocation2 + $0x764] sm:$0xf] %v9793_v18  ;;  %v9796_v21 = vld [vmem:[%s14457_s16 + $0x738] sm:$0xf]  ;;  %2343 = vst [vmem:[#allocation2 + $0x768] sm:$0xf] %v9794_v19 }
 0x1ae   :  { %2345 = vst [vmem:[#allocation2 + $0x76c] sm:$0xf] %v9795_v20  ;;  %2347 = vst [vmem:[#allocation2 + $0x770] sm:$0xf] %v9796_v21  ;;  %v9797_v22 = vld [vmem:[%s14457_s16 + $0x778] sm:$0xf] }
 0x1af   :  { %v9798_v23 = vld [vmem:[%s14457_s16 + $0x73c] sm:$0xf]  ;;  %2349 = vst [vmem:[#allocation2 + $0x774] sm:$0xf] %v9797_v22  ;;  %v9801_v25 = vld [vmem:[%s14457_s16 + $0x7c0] sm:$0xf] }
 0x1b0   :  { %v9799_v24 = vld [vmem:[%s14457_s16 + $0x77c] sm:$0xff]   ;;  %2351 = vst [vmem:[#allocation2 + $0x778] sm:$0xf] %v9798_v23  ;;  %v9802_v26 = vld [vmem:[%s14457_s16 + $0x784] sm:$0xf] }
 0x1b1   :  { %2353 = vst [vmem:[#allocation2 + $0x77c] sm:$0xff] %v9799_v24   ;;  %v9803_v27 = vld [vmem:[%s14457_s16 + $0x7c4] sm:$0xf]  ;;  %2357 = vst [vmem:[#allocation2 + $0x784] sm:$0xf] %v9801_v25 }
 0x1b2   :  { %2359 = vst [vmem:[#allocation2 + $0x788] sm:$0xf] %v9802_v26  ;;  %2361 = vst [vmem:[#allocation2 + $0x78c] sm:$0xf] %v9803_v27  ;;  %v9804_v28 = vld [vmem:[%s14457_s16 + $0x788] sm:$0xf] }
 0x1b3   :  { %v9805_v29 = vld [vmem:[%s14457_s16 + $0x7c8] sm:$0xf]  ;;  %v9806_v30 = vld [vmem:[%s14457_s16 + $0x78c] sm:$0xf]  ;;  %2363 = vst [vmem:[#allocation2 + $0x790] sm:$0xf] %v9804_v28 }
 0x1b4   :  { %2365 = vst [vmem:[#allocation2 + $0x794] sm:$0xf] %v9805_v29  ;;  %2367 = vst [vmem:[#allocation2 + $0x798] sm:$0xf] %v9806_v30  ;;  %v9807_v31 = vld [vmem:[%s14457_s16 + $0x7cc] sm:$0xf] }
 0x1b5   :  { %v9808_v32 = vld [vmem:[%s14457_s16 + $0x790] sm:$0xf]  ;;  %2369 = vst [vmem:[#allocation2 + $0x79c] sm:$0xf] %v9807_v31  ;;  %v9810_v34 = vld [vmem:[%s14457_s16 + $0x794] sm:$0xf] }
 0x1b6   :  { %v9809_v33 = vld [vmem:[%s14457_s16 + $0x7d0] sm:$0xf]  ;;  %2371 = vst [vmem:[#allocation2 + $0x7a0] sm:$0xf] %v9808_v32  ;;  %v9811_v35 = vld [vmem:[%s14457_s16 + $0x7d4] sm:$0xf] }
 0x1b7   :  { %2373 = vst [vmem:[#allocation2 + $0x7a4] sm:$0xf] %v9809_v33  ;;  %v9812_v36 = vld [vmem:[%s14457_s16 + $0x798] sm:$0xf]  ;;  %2375 = vst [vmem:[#allocation2 + $0x7a8] sm:$0xf] %v9810_v34 }
 0x1b8   :  { %2377 = vst [vmem:[#allocation2 + $0x7ac] sm:$0xf] %v9811_v35  ;;  %2379 = vst [vmem:[#allocation2 + $0x7b0] sm:$0xf] %v9812_v36  ;;  %v9813_v37 = vld [vmem:[%s14457_s16 + $0x7d8] sm:$0xf] }
 0x1b9   :  { %v9814_v38 = vld [vmem:[%s14457_s16 + $0x79c] sm:$0xf]  ;;  %2381 = vst [vmem:[#allocation2 + $0x7b4] sm:$0xf] %v9813_v37  ;;  %v9816_v40 = vld [vmem:[%s14457_s16 + $0x7a0] sm:$0xf] }
 0x1ba   :  { %v9815_v39 = vld [vmem:[%s14457_s16 + $0x7dc] sm:$0xf]  ;;  %2383 = vst [vmem:[#allocation2 + $0x7b8] sm:$0xf] %v9814_v38  ;;  %v9817_v41 = vld [vmem:[%s14457_s16 + $0x7e0] sm:$0xf] }
 0x1bb   :  { %2385 = vst [vmem:[#allocation2 + $0x7bc] sm:$0xf] %v9815_v39  ;;  %v9818_v42 = vld [vmem:[%s14457_s16 + $0x7a4] sm:$0xf]  ;;  %2387 = vst [vmem:[#allocation2 + $0x7c0] sm:$0xf] %v9816_v40 }
 0x1bc   :  { %2389 = vst [vmem:[#allocation2 + $0x7c4] sm:$0xf] %v9817_v41  ;;  %2391 = vst [vmem:[#allocation2 + $0x7c8] sm:$0xf] %v9818_v42  ;;  %v9819_v43 = vld [vmem:[%s14457_s16 + $0x7e4] sm:$0xf] }
 0x1bd   :  { %v9820_v44 = vld [vmem:[%s14457_s16 + $0x7a8] sm:$0xf]  ;;  %2393 = vst [vmem:[#allocation2 + $0x7cc] sm:$0xf] %v9819_v43  ;;  %v9822_v46 = vld [vmem:[%s14457_s16 + $0x7ac] sm:$0xf] }
 0x1be   :  { %v9821_v45 = vld [vmem:[%s14457_s16 + $0x7e8] sm:$0xf]  ;;  %2395 = vst [vmem:[#allocation2 + $0x7d0] sm:$0xf] %v9820_v44  ;;  %v9823_v47 = vld [vmem:[%s14457_s16 + $0x7ec] sm:$0xf] }
 0x1bf   :  { %2397 = vst [vmem:[#allocation2 + $0x7d4] sm:$0xf] %v9821_v45  ;;  %v9824_v48 = vld [vmem:[%s14457_s16 + $0x7b0] sm:$0xf]  ;;  %2399 = vst [vmem:[#allocation2 + $0x7d8] sm:$0xf] %v9822_v46 }
 0x1c0   :  { %2401 = vst [vmem:[#allocation2 + $0x7dc] sm:$0xf] %v9823_v47  ;;  %2403 = vst [vmem:[#allocation2 + $0x7e0] sm:$0xf] %v9824_v48  ;;  %v9825_v49 = vld [vmem:[%s14457_s16 + $0x7f0] sm:$0xf] }
 0x1c1   :  { %v9826_v50 = vld [vmem:[%s14457_s16 + $0x7b4] sm:$0xf]  ;;  %2405 = vst [vmem:[#allocation2 + $0x7e4] sm:$0xf] %v9825_v49  ;;  %v9828_v52 = vld [vmem:[%s14457_s16 + $0x7b8] sm:$0xf] }
 0x1c2   :  { %v9827_v51 = vld [vmem:[%s14457_s16 + $0x7f4] sm:$0xf]  ;;  %2407 = vst [vmem:[#allocation2 + $0x7e8] sm:$0xf] %v9826_v50  ;;  %v9829_v53 = vld [vmem:[%s14457_s16 + $0x7f8] sm:$0xf] }
 0x1c3   :  { %2409 = vst [vmem:[#allocation2 + $0x7ec] sm:$0xf] %v9827_v51  ;;  %v9830_v54 = vld [vmem:[%s14457_s16 + $0x7bc] sm:$0xf]  ;;  %2411 = vst [vmem:[#allocation2 + $0x7f0] sm:$0xf] %v9828_v52 }
 0x1c4   :  { %2413 = vst [vmem:[#allocation2 + $0x7f4] sm:$0xf] %v9829_v53  ;;  %2415 = vst [vmem:[#allocation2 + $0x7f8] sm:$0xf] %v9830_v54  ;;  %v9831_v55 = vld [vmem:[%s14457_s16 + $0x7fc] sm:$0xf] }
 0x1c5   :  { %2417 = vst [vmem:[#allocation2 + $0x7fc] sm:$0xf] %v9831_v55 }
 0x1c6   :  { %2576 = vsyncadd [#allocation3 + $0x7], 4096  ;;  %v2579_v56 = vld [vmem:[#allocation4] sm:$0xff]  ;;  %v2580_v57 = vld [vmem:[#allocation4 + $0x8] sm:$0xff]  ;;  %vm2588_vm0 = vcmask 130048   ;;  %s14474_s1 = sld [smem:[#allocation34_spill]] }
 0x1c7   :  { %v10514_v58 = vpack.c.bf16 %v2580_v57, %v2579_v56  ;;  %v2674_v60 = vld [vmem:[%s14445_s4] sm:$0xff]  ;;  %v2675_v61 = vld [vmem:[%s14445_s4 + $0x8] sm:$0xff]  ;;  %v2676_v3 = vld [vmem:[%s14445_s4 + $0x10] sm:$0xff]  ;;  %s14475_s16 = sld [smem:[#allocation36_spill]]  ;;  %vm2678_vm1 = vcmask 261120   ;;  %v11285_v24 = vmov 0.0  }
 0x1c8   :  { %v2839_v62 = vld [vmem:[%s14447_s6] sm:$0xff]  ;;  %v2840_v63 = vld [vmem:[%s14447_s6 + $0x8] sm:$0xff]  ;;  %v10518_v0 = vpack.c.bf16 %v2675_v61, %v2674_v60  ;;  %v2677_v4 = vld [vmem:[%s14445_s4 + $0x18] sm:$0xff]  ;;  %vm11286_vm2 = vmmov 0   ;;  %vm2922_vm3 = vcmask 64512   ;;  %s11288_s22 = smov 112  }
 0x1c9   :  { %10515 = vmatprep.subr.bf16.mxu0 %v10514_v58  ;;  %v10534_v1 = vpack.c.bf16 %v2840_v63, %v2839_v62  ;;  %v10522_v5 = vpack.c.bf16 %v2677_v4, %v2676_v3  ;;  %v2841_v6 = vld [vmem:[%s14447_s6 + $0x10] sm:$0xff]  ;;  %v2842_v7 = vld [vmem:[%s14447_s6 + $0x18] sm:$0xff]  ;;  %v2760_v9 = vld [vmem:[%s14446_s5] sm:$0xff]  ;;  %s11289_s29 = smov 104  }
 0x1ca   :  { %10517 = vmatpush3.bf16.msra.mxu0 %v10514_v58  ;;  %v10538_v8 = vpack.c.bf16 %v2842_v7, %v2841_v6  ;;  %v2761_v10 = vld [vmem:[%s14446_s5 + $0x8] sm:$0xff]  ;;  %v2670_v16 = vld [vmem:[#allocation7] sm:$0xff]  ;;  %v2671_v17 = vld [vmem:[#allocation7 + $0x8] sm:$0xff] }
 0x1cb   :  { %10519 = vmatprep.subr.bf16.mxu0 %v10518_v0  ;;  %10535 = vmatprep.subr.bf16.mxu1 %v10534_v1  ;;  %v10526_v11 = vpack.c.bf16 %v2761_v10, %v2760_v9  ;;  %v2762_v19 = vld [vmem:[%s14446_s5 + $0x10] sm:$0xff]  ;;  %v2763_v20 = vld [vmem:[%s14446_s5 + $0x18] sm:$0xff]  ;;  %s11287_s5 = smov 120  }
 0x1cc   :  { %v2577_v59 = vld [vmem:[%s14474_s1] sm:$0xff]  ;;  %v2578_v2 = vld [vmem:[%s14474_s1 + $0x8] sm:$0xff]  ;;  %10537 = vmatpush3.bf16.msra.mxu1 %v10534_v1  ;;  %v10530_v23 = vpack.c.bf16 %v2763_v20, %v2762_v19 }
 0x1cd   :  { %10332 = vmatprep.mubr.msk.f32.mxu0 %vm2588_vm0, %v2577_v59  ;;  %10539 = vmatprep.subr.bf16.mxu1 %v10538_v8  ;;  %v9832_v12 = vld [vmem:[%s14475_s16] ss:$0 sm:$0xff] }
 0x1ce   :  { %10333 = vmatmul.mubr.msk.f32.vlgmr.msra.gmra.mrb[0].mxu0 %vm2588_vm0, %v2578_v2 }
 0x1cf   :  { %10521 = vmatpush3.bf16.msra.mxu0 %v10518_v0 }
 0x1d0   :  { %10523 = vmatprep.subr.bf16.mxu0 %v10522_v5  ;;  %10541 = vmatpush3.bf16.msra.mxu1 %v10538_v8 }
 0x1d1   :  { %10388 = vmatprep.subr.mxu1 %v11285_v24 }
 0x1d3   :  { %10525 = vmatpush3.bf16.msra.mxu0 %v10522_v5 }
 0x1d4   :  { %10527 = vmatprep.subr.bf16.mxu0 %v10526_v11 }
 0x2a1   :  { %v10334_v13 = vpop.f32.mrb[0].mxu0 }
 0x2a2   :  { %v2667_v14 = vadd.f32 %v10334_v13, %v9832_v12  ;;  %v2661_v15 = vpop.f32.mrb[1].mxu0 }
 0x2a3   :  { %v2662_v18 = vadd.f32 %v9832_v12, %v2661_v15 }
 0x2a4   :  { %v13027_v22 = vadd.f32 %v2671_v17, %v2667_v14 }
 0x2a5   :  { %v13025_v21 = vadd.f32 %v2670_v16, %v2662_v18 }
 0x2a7   :  { %10343 = vmatprep.mubr.msk.f32.mxu0 %vm2678_vm1, %v13025_v21  ;;  %10365 = vmatprep.mubr.msk.f32.mxu1 %vm2678_vm1, %v13025_v21 }
 0x2a8   :  { %10344 = vmatmul.mubr.msk.f32.vlgmr.msra.gmra.mrb[2].mxu0 %vm2678_vm1, %v13027_v22  ;;  %10366 = vmatmul.mubr.msk.f32.vlgmr.msra.gmra.mrb[0].mxu1 %vm2678_vm1, %v13027_v22 }
 0x2a9   :  { %10529 = vmatpush3.bf16.msra.mxu0 %v10526_v11  ;;  %10354 = vmatprep.mubr.msk.f32.mxu0 %vm2678_vm1, %v13025_v21 }
 0x2aa   :  { %10531 = vmatprep.subr.bf16.mxu0 %v10530_v23  ;;  %10390 = vmatprep.mubr.msk.f32.mxu1 %vm11286_vm2, %v11285_v24 }
 0x2ad   :  { %10533 = vmatpush3.bf16.msra.mxu0 %v10530_v23 }
 0x2ae   :  { %10368 = vmatprep.subr.mxu0 %v11285_v24 }
 0x2b0   :  { %10355 = vmatmul.mubr.msk.f32.vlgmr.msra.gmra.mrb[4].mxu0 %vm2678_vm1, %v13027_v22 }
 0x2b1   :  { %10370 = vmatprep.mubr.msk.f32.mxu0 %vm11286_vm2, %v11285_v24 }
 0x37b   :  { %v13047_v25 = vpop.f32.mrb[2].mxu0  ;;  %v13049_v26 = vpop.f32.mrb[0].mxu1 }
 0x37c   :  { %v13051_v27 = vpop.f32.mrb[3].mxu0  ;;  %v13053_v28 = vpop.f32.mrb[1].mxu1 }
 0x383   :  { %v13055_v29 = vpop.f32.mrb[4].mxu0 }
 0x384   :  { %v13057_v30 = vpop.f32.mrb[5].mxu0 }
 0x385   :  { %10369 = vmatpush3.xpose.msk.msra.mxu0 %vm2922_vm3, %v13057_v30 }
 0x386   :  { %10373 = vmatprep.subr.mxu0 %v11285_v24 }
 0x388   :  { %10371 = vmatmul.mubr.msk.f32.vlgmr.msra.gmra.mrb[6].mxu0 %vm2922_vm3, %v13051_v27 }
 0x389   :  { %10374 = vmatpush3.xpose.msk.msra.mxu0 %vm2922_vm3, %v13055_v29  ;;  %10375 = vmatprep.mubr.msk.f32.mxu0 %vm11286_vm2, %v11285_v24 }
 0x38a   :  { %10378 = vmatprep.subr.mxu0 %v11285_v24 }
 0x38c   :  { %10376 = vmatmul.mubr.msk.f32.vlgmr.msra.gmra.mrb[8].mxu0 %vm2922_vm3, %v13047_v25 }
 0x38d   :  { %10379 = vmatpush3.msra.mxu0 %v13053_v28  ;;  %10380 = vmatprep.mubr.msk.f32.mxu0 %vm11286_vm2, %v11285_v24 }
 0x38e   :  { %10383 = vmatprep.subr.mxu0 %v11285_v24 }
 0x45b   :  { %v2995_v31 = vpop.f32.mrb[6].mxu0 }
 0x45c   :  { %v3075_v32 = vmul.f32 0.17677669, %v2995_v31  ;;  %v10372_v33 = vpop.f32.mrb[7].mxu0 }
 0x45e   :  { %v3077_v34 = vsel %vm2922_vm3, %v3075_v32, -inf }
 0x45f   :  { %3078 = vmax.xlane.f32.xlu0 %v3077_v34  ;;  %v3071_v35 = vpop.f32.mrb[8].mxu0 }
 0x460   :  { %v3076_v36 = vmul.f32 0.17677669, %v3071_v35  ;;  %v10377_v37 = vpop.f32.mrb[9].mxu0 }
 0x462   :  { %v3080_v38 = vsel %vm2922_vm3, %v3076_v36, -inf }
 0x463   :  { %3081 = vmax.xlane.f32.xlu0 %v3080_v38 }
 0x479   :  { %3325 = vrot.lane.b32.xlu0 %v13055_v29, %s11287_s5 }
 0x4ec   :  { %v3079_v39 = vpop.xlane.xlu0 %3078 }
 0x4ed   :  { %v3083_v40 = vsub.f32 %v3075_v32, %v3079_v39 }
 0x4ef   :  { %v3085_v41 = vmul.f32 1.442695, %v3083_v40 }
 0x4f0   :  { %v3082_v42 = vpop.xlane.xlu0 %3081 }
 0x4f1   :  { %11082 = vpow2.f32 %v3085_v41  ;;  %v3084_v43 = vsub.f32 %v3076_v36, %v3082_v42 }
 0x4f3   :  { %v3087_v44 = vmul.f32 1.442695, %v3084_v43 }
 0x4f4   :  { %v3326_v58 = vpop.permute.xlu0 %3325 }
 0x4f5   :  { %11084 = vpow2.f32 %v3087_v44 }
 0x4fb   :  { %v11083_v45 = vpop.eup %11082 }
 0x4fc   :  { %v3089_v46 = vsel %vm2922_vm3, %v11083_v45, 0.0 }
 0x4fd   :  { %3090 = vadd.xlane.f32.xlu1 %v3089_v46  ;;  %v2919_v46 = vld [vmem:[%s14448_s7 + $0x8] sm:$0xff] }
 0x4ff   :  { %v11085_v47 = vpop.eup %11084 }
 0x500   :  { %v3092_v48 = vsel %vm2922_vm3, %v11085_v47, 0.0 }
 0x501   :  { %3093 = vadd.xlane.f32.xlu1 %v3092_v48 }
 0x512   :  { %3323 = vrot.lane.b32.xlu1 %v13047_v25, %s11287_s5 }
 0x516   :  { %3247 = vrot.lane.b32.xlu1 %v13057_v30, %s11287_s5 }
 0x51a   :  { %3245 = vrot.lane.b32.xlu1 %v13051_v27, %s11287_s5 }
 0x51e   :  { %3743 = vrot.lane.b32.xlu1 %v13057_v30, %s11288_s22 }
 0x58a   :  { %v3091_v49 = vpop.xlane.xlu1 %3090 }
 0x58b   :  { %11086 = vrcp.f32 %v3091_v49 }
 0x58e   :  { %v3094_v50 = vpop.xlane.xlu1 %3093 }
 0x58f   :  { %11088 = vrcp.f32 %v3094_v50 }
 0x592   :  { %v3324_v51 = vpop.permute.xlu1 %3323 }
 0x595   :  { %v11087_v52 = vpop.eup %11086 }
 0x596   :  { %v3096_v53 = vmul.f32 %v11087_v52, %v11083_v45  ;;  %v3248_v54 = vpop.permute.xlu1 %3247 }
 0x597   :  { %10389 = vmatpush3.xpose.msk.msra.mxu1 %vm2922_vm3, %v3248_v54 }
 0x598   :  { %10381 = vmatmul.mubr.msk.f32.vlgmr.msra.gmra.mrb[10].mxu0 %vm2922_vm3, %v3096_v53  ;;  %10398 = vmatprep.subr.mxu1 %v11285_v24 }
 0x599   :  { %v11089_v55 = vpop.eup %11088  ;;  %10384 = vmatpush3.msra.mxu0 %v13049_v26  ;;  %10385 = vmatprep.mubr.msk.f32.mxu0 %vm11286_vm2, %v11285_v24 }
 0x59a   :  { %v3098_v56 = vmul.f32 %v11089_v55, %v11085_v47  ;;  %v3246_v57 = vpop.permute.xlu1 %3245  ;;  %10393 = vmatprep.subr.mxu0 %v11285_v24  ;;  %v2918_v47 = vld [vmem:[%s14448_s7] sm:$0xff] }
 0x59b   :  { %10391 = vmatmul.mubr.msk.f32.vlgmr.msra.gmra.mrb[2].mxu1 %vm2922_vm3, %v3246_v57 }
 0x59c   :  { %10386 = vmatmul.mubr.msk.f32.vlgmr.msra.gmra.mrb[12].mxu0 %vm2922_vm3, %v3098_v56  ;;  %10400 = vmatprep.mubr.msk.f32.mxu1 %vm11286_vm2, %v11285_v24 }
 0x59d   :  { %10395 = vmatprep.mubr.msk.f32.mxu0 %vm11286_vm2, %v11285_v24 }
 0x59e   :  { %v3744_v13 = vpop.permute.xlu1 %3743 }
 0x5a0   :  { %10394 = vmatpush3.xpose.msk.msra.mxu0 %vm2922_vm3, %v3326_v58 }
 0x5a1   :  { %10403 = vmatprep.subr.mxu0 %v11285_v24 }
 0x5a3   :  { %10396 = vmatmul.mubr.msk.f32.vlgmr.msra.gmra.mrb[14].mxu0 %vm2922_vm3, %v3324_v51 }
 0x5a4   :  { %10405 = vmatprep.mubr.msk.f32.mxu0 %vm11286_vm2, %v11285_v24 }
 0x66b   :  { %v13107_v59 = vpop.f32.mrb[10].mxu0 }
 0x66c   :  { %v10382_v60 = vpop.f32.mrb[11].mxu0 }
 0x66e   :  { %v3319_v61 = vpop.f32.mrb[2].mxu1 }
 0x66f   :  { %v13109_v62 = vpop.f32.mrb[12].mxu0  ;;  %v10392_v63 = vpop.f32.mrb[3].mxu1  ;;  %v3401_v11 = vmul.f32 0.17677669, %v3319_v61 }
 0x670   :  { %v10387_v0 = vpop.f32.mrb[13].mxu0  ;;  %v2920_v63 = vld [vmem:[%s14448_s7 + $0x10] sm:$0xff] }
 0x671   :  { %v3403_v12 = vsel %vm2922_vm3, %v3401_v11, -inf }
 0x676   :  { %v3397_v1 = vpop.f32.mrb[14].mxu0 }
 0x677   :  { %v3402_v2 = vmul.f32 0.17677669, %v3397_v1  ;;  %v10397_v3 = vpop.f32.mrb[15].mxu0 }
 0x679   :  { %v3406_v4 = vsel %vm2922_vm3, %v3402_v2, -inf }
 0x67a   :  { %3407 = vmax.xlane.f32.xlu0 %v3406_v4 }
 0x690   :  { %3503 = vrot.lane.b32.xlu0 %v13049_v26, %s11287_s5 }
 0x694   :  { %3741 = vrot.lane.b32.xlu0 %v13051_v27, %s11288_s22 }
 0x698   :  { %3819 = vrot.lane.b32.xlu0 %v13047_v25, %s11288_s22 }
 0x707   :  { %v3408_v5 = vpop.xlane.xlu0 %3407 }
 0x708   :  { %v3410_v6 = vsub.f32 %v3402_v2, %v3408_v5 }
 0x70a   :  { %v3413_v7 = vmul.f32 1.442695, %v3410_v6 }
 0x70b   :  { %v3504_v8 = vpop.permute.xlu0 %3503 }
 0x70c   :  { %11090 = vpow2.f32 %v3413_v7  ;;  %10404 = vmatpush3.msra.mxu0 %v3504_v8 }
 0x70d   :  { %10418 = vmatprep.subr.mxu0 %v11285_v24 }
 0x70f   :  { %v3742_v17 = vpop.permute.xlu0 %3741 }
 0x713   :  { %v3820_v19 = vpop.permute.xlu0 %3819 }
 0x716   :  { %v11091_v9 = vpop.eup %11090 }
 0x717   :  { %v3418_v10 = vsel %vm2922_vm3, %v11091_v9, 0.0 }
 0x718   :  { %3419 = vadd.xlane.f32.xlu1 %v3418_v10 }
 0x729   :  { %3821 = vrot.lane.b32.xlu1 %v13055_v29, %s11288_s22 }
 0x74d   :  { %3404 = vmax.xlane.f32.xlu1 %v3403_v12 }
 0x7a5   :  { %v3420_v14 = vpop.xlane.xlu1 %3419 }
 0x7a6   :  { %11092 = vrcp.f32 %v3420_v14 }
 0x7a9   :  { %v3822_v18 = vpop.permute.xlu1 %3821 }
 0x7b0   :  { %v11093_v15 = vpop.eup %11092 }
 0x7b1   :  { %v3424_v16 = vmul.f32 %v11093_v15, %v11091_v9 }
 0x7b3   :  { %10406 = vmatmul.mubr.msk.f32.vlgmr.msra.gmra.mrb[16].mxu0 %vm2922_vm3, %v3424_v16 }
 0x7b4   :  { %10419 = vmatpush3.xpose.msk.msra.mxu0 %vm2922_vm3, %v3744_v13  ;;  %10420 = vmatprep.mubr.msk.f32.mxu0 %vm11286_vm2, %v11285_v24 }
 0x7b5   :  { %10423 = vmatprep.subr.mxu0 %v11285_v24 }
 0x7b7   :  { %10421 = vmatmul.mubr.msk.f32.vlgmr.msra.gmra.mrb[18].mxu0 %vm2922_vm3, %v3742_v17 }
 0x7b8   :  { %10424 = vmatpush3.xpose.msk.msra.mxu0 %vm2922_vm3, %v3822_v18  ;;  %10425 = vmatprep.mubr.msk.f32.mxu0 %vm11286_vm2, %v11285_v24 }
 0x7b9   :  { %10433 = vmatprep.subr.mxu0 %v11285_v24 }
 0x7bb   :  { %10426 = vmatmul.mubr.msk.f32.vlgmr.msra.gmra.mrb[20].mxu0 %vm2922_vm3, %v3820_v19 }
 0x7bc   :  { %10435 = vmatprep.mubr.msk.f32.mxu0 %vm11286_vm2, %v11285_v24 }
 0x7da   :  { %v3405_v20 = vpop.xlane.xlu1 %3404 }
 0x7db   :  { %v3409_v23 = vsub.f32 %v3401_v11, %v3405_v20 }
 0x7dd   :  { %v3411_v31 = vmul.f32 1.442695, %v3409_v23 }
 0x7df   :  { %11094 = vpow2.f32 %v3411_v31 }
 0x7e9   :  { %v11095_v32 = vpop.eup %11094 }
 0x7ea   :  { %v3415_v33 = vsel %vm2922_vm3, %v11095_v32, 0.0 }
 0x7eb   :  { %3416 = vadd.xlane.f32.xlu0 %v3415_v33 }
 0x801   :  { %3426 = vrot.lane.b32.xlu0 %v13053_v28, %s11287_s5 }
 0x805   :  { %3997 = vrot.lane.b32.xlu0 %v13049_v26, %s11288_s22 }
 0x809   :  { %4158 = vrot.lane.b32.xlu0 %v13057_v30, %s11289_s29 }
 0x80d   :  { %4236 = vrot.lane.b32.xlu0 %v13055_v29, %s11289_s29 }
 0x811   :  { %4156 = vrot.lane.b32.xlu0 %v13051_v27, %s11289_s29 }
 0x878   :  { %v3417_v34 = vpop.xlane.xlu0 %3416 }
 0x879   :  { %11096 = vrcp.f32 %v3417_v34 }
 0x87c   :  { %v3427_v35 = vpop.permute.xlu0 %3426 }
 0x87d   :  { %10399 = vmatpush3.msra.mxu1 %v3427_v35 }
 0x87e   :  { %10408 = vmatprep.subr.mxu1 %v2919_v46 }
 0x880   :  { %v3998_v36 = vpop.permute.xlu0 %3997 }
 0x881   :  { %10434 = vmatpush3.msra.mxu0 %v3998_v36 }
 0x882   :  { %10443 = vmatprep.subr.mxu0 %v11285_v24 }
 0x883   :  { %v11097_v37 = vpop.eup %11096 }
 0x884   :  { %v3422_v38 = vmul.f32 %v11097_v37, %v11095_v32  ;;  %v4159_v1 = vpop.permute.xlu0 %4158 }
 0x886   :  { %10401 = vmatmul.mubr.msk.f32.vlgmr.msra.gmra.mrb[4].mxu1 %vm2922_vm3, %v3422_v38  ;;  %v3575_v39 = vpop.f32.mrb[16].mxu0 }
 0x887   :  { %v10407_v30 = vpop.f32.mrb[17].mxu0  ;;  %10409 = vmatpush3.msra.mxu1 %v2919_v46 }
 0x888   :  { %10413 = vmatprep.subr.mxu1 %v2918_v47  ;;  %v4237_v3 = vpop.permute.xlu0 %4236 }
 0x88a   :  { %v3815_v40 = vpop.f32.mrb[18].mxu0 }
 0x88b   :  { %v3897_v41 = vmul.f32 0.17677669, %v3815_v40  ;;  %v10422_v29 = vpop.f32.mrb[19].mxu0 }
 0x88c   :  { %v4157_v5 = vpop.permute.xlu0 %4156 }
 0x88d   :  { %v3899_v42 = vsel %vm2922_vm3, %v3897_v41, -inf }
 0x88e   :  { %3900 = vmax.xlane.f32.xlu1 %v3899_v42  ;;  %v3893_v27 = vpop.f32.mrb[20].mxu0  ;;  %v2921_v42 = vld [vmem:[%s14448_s7 + $0x18] sm:$0xff] }
 0x88f   :  { %v3898_v43 = vmul.f32 0.17677669, %v3893_v27  ;;  %v10427_v44 = vpop.f32.mrb[21].mxu0 }
 0x891   :  { %v3902_v45 = vsel %vm2922_vm3, %v3898_v43, -inf }
 0x892   :  { %3903 = vmax.xlane.f32.xlu1 %v3902_v45 }
 0x91b   :  { %v3901_v48 = vpop.xlane.xlu1 %3900 }
 0x91c   :  { %v3905_v49 = vsub.f32 %v3897_v41, %v3901_v48 }
 0x91e   :  { %v3907_v50 = vmul.f32 1.442695, %v3905_v49 }
 0x91f   :  { %v3904_v51 = vpop.xlane.xlu1 %3903 }
 0x920   :  { %11098 = vpow2.f32 %v3907_v50  ;;  %v3906_v52 = vsub.f32 %v3898_v43, %v3904_v51 }
 0x922   :  { %v3909_v53 = vmul.f32 1.442695, %v3906_v52 }
 0x924   :  { %11100 = vpow2.f32 %v3909_v53 }
 0x92a   :  { %v11099_v54 = vpop.eup %11098 }
 0x92b   :  { %v3911_v55 = vsel %vm2922_vm3, %v11099_v54, 0.0 }
 0x92c   :  { %3912 = vadd.xlane.f32.xlu1 %v3911_v55 }
 0x92e   :  { %v11101_v56 = vpop.eup %11100 }
 0x92f   :  { %v3914_v57 = vsel %vm2922_vm3, %v11101_v56, 0.0 }
 0x930   :  { %3915 = vadd.xlane.f32.xlu1 %v3914_v57 }
 0x941   :  { %3921 = vrot.lane.b32.xlu1 %v13053_v28, %s11288_s22 }
 0x945   :  { %4234 = vrot.lane.b32.xlu1 %v13047_v25, %s11289_s29 }
 0x959   :  { %v3498_v58 = vpop.f32.mrb[4].mxu1 }
 0x95a   :  { %v10402_v60 = vpop.f32.mrb[5].mxu1  ;;  %10410 = vmatprep.mubr.msk.f32.mxu1 %vm2922_vm3, %v3498_v58 }
 0x95b   :  { %10411 = vmatmul.mubr.msk.f32.vlgmr.msra.gmra.mrb[6].mxu1 %vm2922_vm3, %v3575_v39  ;;  %v4618_v60 = vld [vmem:[%s14451_s10] sm:$0xff] }
 0x95c   :  { %10415 = vmatprep.mubr.msk.f32.mxu1 %vm2922_vm3, %v13107_v59  ;;  %10414 = vmatpush3.msra.mxu1 %v2918_v47 }
 0x95d   :  { %10428 = vmatprep.subr.mxu1 %v11285_v24 }
 0x963   :  { %10416 = vmatmul.mubr.msk.f32.vlgmr.msra.gmra.mrb[6].mxu1 %vm2922_vm3, %v13109_v62 }
 0x964   :  { %10430 = vmatprep.mubr.msk.f32.mxu1 %vm11286_vm2, %v11285_v24 }
 0x9b9   :  { %v3913_v61 = vpop.xlane.xlu1 %3912 }
 0x9ba   :  { %11102 = vrcp.f32 %v3913_v61  ;;  %v4619_v61 = vld [vmem:[%s14451_s10 + $0x8] sm:$0xff] }
 0x9bd   :  { %v3916_v25 = vpop.xlane.xlu1 %3915 }
 0x9be   :  { %11104 = vrcp.f32 %v3916_v25  ;;  %v10542_v25 = vpack.c.bf16 %v4619_v61, %v4618_v60 }
 0x9c1   :  { %v3922_v0 = vpop.permute.xlu1 %3921 }
 0x9c2   :  { %10429 = vmatpush3.msra.mxu1 %v3922_v0  ;;  %v4621_v0 = vld [vmem:[%s14451_s10 + $0x18] sm:$0xff] }
 0x9c3   :  { %10438 = vmatprep.subr.mxu1 %v2920_v63 }
 0x9c4   :  { %v11103_v59 = vpop.eup %11102 }
 0x9c5   :  { %v3918_v2 = vmul.f32 %v11103_v59, %v11099_v54  ;;  %v4235_v10 = vpop.permute.xlu1 %4234  ;;  %v4712_v59 = vld [vmem:[%s14453_s12] sm:$0xff] }
 0x9c7   :  { %10431 = vmatmul.mubr.msk.f32.vlgmr.msra.gmra.mrb[8].mxu1 %vm2922_vm3, %v3918_v2  ;;  %v4713_v2 = vld [vmem:[%s14453_s12 + $0x8] sm:$0xff] }
 0x9c8   :  { %v11105_v62 = vpop.eup %11104  ;;  %10439 = vmatpush3.msra.mxu1 %v2920_v63  ;;  %v4620_v63 = vld [vmem:[%s14451_s10 + $0x10] sm:$0xff] }
 0x9c9   :  { %v3920_v4 = vmul.f32 %v11105_v62, %v11101_v56  ;;  %10448 = vmatprep.subr.mxu1 %v11285_v24  ;;  %v4714_v62 = vld [vmem:[%s14453_s12 + $0x10] sm:$0xff] }
 0x9cb   :  { %10436 = vmatmul.mubr.msk.f32.vlgmr.msra.gmra.mrb[22].mxu0 %vm2922_vm3, %v3920_v4  ;;  %v4715_v4 = vld [vmem:[%s14453_s12 + $0x18] sm:$0xff] }
 0x9cc   :  { %10444 = vmatpush3.xpose.msk.msra.mxu0 %vm2922_vm3, %v4159_v1  ;;  %10445 = vmatprep.mubr.msk.f32.mxu0 %vm11286_vm2, %v11285_v24  ;;  %v10546_v1 = vpack.c.bf16 %v4621_v0, %v4620_v63 }
 0x9cd   :  { %10453 = vmatprep.subr.mxu0 %v11285_v24 }
 0x9cf   :  { %10446 = vmatmul.mubr.msk.f32.vlgmr.msra.gmra.mrb[24].mxu0 %vm2922_vm3, %v4157_v5  ;;  %v10554_v5 = vpack.c.bf16 %v4715_v4, %v4714_v62 }
 0x9d0   :  { %10455 = vmatprep.mubr.msk.f32.mxu0 %vm11286_vm2, %v11285_v24 }
 0xa9a   :  { %v3993_v6 = vpop.f32.mrb[8].mxu1 }
 0xa9b   :  { %v10432_v7 = vpop.f32.mrb[9].mxu1  ;;  %10440 = vmatprep.mubr.msk.f32.mxu1 %vm2922_vm3, %v3993_v6  ;;  %v4716_v6 = vld [vmem:[%s14453_s12 + $0x20] sm:$0xff] }
 0xa9c   :  { %v4717_v7 = vld [vmem:[%s14453_s12 + $0x28] sm:$0xff] }
 0xa9e   :  { %v4069_v8 = vpop.f32.mrb[22].mxu0 }
 0xa9f   :  { %v10437_v9 = vpop.f32.mrb[23].mxu0  ;;  %10441 = vmatmul.mubr.msk.f32.vlgmr.msra.gmra.mrb[6].mxu1 %vm2922_vm3, %v4069_v8  ;;  %v10558_v8 = vpack.c.bf16 %v4717_v7, %v4716_v6 }
 0xaa0   :  { %10449 = vmatpush3.xpose.msk.msra.mxu1 %vm2922_vm3, %v4237_v3  ;;  %10450 = vmatprep.mubr.msk.f32.mxu1 %vm11286_vm2, %v11285_v24  ;;  %v10550_v3 = vpack.c.bf16 %v4713_v2, %v4712_v59  ;;  %v4718_v9 = vld [vmem:[%s14453_s12 + $0x30] sm:$0xff] }
 0xaa1   :  { %10458 = vmatprep.subr.mxu1 %v11285_v24 }
 0xaa2   :  { %v4230_v11 = vpop.f32.mrb[24].mxu0 }
 0xaa3   :  { %v4312_v12 = vmul.f32 0.17677669, %v4230_v11  ;;  %v10447_v13 = vpop.f32.mrb[25].mxu0  ;;  %10451 = vmatmul.mubr.msk.f32.vlgmr.msra.gmra.mrb[10].mxu1 %vm2922_vm3, %v4235_v10  ;;  %v4719_v10 = vld [vmem:[%s14453_s12 + $0x38] sm:$0xff] }
 0xaa4   :  { %10460 = vmatprep.mubr.msk.f32.mxu1 %vm11286_vm2, %v11285_v24  ;;  %v10562_v11 = vpack.c.bf16 %v4719_v10, %v4718_v9  ;;  %v4721_v13 = vld [vmem:[%s14453_s12 + $0x48] sm:$0xff]  ;;  %v9879_v9 = vld [vmem:[#allocation9] ss:$0 sm:$0xff] }
 0xaa5   :  { %v4314_v14 = vsel %vm2922_vm3, %v4312_v12, -inf }
 0xaa6   :  { %4315 = vmax.xlane.f32.xlu0 %v4314_v14 }
 0xb33   :  { %v4316_v15 = vpop.xlane.xlu0 %4315 }
 0xb34   :  { %v4320_v16 = vsub.f32 %v4312_v12, %v4316_v15  ;;  %v4720_v12 = vld [vmem:[%s14453_s12 + $0x40] sm:$0xff]  ;;  %v4722_v15 = vld [vmem:[%s14453_s12 + $0x50] sm:$0xff] }
 0xb35   :  { %v10566_v14 = vpack.c.bf16 %v4721_v13, %v4720_v12  ;;  %v9880_v12 = vld [vmem:[#allocation10] ss:$0 sm:$0xff] }
 0xb36   :  { %v4322_v17 = vmul.f32 1.442695, %v4320_v16  ;;  %v4723_v16 = vld [vmem:[%s14453_s12 + $0x58] sm:$0xff] }
 0xb38   :  { %11106 = vpow2.f32 %v4322_v17  ;;  %v10570_v17 = vpack.c.bf16 %v4723_v16, %v4722_v15 }
 0xb42   :  { %v11107_v18 = vpop.eup %11106 }
 0xb43   :  { %v4326_v19 = vsel %vm2922_vm3, %v11107_v18, 0.0 }
 0xb44   :  { %4327 = vadd.xlane.f32.xlu0 %v4326_v19  ;;  %v4725_v19 = vld [vmem:[%s14453_s12 + $0x68] sm:$0xff] }
 0xb76   :  { %v4308_v20 = vpop.f32.mrb[10].mxu1 }
 0xb77   :  { %v4313_v23 = vmul.f32 0.17677669, %v4308_v20  ;;  %v10452_v31 = vpop.f32.mrb[11].mxu1 }
 0xb79   :  { %v4317_v32 = vsel %vm2922_vm3, %v4313_v23, -inf }
 0xb7a   :  { %4318 = vmax.xlane.f32.xlu1 %v4317_v32 }
 0xb8b   :  { %4412 = vrot.lane.b32.xlu1 %v13049_v26, %s11289_s29 }
 0xbd1   :  { %v4328_v38 = vpop.xlane.xlu0 %4327 }
 0xc07   :  { %v4319_v24 = vpop.xlane.xlu1 %4318 }
 0xc08   :  { %v4321_v33 = vsub.f32 %v4313_v23, %v4319_v24 }
 0xc0a   :  { %v4324_v34 = vmul.f32 1.442695, %v4321_v33 }
 0xc0b   :  { %v4413_v35 = vpop.permute.xlu1 %4412 }
 0xc0c   :  { %11108 = vpow2.f32 %v4324_v34  ;;  %10459 = vmatpush3.msra.mxu1 %v4413_v35 }
 0xc0d   :  { %11110 = vrcp.f32 %v4328_v38  ;;  %10463 = vmatprep.subr.mxu1 %v2921_v42 }
 0xc16   :  { %v11109_v36 = vpop.eup %11108 }
 0xc17   :  { %v4329_v37 = vsel %vm2922_vm3, %v11109_v36, 0.0  ;;  %v11111_v30 = vpop.eup %11110 }
 0xc18   :  { %4330 = vadd.xlane.f32.xlu0 %v4329_v37  ;;  %v4333_v40 = vmul.f32 %v11111_v30, %v11107_v18  ;;  %v4724_v18 = vld [vmem:[%s14453_s12 + $0x60] sm:$0xff] }
 0xc19   :  { %v10574_v20 = vpack.c.bf16 %v4725_v19, %v4724_v18  ;;  %v9874_v30 = vld [vmem:[%s14450_s9] ss:$0 sm:$0xff] }
 0xc2e   :  { %4336 = vrot.lane.b32.xlu0 %v13053_v28, %s11289_s29 }
 0xca5   :  { %v4331_v39 = vpop.xlane.xlu0 %4330 }
 0xca6   :  { %11112 = vrcp.f32 %v4331_v39 }
 0xca9   :  { %v4337_v26 = vpop.permute.xlu0 %4336 }
 0xcaa   :  { %10454 = vmatpush3.msra.mxu0 %v4337_v26 }
 0xcab   :  { %10456 = vmatmul.mubr.msk.f32.vlgmr.msra.gmra.mrb[26].mxu0 %vm2922_vm3, %v4333_v40  ;;  %10543 = vmatprep.subr.bf16.mxu0 %v10542_v25 }
 0xcac   :  { %10545 = vmatpush3.bf16.msra.mxu0 %v10542_v25 }
 0xcad   :  { %10547 = vmatprep.subr.bf16.mxu0 %v10546_v1 }
 0xcb0   :  { %v11113_v41 = vpop.eup %11112  ;;  %10549 = vmatpush3.bf16.msra.mxu0 %v10546_v1 }
 0xcb1   :  { %v4335_v29 = vmul.f32 %v11113_v41, %v11109_v36  ;;  %v9873_v36 = vld [vmem:[%s14449_s8] ss:$0 sm:$0xff] }
 0xcb3   :  { %10461 = vmatmul.mubr.msk.f32.vlgmr.msra.gmra.mrb[12].mxu1 %vm2922_vm3, %v4335_v29 }
 0xcb4   :  { %10464 = vmatpush3.msra.mxu1 %v2921_v42  ;;  %v4726_v42 = vld [vmem:[%s14453_s12 + $0x70] sm:$0xff] }
 0xcb5   :  { %10551 = vmatprep.subr.bf16.mxu1 %v10550_v3 }
 0xd7e   :  { %v4408_v28 = vpop.f32.mrb[26].mxu0 }
 0xd7f   :  { %v10457_v27 = vpop.f32.mrb[27].mxu0  ;;  %10465 = vmatprep.mubr.msk.f32.mxu1 %vm2922_vm3, %v4408_v28  ;;  %v4727_v28 = vld [vmem:[%s14453_s12 + $0x78] sm:$0xff] }
 0xd80   :  { %v10578_v27 = vpack.c.bf16 %v4727_v28, %v4726_v42 }
 0xd86   :  { %v4484_v43 = vpop.f32.mrb[12].mxu1 }
 0xd87   :  { %v10462_v44 = vpop.f32.mrb[13].mxu1  ;;  %10466 = vmatmul.mubr.msk.f32.vlgmr.msra.gmra.mrb[6].mxu1 %vm2922_vm3, %v4484_v43  ;;  %v9875_v43 = vld [vmem:[%s14452_s11] ss:$0 sm:$0xff] }
 0xd88   :  { %10553 = vmatpush3.bf16.msra.mxu1 %v10550_v3 }
 0xd89   :  { %10555 = vmatprep.subr.bf16.mxu1 %v10554_v5 }
 0xd8c   :  { %10557 = vmatpush3.bf16.msra.mxu1 %v10554_v5 }
 0xd8d   :  { %10559 = vmatprep.subr.bf16.mxu1 %v10558_v8 }
 0xd90   :  { %10561 = vmatpush3.bf16.msra.mxu1 %v10558_v8 }
 0xd91   :  { %10563 = vmatprep.subr.bf16.mxu1 %v10562_v11 }
 0xd94   :  { %10565 = vmatpush3.bf16.msra.mxu1 %v10562_v11 }
 0xd95   :  { %10567 = vmatprep.subr.bf16.mxu1 %v10566_v14 }
 0xd98   :  { %10569 = vmatpush3.bf16.msra.mxu1 %v10566_v14 }
 0xd99   :  { %10571 = vmatprep.subr.bf16.mxu1 %v10570_v17 }
 0xd9c   :  { %10573 = vmatpush3.bf16.msra.mxu1 %v10570_v17 }
 0xd9d   :  { %10575 = vmatprep.subr.bf16.mxu1 %v10574_v20 }
 0xda0   :  { %10577 = vmatpush3.bf16.msra.mxu1 %v10574_v20 }
 0xda1   :  { %10579 = vmatprep.subr.bf16.mxu1 %v10578_v27 }
 0xda4   :  { %10581 = vmatpush3.bf16.msra.mxu1 %v10578_v27 }
 0xe5a   :  { %v10467_v45 = vpop.f32.mrb[6].mxu1 }
 0xe5b   :  { %v4572_v46 = vadd.f32 %v10467_v45, %v13027_v22  ;;  %v4560_v47 = vpop.f32.mrb[7].mxu1 }
 0xe5c   :  { %v4571_v48 = vadd.f32 %v4560_v47, %v13025_v21 }
 0xe5d   :  { %v4578_v49 = vsel %vm2678_vm1, %v4572_v46, 0.0 }
 0xe5e   :  { %4579 = vadd.xlane.f32.xlu0 %v4578_v49  ;;  %v4575_v50 = vsel %vm2678_vm1, %v4571_v48, 0.0 }
 0xe5f   :  { %4576 = vadd.xlane.f32.xlu1 %v4575_v50  ;;  %v9878_v50 = vld [vmem:[%s14454_s13] ss:$0 sm:$0xff] }
 0xeeb   :  { %v4580_v51 = vpop.xlane.xlu0 %4579 }
 0xeec   :  { %v4583_v52 = vmul.f32 0.03125, %v4580_v51  ;;  %v4577_v53 = vpop.xlane.xlu1 %4576 }
 0xeed   :  { %v4582_v54 = vmul.f32 0.03125, %v4577_v53 }
 0xeee   :  { %v13213_v55 = vsub.f32 %v4572_v46, %v4583_v52 }
 0xeef   :  { %v13215_v56 = vsub.f32 %v4571_v48, %v4582_v54 }
 0xef0   :  { %v4587_v22 = vmul.f32 %v13213_v55, %v13213_v55 }
 0xef1   :  { %v4586_v21 = vmul.f32 %v13215_v56, %v13215_v56 }
 0xef2   :  { %v4591_v57 = vsel %vm2678_vm1, %v4587_v22, 0.0 }
 0xef3   :  { %4592 = vadd.xlane.f32.xlu1 %v4591_v57  ;;  %v4588_v58 = vsel %vm2678_vm1, %v4586_v21, 0.0 }
 0xef4   :  { %4589 = vadd.xlane.f32.xlu0 %v4588_v58 }
 0xf80   :  { %v4593_v23 = vpop.xlane.xlu1 %4592 }
 0xf81   :  { %v4595_v31 = vmul.f32 0.03125, %v4593_v23  ;;  %v4590_v32 = vpop.xlane.xlu0 %4589 }
 0xf82   :  { %v4594_v24 = vmul.f32 0.03125, %v4590_v32 }
 0xf83   :  { %v4597_v33 = vadd.f32 1e-05, %v4595_v31 }
 0xf84   :  { %v4596_v34 = vadd.f32 1e-05, %v4594_v24 }
 0xf85   :  { %11114 = vrsqrt.f32 %v4597_v33 }
 0xf86   :  { %11116 = vrsqrt.f32 %v4596_v34 }
 0xf8f   :  { %v11115_v35 = vpop.eup %11114 }
 0xf90   :  { %v11117_v37 = vpop.eup %11116  ;;  %v4601_v38 = vmul.f32 %v11115_v35, %v13213_v55 }
 0xf91   :  { %v4600_v39 = vmul.f32 %v11117_v37, %v13215_v56 }
 0xf92   :  { %v4609_v40 = vmul.f32 %v9873_v36, %v4601_v38 }
 0xf93   :  { %v4608_v26 = vmul.f32 %v9873_v36, %v4600_v39 }
 0xf94   :  { %v4617_v29 = vadd.f32 %v9874_v30, %v4609_v40 }
 0xf95   :  { %v4616_v41 = vadd.f32 %v9874_v30, %v4608_v26 }
 0xf97   :  { %10476 = vmatprep.mubr.msk.f32.mxu0 %vm2678_vm1, %v4616_v41 }
 0xf98   :  { %10477 = vmatmul.mubr.msk.f32.vlgmr.msra.gmra.mrb[28].mxu0 %vm2678_vm1, %v4617_v29 }
0x106b   :  { %v10478_v44 = vpop.f32.mrb[28].mxu0 }
0x106c   :  { %v4707_v45 = vadd.f32 %v10478_v44, %v9875_v43  ;;  %v4701_v46 = vpop.f32.mrb[29].mxu0 }
0x106d   :  { %v4702_v47 = vadd.f32 %v9875_v43, %v4701_v46 }
0x106e   :  { %v4711_v49 = vmax.f32 %v4707_v45, 0.0 }
0x106f   :  { %v4710_v48 = vmax.f32 %v4702_v47, 0.0 }
0x1071   :  { %10511 = vmatprep.mubr.f32.mxu1 %v4710_v48 }
0x1072   :  { %10512 = vmatmul.mubr.f32.vlgmr.msra.gmra.mrb[14].mxu1 %v4711_v49 }
0x1145   :  { %v10513_v51 = vpop.f32.mrb[14].mxu1 }
0x1146   :  { %v4807_v52 = vadd.f32 %v10513_v51, %v9878_v50  ;;  %v4801_v53 = vpop.f32.mrb[15].mxu1 }
0x1147   :  { %v4802_v54 = vadd.f32 %v9878_v50, %v4801_v53 }
0x1148   :  { %v4811_v55 = vadd.f32 %v4807_v52, %v4617_v29 }
0x1149   :  { %v4810_v56 = vadd.f32 %v4802_v54, %v4616_v41 }
0x114a   :  { %v4817_v22 = vsel %vm2678_vm1, %v4811_v55, 0.0 }
0x114b   :  { %4818 = vadd.xlane.f32.xlu1 %v4817_v22  ;;  %v4814_v21 = vsel %vm2678_vm1, %v4810_v56, 0.0 }
0x114c   :  { %4815 = vadd.xlane.f32.xlu0 %v4814_v21 }
0x11d8   :  { %v4819_v57 = vpop.xlane.xlu1 %4818 }
0x11d9   :  { %v4821_v58 = vmul.f32 0.03125, %v4819_v57  ;;  %v4816_v60 = vpop.xlane.xlu0 %4815 }
0x11da   :  { %v4820_v61 = vmul.f32 0.03125, %v4816_v60 }
0x11db   :  { %v4823_v25 = vsub.f32 %v4811_v55, %v4821_v58 }
0x11dc   :  { %v4822_v63 = vsub.f32 %v4810_v56, %v4820_v61 }
0x11dd   :  { %v4825_v0 = vmul.f32 %v4823_v25, %v4823_v25 }
0x11de   :  { %v4824_v1 = vmul.f32 %v4822_v63, %v4822_v63 }
0x11df   :  { %v4829_v59 = vsel %vm2678_vm1, %v4825_v0, 0.0 }
0x11e0   :  { %4830 = vadd.xlane.f32.xlu1 %v4829_v59  ;;  %v4826_v2 = vsel %vm2678_vm1, %v4824_v1, 0.0 }
0x11e1   :  { %4827 = vadd.xlane.f32.xlu0 %v4826_v2 }
0x126d   :  { %v4831_v62 = vpop.xlane.xlu1 %4830 }
0x126e   :  { %v4833_v3 = vmul.f32 0.03125, %v4831_v62  ;;  %v4828_v4 = vpop.xlane.xlu0 %4827 }
0x126f   :  { %v4832_v5 = vmul.f32 0.03125, %v4828_v4 }
0x1270   :  { %v4835_v6 = vadd.f32 1e-05, %v4833_v3 }
0x1271   :  { %v4834_v7 = vadd.f32 1e-05, %v4832_v5 }
0x1272   :  { %11118 = vrsqrt.f32 %v4835_v6 }
0x1273   :  { %11120 = vrsqrt.f32 %v4834_v7 }
0x127c   :  { %v11119_v8 = vpop.eup %11118 }
0x127d   :  { %v11121_v10 = vpop.eup %11120  ;;  %v4839_v11 = vmul.f32 %v11119_v8, %v4823_v25 }
0x127e   :  { %v4838_v13 = vmul.f32 %v11121_v10, %v4822_v63 }
0x127f   :  { %v4847_v14 = vmul.f32 %v9879_v9, %v4839_v11 }
0x1280   :  { %v4846_v15 = vmul.f32 %v9879_v9, %v4838_v13 }
0x1281   :  { %v4855_v16 = vadd.f32 %v9880_v12, %v4847_v14 }
0x1282   :  { %v4854_v17 = vadd.f32 %v9880_v12, %v4846_v15 }
0x1283   :  { %11260 = dma.done.wait [#allocation3], 4096 }
0x1284   :  { %11261 = vsyncadd [#allocation3], 4294963200  ;;  %v13303_v18 = vld [vmem:[#allocation2] sm:$0xff]  ;;  %v13305_v19 = vld [vmem:[#allocation2 + $0x8] sm:$0xff] }
0x1285   :  { %v13307_v20 = vld [vmem:[#allocation2 + $0x10] sm:$0xff]  ;;  %v13309_v23 = vld [vmem:[#allocation2 + $0x18] sm:$0xff]  ;;  %v13311_v31 = vld [vmem:[#allocation2 + $0x20] sm:$0xff] }
0x1286   :  { %v13313_v32 = vld [vmem:[#allocation2 + $0x28] sm:$0xff]  ;;  %v13315_v24 = vld [vmem:[#allocation2 + $0x30] sm:$0xff]  ;;  %v13317_v33 = vld [vmem:[#allocation2 + $0x38] sm:$0xff] }
0x1287   :  { %v13319_v34 = vld [vmem:[#allocation2 + $0x40] sm:$0xff]  ;;  %v13321_v35 = vld [vmem:[#allocation2 + $0x48] sm:$0xff]  ;;  %v13323_v36 = vld [vmem:[#allocation2 + $0x50] sm:$0xff] }
0x1288   :  { %v13325_v37 = vld [vmem:[#allocation2 + $0x58] sm:$0xff]  ;;  %v13327_v38 = vld [vmem:[#allocation2 + $0x60] sm:$0xff]  ;;  %v13329_v39 = vld [vmem:[#allocation2 + $0x68] sm:$0xff] }
0x1289   :  { %v13331_v30 = vld [vmem:[#allocation2 + $0x70] sm:$0xff]  ;;  %v13333_v40 = vld [vmem:[#allocation2 + $0x78] sm:$0xff]  ;;  %v13335_v26 = vld [vmem:[#allocation2 + $0x80] sm:$0xff] }
0x128a   :  { %v13337_v41 = vld [vmem:[#allocation2 + $0x88] sm:$0xff]  ;;  %v13339_v29 = vld [vmem:[#allocation2 + $0x90] sm:$0xff]  ;;  %v13341_v42 = vld [vmem:[#allocation2 + $0x98] sm:$0xff] }
0x128b   :  { %v13343_v28 = vld [vmem:[#allocation2 + $0xa0] sm:$0xff]  ;;  %v13345_v27 = vld [vmem:[#allocation2 + $0xa8] sm:$0xff]  ;;  %v13347_v43 = vld [vmem:[#allocation2 + $0xb0] sm:$0xff] }
0x128c   :  { %v13349_v44 = vld [vmem:[#allocation2 + $0xb8] sm:$0xff]  ;;  %v13351_v45 = vld [vmem:[#allocation2 + $0xc0] sm:$0xff]  ;;  %v13353_v46 = vld [vmem:[#allocation2 + $0xc8] sm:$0xff] }
0x128d   :  { %v13355_v47 = vld [vmem:[#allocation2 + $0xd0] sm:$0xff]  ;;  %v13357_v48 = vld [vmem:[#allocation2 + $0xd8] sm:$0xff]  ;;  %v13359_v49 = vld [vmem:[#allocation2 + $0xe0] sm:$0xff] }
0x128e   :  { %v13361_v50 = vld [vmem:[#allocation2 + $0xe8] sm:$0xff]  ;;  %v13363_v51 = vld [vmem:[#allocation2 + $0xf0] sm:$0xff]  ;;  %v13365_v52 = vld [vmem:[#allocation2 + $0xf8] sm:$0xff] }
0x128f   :  { %11262 = dma.done.wait [#allocation3 + $0x1], 4096 }
0x1290   :  { %11263 = vsyncadd [#allocation3 + $0x1], 4294963200  ;;  %v9956_v53 = vpack.c.bf16 %v4854_v17, %v4854_v17  ;;  %v11290_v54 = vmov 0   ;;  %v9957_v55 = vpack.c.bf16 %v4855_v16, %v4855_v16  ;;  %vm4935_vm4 = vcmask 1041409   ;;  %v4899_v57 = vld [vmem:[#allocation2 + $0x108] sm:$0xff]  ;;  %v4898_v58 = vld [vmem:[#allocation2 + $0x100] sm:$0xff] }
0x1291   :  { %4973 = vmatprep.mubr.bf16.mxu0 %v11290_v54  ;;  %5137 = vmatprep.mubr.bf16.mxu1 %v11290_v54  ;;  %v4915_v60 = vld [vmem:[#allocation2 + $0x188] sm:$0xff]  ;;  %v4914_v25 = vld [vmem:[#allocation2 + $0x180] sm:$0xff]  ;;  %v4901_v63 = vld [vmem:[#allocation2 + $0x118] sm:$0xff] }
0x1292   :  { %v13369_v56 = vunpack.c.l.b16 %v9956_v53  ;;  %v13371_v22 = vunpack.c.l.b16 %v9957_v55  ;;  %4941 = vmatprep.subr.bf16.mxu0 %v4899_v57  ;;  %v4900_v1 = vld [vmem:[#allocation2 + $0x110] sm:$0xff]  ;;  %v4917_v59 = vld [vmem:[#allocation2 + $0x198] sm:$0xff]  ;;  %v4907_v2 = vld [vmem:[#allocation2 + $0x148] sm:$0xff] }
0x1293   :  { %4942 = vmatpush1.bf16.msra.mxu0 %v4898_v58  ;;  %v4906_v62 = vld [vmem:[#allocation2 + $0x140] sm:$0xff]  ;;  %5105 = vmatprep.subr.bf16.mxu1 %v4907_v2  ;;  %v4923_v3 = vld [vmem:[#allocation2 + $0x1c8] sm:$0xff]  ;;  %v4916_v4 = vld [vmem:[#allocation2 + $0x190] sm:$0xff] }
0x1294   :  { %v4934_v21 = vrot.slane %v13369_v56, 1  ;;  %4943 = vmatprep.subr.bf16.mxu0 %v4915_v60  ;;  %5106 = vmatpush1.bf16.msra.mxu1 %v4906_v62  ;;  %v4903_v5 = vld [vmem:[#allocation2 + $0x128] sm:$0xff]  ;;  %v4922_v6 = vld [vmem:[#allocation2 + $0x1c0] sm:$0xff]  ;;  %v4905_v13 = vld [vmem:[#allocation2 + $0x138] sm:$0xff]  ;;  %v5269_v17 = vrot.slane %v13371_v22, 7 }
0x1295   :  { %5107 = vmatprep.subr.bf16.mxu1 %v4923_v3  ;;  %v4911_v7 = vld [vmem:[#allocation2 + $0x168] sm:$0xff]  ;;  %v4902_v8 = vld [vmem:[#allocation2 + $0x120] sm:$0xff]  ;;  %v4904_v15 = vld [vmem:[#allocation2 + $0x130] sm:$0xff] }
0x1296   :  { %v4936_v61 = vsel %vm4935_vm4, %v13371_v22, %v4934_v21  ;;  %v4919_v9 = vld [vmem:[#allocation2 + $0x1a8] sm:$0xff]  ;;  %v4910_v10 = vld [vmem:[#allocation2 + $0x160] sm:$0xff]  ;;  %v4921_v16 = vld [vmem:[#allocation2 + $0x1b8] sm:$0xff] }
0x1297   :  { %v13376_v0 = vpack.c.b16 %v4936_v61, %v4936_v61  ;;  %4944 = vmatpush1.bf16.msra.mxu0 %v4914_v25  ;;  %v4927_v11 = vld [vmem:[#allocation2 + $0x1e8] sm:$0xff]  ;;  %v4918_v12 = vld [vmem:[#allocation2 + $0x1a0] sm:$0xff]  ;;  %v4920_v53 = vld [vmem:[#allocation2 + $0x1b0] sm:$0xff] }
0x1298   :  { %4982 = vmatprep.subr.bf16.mxu0 %v4901_v63  ;;  %5108 = vmatpush1.bf16.msra.mxu1 %v4922_v6  ;;  %v4926_v14 = vld [vmem:[#allocation2 + $0x1e0] sm:$0xff]  ;;  %v4909_v55 = vld [vmem:[#allocation2 + $0x158] sm:$0xff]  ;;  %v4908_v21 = vld [vmem:[#allocation2 + $0x150] sm:$0xff] }
0x1299   :  { %5187 = vmatprep.subr.bf16.mxu1 %v4911_v7  ;;  %v4925_v57 = vld [vmem:[#allocation2 + $0x1d8] sm:$0xff] }
0x129a   :  { %9883 = vmatmul.mubr.msk.bf16.vlgmr.msra.gmra.mrb[32].mxu0 %vm2678_vm1, %v13376_v0  ;;  %v4929_v60 = vld [vmem:[#allocation2 + $0x1f8] sm:$0xff] }
0x129b   :  { %4983 = vmatpush1.bf16.msra.mxu0 %v4900_v1  ;;  %5014 = vmatprep.mubr.bf16.mxu0 %v11290_v54 }
0x129c   :  { %4984 = vmatprep.subr.bf16.mxu0 %v4917_v59  ;;  %9887 = vmatmul.mubr.msk.bf16.vlgmr.msra.gmra.mrb[16].mxu1 %vm2678_vm1, %v13376_v0 }
0x129d   :  { %5188 = vmatpush1.bf16.msra.mxu1 %v4910_v10  ;;  %5219 = vmatprep.mubr.bf16.mxu1 %v11290_v54 }
0x129e   :  { %5189 = vmatprep.subr.bf16.mxu1 %v4927_v11 }
0x129f   :  { %4985 = vmatpush1.bf16.msra.mxu0 %v4916_v4 }
0x12a0   :  { %5023 = vmatprep.subr.bf16.mxu0 %v4903_v5 }
0x12a1   :  { %5190 = vmatpush1.bf16.msra.mxu1 %v4926_v14 }
0x12a2   :  { %9884 = vmatmul.mubr.msk.bf16.vlgmr.msra.gmra.mrb[36].mxu0 %vm2678_vm1, %v13376_v0  ;;  %5439 = vmatprep.subr.bf16.mxu1 %v13321_v35  ;;  %v5270_v35 = vsel %vm4935_vm4, %v5269_v17, %v13369_v56 }
0x12a3   :  { %5024 = vmatpush1.bf16.msra.mxu0 %v4902_v8  ;;  %5055 = vmatprep.mubr.bf16.mxu0 %v11290_v54  ;;  %v5271_v58 = vpack.c.b16 %v5270_v35, %v5270_v35 }
0x12a4   :  { %5025 = vmatprep.subr.bf16.mxu0 %v4919_v9  ;;  %9889 = vmatmul.mubr.msk.bf16.vlgmr.msra.gmra.mrb[20].mxu1 %vm2678_vm1, %v13376_v0 }
0x12a5   :  { %5440 = vmatpush1.bf16.msra.mxu1 %v13319_v34  ;;  %5471 = vmatprep.mubr.bf16.mxu1 %v11290_v54  ;;  %v4924_v34 = vld [vmem:[#allocation2 + $0x1d0] sm:$0xff] }
0x12a6   :  { %5441 = vmatprep.subr.bf16.mxu1 %v13353_v46  ;;  %v4913_v46 = vld [vmem:[#allocation2 + $0x178] sm:$0xff] }
0x12a7   :  { %5026 = vmatpush1.bf16.msra.mxu0 %v4918_v12 }
0x12a8   :  { %5064 = vmatprep.subr.bf16.mxu0 %v4905_v13 }
0x12a9   :  { %5442 = vmatpush1.bf16.msra.mxu1 %v13351_v45  ;;  %v4912_v45 = vld [vmem:[#allocation2 + $0x170] sm:$0xff] }
0x12aa   :  { %9885 = vmatmul.mubr.msk.bf16.vlgmr.msra.gmra.mrb[40].mxu0 %vm2678_vm1, %v13376_v0  ;;  %5521 = vmatprep.subr.bf16.mxu1 %v13329_v39  ;;  %v4928_v39 = vld [vmem:[#allocation2 + $0x1f0] sm:$0xff] }
0x12ab   :  { %5065 = vmatpush1.bf16.msra.mxu0 %v4904_v15  ;;  %5096 = vmatprep.mubr.bf16.mxu0 %v11290_v54 }
0x12ac   :  { %5066 = vmatprep.subr.bf16.mxu0 %v4921_v16  ;;  %9895 = vmatmul.mubr.msk.bf16.vlgmr.msra.gmra.mrb[16].mxu1 %vm2678_vm1, %v5271_v58 }
0x12ad   :  { %5522 = vmatpush1.bf16.msra.mxu1 %v13327_v38  ;;  %5553 = vmatprep.mubr.bf16.mxu1 %v11290_v54 }
0x12ae   :  { %5523 = vmatprep.subr.bf16.mxu1 %v13361_v50 }
0x12af   :  { %5067 = vmatpush1.bf16.msra.mxu0 %v4920_v53 }
0x12b0   :  { %5146 = vmatprep.subr.bf16.mxu0 %v4909_v55 }
0x12b1   :  { %5524 = vmatpush1.bf16.msra.mxu1 %v13359_v49 }
0x12b2   :  { %9886 = vmatmul.mubr.msk.bf16.vlgmr.msra.gmra.mrb[44].mxu0 %vm2678_vm1, %v13376_v0 }
0x12b3   :  { %5147 = vmatpush1.bf16.msra.mxu0 %v4908_v21  ;;  %5178 = vmatprep.mubr.bf16.mxu0 %v11290_v54 }
0x12b4   :  { %5148 = vmatprep.subr.bf16.mxu0 %v4925_v57  ;;  %9897 = vmatmul.mubr.msk.bf16.vlgmr.msra.gmra.mrb[20].mxu1 %vm2678_vm1, %v5271_v58 }
0x12b7   :  { %5149 = vmatpush1.bf16.msra.mxu0 %v4924_v34 }
0x12b8   :  { %5228 = vmatprep.subr.bf16.mxu0 %v4913_v46 }
0x12ba   :  { %9888 = vmatmul.mubr.msk.bf16.vlgmr.msra.gmra.mrb[48].mxu0 %vm2678_vm1, %v13376_v0 }
0x12bb   :  { %5229 = vmatpush1.bf16.msra.mxu0 %v4912_v45  ;;  %5260 = vmatprep.mubr.bf16.mxu0 %v11290_v54 }
0x12bc   :  { %5230 = vmatprep.subr.bf16.mxu0 %v4929_v60 }
0x12bf   :  { %5231 = vmatpush1.bf16.msra.mxu0 %v4928_v39 }
0x12c0   :  { %5275 = vmatprep.subr.bf16.mxu0 %v13305_v19 }
0x12c2   :  { %9890 = vmatmul.mubr.msk.bf16.vlgmr.msra.gmra.mrb[52].mxu0 %vm2678_vm1, %v13376_v0 }
0x12c3   :  { %5276 = vmatpush1.bf16.msra.mxu0 %v13303_v18  ;;  %5307 = vmatprep.mubr.bf16.mxu0 %v11290_v54 }
0x12c4   :  { %5277 = vmatprep.subr.bf16.mxu0 %v13337_v41 }
0x12c7   :  { %5278 = vmatpush1.bf16.msra.mxu0 %v13335_v26 }
0x12c8   :  { %5316 = vmatprep.subr.bf16.mxu0 %v13309_v23 }
0x12ca   :  { %9891 = vmatmul.mubr.msk.bf16.vlgmr.msra.gmra.mrb[32].mxu0 %vm2678_vm1, %v5271_v58 }
0x12cb   :  { %5317 = vmatpush1.bf16.msra.mxu0 %v13307_v20  ;;  %5348 = vmatprep.mubr.bf16.mxu0 %v11290_v54 }
0x12cc   :  { %5318 = vmatprep.subr.bf16.mxu0 %v13341_v42 }
0x12cf   :  { %5319 = vmatpush1.bf16.msra.mxu0 %v13339_v29 }
0x12d0   :  { %5357 = vmatprep.subr.bf16.mxu0 %v13313_v32 }
0x12d2   :  { %9892 = vmatmul.mubr.msk.bf16.vlgmr.msra.gmra.mrb[36].mxu0 %vm2678_vm1, %v5271_v58 }
0x12d3   :  { %5358 = vmatpush1.bf16.msra.mxu0 %v13311_v31  ;;  %5389 = vmatprep.mubr.bf16.mxu0 %v11290_v54 }
0x12d4   :  { %5359 = vmatprep.subr.bf16.mxu0 %v13345_v27 }
0x12d7   :  { %5360 = vmatpush1.bf16.msra.mxu0 %v13343_v28 }
0x12d8   :  { %5398 = vmatprep.subr.bf16.mxu0 %v13317_v33 }
0x12da   :  { %9893 = vmatmul.mubr.msk.bf16.vlgmr.msra.gmra.mrb[40].mxu0 %vm2678_vm1, %v5271_v58 }
0x12db   :  { %5399 = vmatpush1.bf16.msra.mxu0 %v13315_v24  ;;  %5430 = vmatprep.mubr.bf16.mxu0 %v11290_v54 }
0x12dc   :  { %5400 = vmatprep.subr.bf16.mxu0 %v13349_v44 }
0x12df   :  { %5401 = vmatpush1.bf16.msra.mxu0 %v13347_v43 }
0x12e0   :  { %5480 = vmatprep.subr.bf16.mxu0 %v13325_v37 }
0x12e2   :  { %9894 = vmatmul.mubr.msk.bf16.vlgmr.msra.gmra.mrb[44].mxu0 %vm2678_vm1, %v5271_v58 }
0x12e3   :  { %5481 = vmatpush1.bf16.msra.mxu0 %v13323_v36  ;;  %5512 = vmatprep.mubr.bf16.mxu0 %v11290_v54 }
0x12e4   :  { %5482 = vmatprep.subr.bf16.mxu0 %v13357_v48 }
0x12e7   :  { %5483 = vmatpush1.bf16.msra.mxu0 %v13355_v47 }
0x12e8   :  { %5562 = vmatprep.subr.bf16.mxu0 %v13333_v40 }
0x12ea   :  { %9896 = vmatmul.mubr.msk.bf16.vlgmr.msra.gmra.mrb[48].mxu0 %vm2678_vm1, %v5271_v58 }
0x12eb   :  { %5563 = vmatpush1.bf16.msra.mxu0 %v13331_v30  ;;  %5594 = vmatprep.mubr.bf16.mxu0 %v11290_v54 }
0x12ec   :  { %5564 = vmatprep.subr.bf16.mxu0 %v13365_v52 }
0x12ef   :  { %5565 = vmatpush1.bf16.msra.mxu0 %v13363_v51 }
0x12f2   :  { %9898 = vmatmul.mubr.msk.bf16.vlgmr.msra.gmra.mrb[52].mxu0 %vm2678_vm1, %v5271_v58 }
0x12f3   :  { %11264 = dma.done.wait [#allocation3 + $0x2], 4096 }
0x12f4   :  { %11265 = vsyncadd [#allocation3 + $0x2], 4294963200  ;;  %5676 = vmatprep.mubr.bf16.mxu0 %v11290_v54  ;;  %5840 = vmatprep.mubr.bf16.mxu1 %v11290_v54  ;;  %v5637_v18 = vrot.slane %v13369_v56, 2  ;;  %v5638_v19 = vrot.slane %v13371_v22, 1  ;;  %v5606_v20 = vld [vmem:[#allocation2 + $0x208] sm:$0xff]  ;;  %v5605_v23 = vld [vmem:[#allocation2 + $0x200] sm:$0xff] }
0x12f5   :  { %v5622_v31 = vld [vmem:[#allocation2 + $0x288] sm:$0xff]  ;;  %5644 = vmatprep.subr.bf16.mxu0 %v5606_v20  ;;  %v5621_v24 = vld [vmem:[#allocation2 + $0x280] sm:$0xff]  ;;  %v5608_v33 = vld [vmem:[#allocation2 + $0x218] sm:$0xff] }
0x12f6   :  { %5645 = vmatpush1.bf16.msra.mxu0 %v5605_v23  ;;  %v5639_v32 = vsel %vm4935_vm4, %v5638_v19, %v5637_v18  ;;  %v5614_v37 = vld [vmem:[#allocation2 + $0x248] sm:$0xff]  ;;  %v5613_v38 = vld [vmem:[#allocation2 + $0x240] sm:$0xff]  ;;  %v5607_v40 = vld [vmem:[#allocation2 + $0x210] sm:$0xff] }
0x12f7   :  { %5646 = vmatprep.subr.bf16.mxu0 %v5622_v31  ;;  %v13456_v36 = vpack.c.b16 %v5639_v32, %v5639_v32  ;;  %5808 = vmatprep.subr.bf16.mxu1 %v5614_v37  ;;  %v5630_v30 = vld [vmem:[#allocation2 + $0x2c8] sm:$0xff]  ;;  %v5624_v26 = vld [vmem:[#allocation2 + $0x298] sm:$0xff]  ;;  %v5629_v41 = vld [vmem:[#allocation2 + $0x2c0] sm:$0xff] }
0x12f8   :  { %5809 = vmatpush1.bf16.msra.mxu1 %v5613_v38  ;;  %v5618_v29 = vld [vmem:[#allocation2 + $0x268] sm:$0xff]  ;;  %v5623_v42 = vld [vmem:[#allocation2 + $0x290] sm:$0xff]  ;;  %v5617_v27 = vld [vmem:[#allocation2 + $0x260] sm:$0xff] }
0x12f9   :  { %5810 = vmatprep.subr.bf16.mxu1 %v5630_v30  ;;  %v5610_v28 = vld [vmem:[#allocation2 + $0x228] sm:$0xff]  ;;  %v5609_v44 = vld [vmem:[#allocation2 + $0x220] sm:$0xff]  ;;  %v5612_v50 = vld [vmem:[#allocation2 + $0x238] sm:$0xff] }
0x12fa   :  { %5647 = vmatpush1.bf16.msra.mxu0 %v5621_v24  ;;  %v5634_v43 = vld [vmem:[#allocation2 + $0x2e8] sm:$0xff]  ;;  %v5633_v48 = vld [vmem:[#allocation2 + $0x2e0] sm:$0xff]  ;;  %v5611_v51 = vld [vmem:[#allocation2 + $0x230] sm:$0xff] }
0x12fb   :  { %5685 = vmatprep.subr.bf16.mxu0 %v5608_v33  ;;  %v5626_v47 = vld [vmem:[#allocation2 + $0x2a8] sm:$0xff]  ;;  %v5625_v49 = vld [vmem:[#allocation2 + $0x2a0] sm:$0xff]  ;;  %v5628_v52 = vld [vmem:[#allocation2 + $0x2b8] sm:$0xff] }
0x12fc   :  { %5811 = vmatpush1.bf16.msra.mxu1 %v5629_v41  ;;  %v5627_v61 = vld [vmem:[#allocation2 + $0x2b0] sm:$0xff]  ;;  %v5616_v25 = vld [vmem:[#allocation2 + $0x258] sm:$0xff] }
0x12fd   :  { %9899 = vmatmul.mubr.msk.bf16.vlgmr.msra.gmra.mrb[32].mxu0 %vm2678_vm1, %v13456_v36  ;;  %5890 = vmatprep.subr.bf16.mxu1 %v5618_v29  ;;  %v5615_v63 = vld [vmem:[#allocation2 + $0x250] sm:$0xff]  ;;  %v5632_v0 = vld [vmem:[#allocation2 + $0x2d8] sm:$0xff] }
0x12fe   :  { %5686 = vmatpush1.bf16.msra.mxu0 %v5607_v40  ;;  %5717 = vmatprep.mubr.bf16.mxu0 %v11290_v54  ;;  %v5631_v1 = vld [vmem:[#allocation2 + $0x2d0] sm:$0xff]  ;;  %v5620_v59 = vld [vmem:[#allocation2 + $0x278] sm:$0xff] }
0x12ff   :  { %5687 = vmatprep.subr.bf16.mxu0 %v5624_v26  ;;  %9903 = vmatmul.mubr.msk.bf16.vlgmr.msra.gmra.mrb[16].mxu1 %vm2678_vm1, %v13456_v36  ;;  %v5619_v2 = vld [vmem:[#allocation2 + $0x270] sm:$0xff]  ;;  %v5636_v62 = vld [vmem:[#allocation2 + $0x2f8] sm:$0xff] }
0x1300   :  { %5891 = vmatpush1.bf16.msra.mxu1 %v5617_v27  ;;  %5922 = vmatprep.mubr.bf16.mxu1 %v11290_v54  ;;  %v5635_v3 = vld [vmem:[#allocation2 + $0x2f0] sm:$0xff] }
0x1301   :  { %5892 = vmatprep.subr.bf16.mxu1 %v5634_v43 }
0x1302   :  { %5688 = vmatpush1.bf16.msra.mxu0 %v5623_v42 }
0x1303   :  { %5726 = vmatprep.subr.bf16.mxu0 %v5610_v28 }
0x1304   :  { %5893 = vmatpush1.bf16.msra.mxu1 %v5633_v48 }
0x1305   :  { %9900 = vmatmul.mubr.msk.bf16.vlgmr.msra.gmra.mrb[36].mxu0 %vm2678_vm1, %v13456_v36 }
0x1306   :  { %5727 = vmatpush1.bf16.msra.mxu0 %v5609_v44  ;;  %5758 = vmatprep.mubr.bf16.mxu0 %v11290_v54 }
0x1307   :  { %5728 = vmatprep.subr.bf16.mxu0 %v5626_v47  ;;  %9905 = vmatmul.mubr.msk.bf16.vlgmr.msra.gmra.mrb[20].mxu1 %vm2678_vm1, %v13456_v36 }
0x130a   :  { %5729 = vmatpush1.bf16.msra.mxu0 %v5625_v49 }
0x130b   :  { %5767 = vmatprep.subr.bf16.mxu0 %v5612_v50 }
0x130d   :  { %9901 = vmatmul.mubr.msk.bf16.vlgmr.msra.gmra.mrb[40].mxu0 %vm2678_vm1, %v13456_v36 }
0x130e   :  { %5768 = vmatpush1.bf16.msra.mxu0 %v5611_v51  ;;  %5799 = vmatprep.mubr.bf16.mxu0 %v11290_v54 }
0x130f   :  { %5769 = vmatprep.subr.bf16.mxu0 %v5628_v52 }
0x1312   :  { %5770 = vmatpush1.bf16.msra.mxu0 %v5627_v61 }
0x1313   :  { %5849 = vmatprep.subr.bf16.mxu0 %v5616_v25 }
0x1315   :  { %9902 = vmatmul.mubr.msk.bf16.vlgmr.msra.gmra.mrb[44].mxu0 %vm2678_vm1, %v13456_v36 }
0x1316   :  { %5850 = vmatpush1.bf16.msra.mxu0 %v5615_v63  ;;  %5881 = vmatprep.mubr.bf16.mxu0 %v11290_v54 }
0x1317   :  { %5851 = vmatprep.subr.bf16.mxu0 %v5632_v0 }
0x131a   :  { %5852 = vmatpush1.bf16.msra.mxu0 %v5631_v1 }
0x131b   :  { %5931 = vmatprep.subr.bf16.mxu0 %v5620_v59 }
0x131d   :  { %9904 = vmatmul.mubr.msk.bf16.vlgmr.msra.gmra.mrb[48].mxu0 %vm2678_vm1, %v13456_v36 }
0x131e   :  { %5932 = vmatpush1.bf16.msra.mxu0 %v5619_v2  ;;  %5963 = vmatprep.mubr.bf16.mxu0 %v11290_v54 }
0x131f   :  { %5933 = vmatprep.subr.bf16.mxu0 %v5636_v62 }
0x1322   :  { %5934 = vmatpush1.bf16.msra.mxu0 %v5635_v3 }
0x1325   :  { %9906 = vmatmul.mubr.msk.bf16.vlgmr.msra.gmra.mrb[52].mxu0 %vm2678_vm1, %v13456_v36 }
0x1326   :  { %11266 = dma.done.wait [#allocation3 + $0x3], 4096 }
0x1327   :  { %11267 = vsyncadd [#allocation3 + $0x3], 4294963200  ;;  %6061 = vmatprep.mubr.bf16.mxu0 %v11290_v54  ;;  %6225 = vmatprep.mubr.bf16.mxu1 %v11290_v54  ;;  %v6022_v4 = vrot.slane %v13369_v56, 3  ;;  %v6023_v5 = vrot.slane %v13371_v22, 2  ;;  %v5991_v6 = vld [vmem:[#allocation2 + $0x308] sm:$0xff]  ;;  %v5990_v7 = vld [vmem:[#allocation2 + $0x300] sm:$0xff] }
0x1328   :  { %v6007_v8 = vld [vmem:[#allocation2 + $0x388] sm:$0xff]  ;;  %6029 = vmatprep.subr.bf16.mxu0 %v5991_v6  ;;  %v6006_v10 = vld [vmem:[#allocation2 + $0x380] sm:$0xff]  ;;  %v5993_v11 = vld [vmem:[#allocation2 + $0x318] sm:$0xff] }
0x1329   :  { %6030 = vmatpush1.bf16.msra.mxu0 %v5990_v7  ;;  %v6024_v9 = vsel %vm4935_vm4, %v6023_v5, %v6022_v4  ;;  %v5999_v13 = vld [vmem:[#allocation2 + $0x348] sm:$0xff]  ;;  %v5998_v14 = vld [vmem:[#allocation2 + $0x340] sm:$0xff]  ;;  %v5992_v16 = vld [vmem:[#allocation2 + $0x310] sm:$0xff] }
0x132a   :  { %6031 = vmatprep.subr.bf16.mxu0 %v6007_v8  ;;  %v13485_v12 = vpack.c.b16 %v6024_v9, %v6024_v9  ;;  %6193 = vmatprep.subr.bf16.mxu1 %v5999_v13  ;;  %v6015_v15 = vld [vmem:[#allocation2 + $0x3c8] sm:$0xff]  ;;  %v6009_v17 = vld [vmem:[#allocation2 + $0x398] sm:$0xff]  ;;  %v6014_v53 = vld [vmem:[#allocation2 + $0x3c0] sm:$0xff] }
0x132b   :  { %6194 = vmatpush1.bf16.msra.mxu1 %v5998_v14  ;;  %v6003_v55 = vld [vmem:[#allocation2 + $0x368] sm:$0xff]  ;;  %v6008_v35 = vld [vmem:[#allocation2 + $0x390] sm:$0xff]  ;;  %v6002_v57 = vld [vmem:[#allocation2 + $0x360] sm:$0xff] }
0x132c   :  { %6195 = vmatprep.subr.bf16.mxu1 %v6015_v15  ;;  %v5995_v21 = vld [vmem:[#allocation2 + $0x328] sm:$0xff]  ;;  %v5994_v34 = vld [vmem:[#allocation2 + $0x320] sm:$0xff]  ;;  %v5997_v39 = vld [vmem:[#allocation2 + $0x338] sm:$0xff] }
0x132d   :  { %6032 = vmatpush1.bf16.msra.mxu0 %v6006_v10  ;;  %v6019_v58 = vld [vmem:[#allocation2 + $0x3e8] sm:$0xff]  ;;  %v6018_v45 = vld [vmem:[#allocation2 + $0x3e0] sm:$0xff]  ;;  %v5996_v18 = vld [vmem:[#allocation2 + $0x330] sm:$0xff] }
0x132e   :  { %6070 = vmatprep.subr.bf16.mxu0 %v5993_v11  ;;  %v6011_v46 = vld [vmem:[#allocation2 + $0x3a8] sm:$0xff]  ;;  %v6010_v60 = vld [vmem:[#allocation2 + $0x3a0] sm:$0xff]  ;;  %v6013_v19 = vld [vmem:[#allocation2 + $0x3b8] sm:$0xff] }
0x132f   :  { %6196 = vmatpush1.bf16.msra.mxu1 %v6014_v53  ;;  %v6012_v20 = vld [vmem:[#allocation2 + $0x3b0] sm:$0xff]  ;;  %v6001_v23 = vld [vmem:[#allocation2 + $0x358] sm:$0xff] }
0x1330   :  { %9907 = vmatmul.mubr.msk.bf16.vlgmr.msra.gmra.mrb[32].mxu0 %vm2678_vm1, %v13485_v12  ;;  %6275 = vmatprep.subr.bf16.mxu1 %v6003_v55  ;;  %v6000_v31 = vld [vmem:[#allocation2 + $0x350] sm:$0xff]  ;;  %v6017_v32 = vld [vmem:[#allocation2 + $0x3d8] sm:$0xff] }
0x1331   :  { %6071 = vmatpush1.bf16.msra.mxu0 %v5992_v16  ;;  %6102 = vmatprep.mubr.bf16.mxu0 %v11290_v54  ;;  %v6016_v24 = vld [vmem:[#allocation2 + $0x3d0] sm:$0xff]  ;;  %v6005_v33 = vld [vmem:[#allocation2 + $0x378] sm:$0xff] }
0x1332   :  { %6072 = vmatprep.subr.bf16.mxu0 %v6009_v17  ;;  %9911 = vmatmul.mubr.msk.bf16.vlgmr.msra.gmra.mrb[16].mxu1 %vm2678_vm1, %v13485_v12  ;;  %v6004_v36 = vld [vmem:[#allocation2 + $0x370] sm:$0xff]  ;;  %v6021_v37 = vld [vmem:[#allocation2 + $0x3f8] sm:$0xff] }
0x1333   :  { %6276 = vmatpush1.bf16.msra.mxu1 %v6002_v57  ;;  %6307 = vmatprep.mubr.bf16.mxu1 %v11290_v54  ;;  %v6020_v38 = vld [vmem:[#allocation2 + $0x3f0] sm:$0xff] }
0x1334   :  { %6277 = vmatprep.subr.bf16.mxu1 %v6019_v58 }
0x1335   :  { %6073 = vmatpush1.bf16.msra.mxu0 %v6008_v35 }
0x1336   :  { %6111 = vmatprep.subr.bf16.mxu0 %v5995_v21 }
0x1337   :  { %6278 = vmatpush1.bf16.msra.mxu1 %v6018_v45 }
0x1338   :  { %9908 = vmatmul.mubr.msk.bf16.vlgmr.msra.gmra.mrb[36].mxu0 %vm2678_vm1, %v13485_v12 }
0x1339   :  { %6112 = vmatpush1.bf16.msra.mxu0 %v5994_v34  ;;  %6143 = vmatprep.mubr.bf16.mxu0 %v11290_v54 }
0x133a   :  { %6113 = vmatprep.subr.bf16.mxu0 %v6011_v46  ;;  %9913 = vmatmul.mubr.msk.bf16.vlgmr.msra.gmra.mrb[20].mxu1 %vm2678_vm1, %v13485_v12 }
0x133d   :  { %6114 = vmatpush1.bf16.msra.mxu0 %v6010_v60 }
0x133e   :  { %6152 = vmatprep.subr.bf16.mxu0 %v5997_v39 }
0x1340   :  { %9909 = vmatmul.mubr.msk.bf16.vlgmr.msra.gmra.mrb[40].mxu0 %vm2678_vm1, %v13485_v12 }
0x1341   :  { %6153 = vmatpush1.bf16.msra.mxu0 %v5996_v18  ;;  %6184 = vmatprep.mubr.bf16.mxu0 %v11290_v54 }
0x1342   :  { %6154 = vmatprep.subr.bf16.mxu0 %v6013_v19 }
0x1345   :  { %6155 = vmatpush1.bf16.msra.mxu0 %v6012_v20 }
0x1346   :  { %6234 = vmatprep.subr.bf16.mxu0 %v6001_v23 }
0x1348   :  { %9910 = vmatmul.mubr.msk.bf16.vlgmr.msra.gmra.mrb[44].mxu0 %vm2678_vm1, %v13485_v12 }
0x1349   :  { %6235 = vmatpush1.bf16.msra.mxu0 %v6000_v31  ;;  %6266 = vmatprep.mubr.bf16.mxu0 %v11290_v54 }
0x134a   :  { %6236 = vmatprep.subr.bf16.mxu0 %v6017_v32 }
0x134d   :  { %6237 = vmatpush1.bf16.msra.mxu0 %v6016_v24 }
0x134e   :  { %6316 = vmatprep.subr.bf16.mxu0 %v6005_v33 }
0x1350   :  { %9912 = vmatmul.mubr.msk.bf16.vlgmr.msra.gmra.mrb[48].mxu0 %vm2678_vm1, %v13485_v12 }
0x1351   :  { %6317 = vmatpush1.bf16.msra.mxu0 %v6004_v36  ;;  %6348 = vmatprep.mubr.bf16.mxu0 %v11290_v54 }
0x1352   :  { %6318 = vmatprep.subr.bf16.mxu0 %v6021_v37 }
0x1355   :  { %6319 = vmatpush1.bf16.msra.mxu0 %v6020_v38 }
0x1358   :  { %9914 = vmatmul.mubr.msk.bf16.vlgmr.msra.gmra.mrb[52].mxu0 %vm2678_vm1, %v13485_v12 }
0x1359   :  { %11268 = dma.done.wait [#allocation3 + $0x4], 4096 }
0x135a   :  { %11269 = vsyncadd [#allocation3 + $0x4], 4294963200  ;;  %6446 = vmatprep.mubr.bf16.mxu0 %v11290_v54  ;;  %6610 = vmatprep.mubr.bf16.mxu1 %v11290_v54  ;;  %v6407_v30 = vrot.slane %v13369_v56, 4  ;;  %v6408_v40 = vrot.slane %v13371_v22, 3  ;;  %v6376_v26 = vld [vmem:[#allocation2 + $0x408] sm:$0xff]  ;;  %v6375_v41 = vld [vmem:[#allocation2 + $0x400] sm:$0xff] }
0x135b   :  { %v6392_v29 = vld [vmem:[#allocation2 + $0x488] sm:$0xff]  ;;  %6414 = vmatprep.subr.bf16.mxu0 %v6376_v26  ;;  %v6391_v28 = vld [vmem:[#allocation2 + $0x480] sm:$0xff]  ;;  %v6378_v27 = vld [vmem:[#allocation2 + $0x418] sm:$0xff] }
0x135c   :  { %6415 = vmatpush1.bf16.msra.mxu0 %v6375_v41  ;;  %v6409_v42 = vsel %vm4935_vm4, %v6408_v40, %v6407_v30  ;;  %v6384_v44 = vld [vmem:[#allocation2 + $0x448] sm:$0xff]  ;;  %v6383_v47 = vld [vmem:[#allocation2 + $0x440] sm:$0xff]  ;;  %v6377_v49 = vld [vmem:[#allocation2 + $0x410] sm:$0xff] }
0x135d   :  { %6416 = vmatprep.subr.bf16.mxu0 %v6392_v29  ;;  %v13514_v43 = vpack.c.b16 %v6409_v42, %v6409_v42  ;;  %6578 = vmatprep.subr.bf16.mxu1 %v6384_v44  ;;  %v6400_v48 = vld [vmem:[#allocation2 + $0x4c8] sm:$0xff]  ;;  %v6394_v50 = vld [vmem:[#allocation2 + $0x498] sm:$0xff]  ;;  %v6399_v51 = vld [vmem:[#allocation2 + $0x4c0] sm:$0xff] }
0x135e   :  { %6579 = vmatpush1.bf16.msra.mxu1 %v6383_v47  ;;  %v6388_v52 = vld [vmem:[#allocation2 + $0x468] sm:$0xff]  ;;  %v6393_v61 = vld [vmem:[#allocation2 + $0x490] sm:$0xff]  ;;  %v6387_v63 = vld [vmem:[#allocation2 + $0x460] sm:$0xff] }
0x135f   :  { %6580 = vmatprep.subr.bf16.mxu1 %v6400_v48  ;;  %v6380_v25 = vld [vmem:[#allocation2 + $0x428] sm:$0xff]  ;;  %v6379_v1 = vld [vmem:[#allocation2 + $0x420] sm:$0xff]  ;;  %v6382_v3 = vld [vmem:[#allocation2 + $0x438] sm:$0xff] }
0x1360   :  { %6417 = vmatpush1.bf16.msra.mxu0 %v6391_v28  ;;  %v6404_v0 = vld [vmem:[#allocation2 + $0x4e8] sm:$0xff]  ;;  %v6403_v2 = vld [vmem:[#allocation2 + $0x4e0] sm:$0xff]  ;;  %v6381_v4 = vld [vmem:[#allocation2 + $0x430] sm:$0xff] }
0x1361   :  { %6455 = vmatprep.subr.bf16.mxu0 %v6378_v27  ;;  %v6396_v59 = vld [vmem:[#allocation2 + $0x4a8] sm:$0xff]  ;;  %v6395_v62 = vld [vmem:[#allocation2 + $0x4a0] sm:$0xff]  ;;  %v6398_v5 = vld [vmem:[#allocation2 + $0x4b8] sm:$0xff] }
0x1362   :  { %6581 = vmatpush1.bf16.msra.mxu1 %v6399_v51  ;;  %v6397_v6 = vld [vmem:[#allocation2 + $0x4b0] sm:$0xff]  ;;  %v6386_v7 = vld [vmem:[#allocation2 + $0x458] sm:$0xff] }
0x1363   :  { %9915 = vmatmul.mubr.msk.bf16.vlgmr.msra.gmra.mrb[32].mxu0 %vm2678_vm1, %v13514_v43  ;;  %6660 = vmatprep.subr.bf16.mxu1 %v6388_v52  ;;  %v6385_v8 = vld [vmem:[#allocation2 + $0x450] sm:$0xff]  ;;  %v6402_v9 = vld [vmem:[#allocation2 + $0x4d8] sm:$0xff] }
0x1364   :  { %6456 = vmatpush1.bf16.msra.mxu0 %v6377_v49  ;;  %6487 = vmatprep.mubr.bf16.mxu0 %v11290_v54  ;;  %v6401_v10 = vld [vmem:[#allocation2 + $0x4d0] sm:$0xff]  ;;  %v6390_v11 = vld [vmem:[#allocation2 + $0x478] sm:$0xff] }
0x1365   :  { %6457 = vmatprep.subr.bf16.mxu0 %v6394_v50  ;;  %9919 = vmatmul.mubr.msk.bf16.vlgmr.msra.gmra.mrb[16].mxu1 %vm2678_vm1, %v13514_v43  ;;  %v6389_v12 = vld [vmem:[#allocation2 + $0x470] sm:$0xff]  ;;  %v6406_v13 = vld [vmem:[#allocation2 + $0x4f8] sm:$0xff] }
0x1366   :  { %6661 = vmatpush1.bf16.msra.mxu1 %v6387_v63  ;;  %6692 = vmatprep.mubr.bf16.mxu1 %v11290_v54  ;;  %v6405_v14 = vld [vmem:[#allocation2 + $0x4f0] sm:$0xff] }
0x1367   :  { %6662 = vmatprep.subr.bf16.mxu1 %v6404_v0 }
0x1368   :  { %6458 = vmatpush1.bf16.msra.mxu0 %v6393_v61 }
0x1369   :  { %6496 = vmatprep.subr.bf16.mxu0 %v6380_v25 }
0x136a   :  { %6663 = vmatpush1.bf16.msra.mxu1 %v6403_v2 }
0x136b   :  { %9916 = vmatmul.mubr.msk.bf16.vlgmr.msra.gmra.mrb[36].mxu0 %vm2678_vm1, %v13514_v43 }
0x136c   :  { %6497 = vmatpush1.bf16.msra.mxu0 %v6379_v1  ;;  %6528 = vmatprep.mubr.bf16.mxu0 %v11290_v54 }
0x136d   :  { %6498 = vmatprep.subr.bf16.mxu0 %v6396_v59  ;;  %9921 = vmatmul.mubr.msk.bf16.vlgmr.msra.gmra.mrb[20].mxu1 %vm2678_vm1, %v13514_v43 }
0x1370   :  { %6499 = vmatpush1.bf16.msra.mxu0 %v6395_v62 }
0x1371   :  { %6537 = vmatprep.subr.bf16.mxu0 %v6382_v3 }
0x1373   :  { %9917 = vmatmul.mubr.msk.bf16.vlgmr.msra.gmra.mrb[40].mxu0 %vm2678_vm1, %v13514_v43 }
0x1374   :  { %6538 = vmatpush1.bf16.msra.mxu0 %v6381_v4  ;;  %6569 = vmatprep.mubr.bf16.mxu0 %v11290_v54 }
0x1375   :  { %6539 = vmatprep.subr.bf16.mxu0 %v6398_v5 }
0x1378   :  { %6540 = vmatpush1.bf16.msra.mxu0 %v6397_v6 }
0x1379   :  { %6619 = vmatprep.subr.bf16.mxu0 %v6386_v7 }
0x137b   :  { %9918 = vmatmul.mubr.msk.bf16.vlgmr.msra.gmra.mrb[44].mxu0 %vm2678_vm1, %v13514_v43 }
0x137c   :  { %6620 = vmatpush1.bf16.msra.mxu0 %v6385_v8  ;;  %6651 = vmatprep.mubr.bf16.mxu0 %v11290_v54 }
0x137d   :  { %6621 = vmatprep.subr.bf16.mxu0 %v6402_v9 }
0x1380   :  { %6622 = vmatpush1.bf16.msra.mxu0 %v6401_v10 }
0x1381   :  { %6701 = vmatprep.subr.bf16.mxu0 %v6390_v11 }
0x1383   :  { %9920 = vmatmul.mubr.msk.bf16.vlgmr.msra.gmra.mrb[48].mxu0 %vm2678_vm1, %v13514_v43 }
0x1384   :  { %6702 = vmatpush1.bf16.msra.mxu0 %v6389_v12  ;;  %6733 = vmatprep.mubr.bf16.mxu0 %v11290_v54 }
0x1385   :  { %6703 = vmatprep.subr.bf16.mxu0 %v6406_v13 }
0x1388   :  { %6704 = vmatpush1.bf16.msra.mxu0 %v6405_v14 }
0x138b   :  { %9922 = vmatmul.mubr.msk.bf16.vlgmr.msra.gmra.mrb[52].mxu0 %vm2678_vm1, %v13514_v43 }
0x138c   :  { %11270 = dma.done.wait [#allocation3 + $0x5], 4096 }
0x138d   :  { %11271 = vsyncadd [#allocation3 + $0x5], 4294963200  ;;  %6831 = vmatprep.mubr.bf16.mxu0 %v11290_v54  ;;  %6995 = vmatprep.mubr.bf16.mxu1 %v11290_v54  ;;  %v6792_v15 = vrot.slane %v13369_v56, 5  ;;  %v6793_v16 = vrot.slane %v13371_v22, 4  ;;  %v6761_v17 = vld [vmem:[#allocation2 + $0x508] sm:$0xff]  ;;  %v6760_v53 = vld [vmem:[#allocation2 + $0x500] sm:$0xff] }
0x138e   :  { %v6777_v55 = vld [vmem:[#allocation2 + $0x588] sm:$0xff]  ;;  %6799 = vmatprep.subr.bf16.mxu0 %v6761_v17  ;;  %v6776_v21 = vld [vmem:[#allocation2 + $0x580] sm:$0xff]  ;;  %v6763_v57 = vld [vmem:[#allocation2 + $0x518] sm:$0xff] }
0x138f   :  { %6800 = vmatpush1.bf16.msra.mxu0 %v6760_v53  ;;  %v6794_v35 = vsel %vm4935_vm4, %v6793_v16, %v6792_v15  ;;  %v6769_v34 = vld [vmem:[#allocation2 + $0x548] sm:$0xff]  ;;  %v6768_v46 = vld [vmem:[#allocation2 + $0x540] sm:$0xff]  ;;  %v6762_v60 = vld [vmem:[#allocation2 + $0x510] sm:$0xff] }
0x1390   :  { %6801 = vmatprep.subr.bf16.mxu0 %v6777_v55  ;;  %v13543_v58 = vpack.c.b16 %v6794_v35, %v6794_v35  ;;  %6963 = vmatprep.subr.bf16.mxu1 %v6769_v34  ;;  %v6785_v45 = vld [vmem:[#allocation2 + $0x5c8] sm:$0xff]  ;;  %v6779_v39 = vld [vmem:[#allocation2 + $0x598] sm:$0xff]  ;;  %v6784_v18 = vld [vmem:[#allocation2 + $0x5c0] sm:$0xff] }
0x1391   :  { %6964 = vmatpush1.bf16.msra.mxu1 %v6768_v46  ;;  %v6773_v19 = vld [vmem:[#allocation2 + $0x568] sm:$0xff]  ;;  %v6778_v20 = vld [vmem:[#allocation2 + $0x590] sm:$0xff]  ;;  %v6772_v31 = vld [vmem:[#allocation2 + $0x560] sm:$0xff] }
0x1392   :  { %6965 = vmatprep.subr.bf16.mxu1 %v6785_v45  ;;  %v6765_v23 = vld [vmem:[#allocation2 + $0x528] sm:$0xff]  ;;  %v6764_v24 = vld [vmem:[#allocation2 + $0x520] sm:$0xff]  ;;  %v6767_v38 = vld [vmem:[#allocation2 + $0x538] sm:$0xff] }
0x1393   :  { %6802 = vmatpush1.bf16.msra.mxu0 %v6776_v21  ;;  %v6789_v32 = vld [vmem:[#allocation2 + $0x5e8] sm:$0xff]  ;;  %v6788_v36 = vld [vmem:[#allocation2 + $0x5e0] sm:$0xff]  ;;  %v6766_v30 = vld [vmem:[#allocation2 + $0x530] sm:$0xff] }
0x1394   :  { %6840 = vmatprep.subr.bf16.mxu0 %v6763_v57  ;;  %v6781_v33 = vld [vmem:[#allocation2 + $0x5a8] sm:$0xff]  ;;  %v6780_v37 = vld [vmem:[#allocation2 + $0x5a0] sm:$0xff]  ;;  %v6783_v40 = vld [vmem:[#allocation2 + $0x5b8] sm:$0xff] }
0x1395   :  { %6966 = vmatpush1.bf16.msra.mxu1 %v6784_v18  ;;  %v6782_v26 = vld [vmem:[#allocation2 + $0x5b0] sm:$0xff]  ;;  %v6771_v41 = vld [vmem:[#allocation2 + $0x558] sm:$0xff] }
0x1396   :  { %9923 = vmatmul.mubr.msk.bf16.vlgmr.msra.gmra.mrb[32].mxu0 %vm2678_vm1, %v13543_v58  ;;  %7045 = vmatprep.subr.bf16.mxu1 %v6773_v19  ;;  %v6770_v29 = vld [vmem:[#allocation2 + $0x550] sm:$0xff]  ;;  %v6787_v42 = vld [vmem:[#allocation2 + $0x5d8] sm:$0xff] }
0x1397   :  { %6841 = vmatpush1.bf16.msra.mxu0 %v6762_v60  ;;  %6872 = vmatprep.mubr.bf16.mxu0 %v11290_v54  ;;  %v6786_v28 = vld [vmem:[#allocation2 + $0x5d0] sm:$0xff]  ;;  %v6775_v27 = vld [vmem:[#allocation2 + $0x578] sm:$0xff] }
0x1398   :  { %6842 = vmatprep.subr.bf16.mxu0 %v6779_v39  ;;  %9927 = vmatmul.mubr.msk.bf16.vlgmr.msra.gmra.mrb[16].mxu1 %vm2678_vm1, %v13543_v58  ;;  %v6774_v43 = vld [vmem:[#allocation2 + $0x570] sm:$0xff]  ;;  %v6791_v44 = vld [vmem:[#allocation2 + $0x5f8] sm:$0xff] }
0x1399   :  { %7046 = vmatpush1.bf16.msra.mxu1 %v6772_v31  ;;  %7077 = vmatprep.mubr.bf16.mxu1 %v11290_v54  ;;  %v6790_v47 = vld [vmem:[#allocation2 + $0x5f0] sm:$0xff] }
0x139a   :  { %7047 = vmatprep.subr.bf16.mxu1 %v6789_v32 }
0x139b   :  { %6843 = vmatpush1.bf16.msra.mxu0 %v6778_v20 }
0x139c   :  { %6881 = vmatprep.subr.bf16.mxu0 %v6765_v23 }
0x139d   :  { %7048 = vmatpush1.bf16.msra.mxu1 %v6788_v36 }
0x139e   :  { %9924 = vmatmul.mubr.msk.bf16.vlgmr.msra.gmra.mrb[36].mxu0 %vm2678_vm1, %v13543_v58 }
0x139f   :  { %6882 = vmatpush1.bf16.msra.mxu0 %v6764_v24  ;;  %6913 = vmatprep.mubr.bf16.mxu0 %v11290_v54 }
0x13a0   :  { %6883 = vmatprep.subr.bf16.mxu0 %v6781_v33  ;;  %9929 = vmatmul.mubr.msk.bf16.vlgmr.msra.gmra.mrb[20].mxu1 %vm2678_vm1, %v13543_v58 }
0x13a3   :  { %6884 = vmatpush1.bf16.msra.mxu0 %v6780_v37 }
0x13a4   :  { %6922 = vmatprep.subr.bf16.mxu0 %v6767_v38 }
0x13a6   :  { %9925 = vmatmul.mubr.msk.bf16.vlgmr.msra.gmra.mrb[40].mxu0 %vm2678_vm1, %v13543_v58 }
0x13a7   :  { %6923 = vmatpush1.bf16.msra.mxu0 %v6766_v30  ;;  %6954 = vmatprep.mubr.bf16.mxu0 %v11290_v54 }
0x13a8   :  { %6924 = vmatprep.subr.bf16.mxu0 %v6783_v40 }
0x13ab   :  { %6925 = vmatpush1.bf16.msra.mxu0 %v6782_v26 }
0x13ac   :  { %7004 = vmatprep.subr.bf16.mxu0 %v6771_v41 }
0x13ae   :  { %9926 = vmatmul.mubr.msk.bf16.vlgmr.msra.gmra.mrb[44].mxu0 %vm2678_vm1, %v13543_v58 }
0x13af   :  { %7005 = vmatpush1.bf16.msra.mxu0 %v6770_v29  ;;  %7036 = vmatprep.mubr.bf16.mxu0 %v11290_v54 }
0x13b0   :  { %7006 = vmatprep.subr.bf16.mxu0 %v6787_v42 }
0x13b3   :  { %7007 = vmatpush1.bf16.msra.mxu0 %v6786_v28 }
0x13b4   :  { %7086 = vmatprep.subr.bf16.mxu0 %v6775_v27 }
0x13b6   :  { %9928 = vmatmul.mubr.msk.bf16.vlgmr.msra.gmra.mrb[48].mxu0 %vm2678_vm1, %v13543_v58 }
0x13b7   :  { %7087 = vmatpush1.bf16.msra.mxu0 %v6774_v43  ;;  %7118 = vmatprep.mubr.bf16.mxu0 %v11290_v54 }
0x13b8   :  { %7088 = vmatprep.subr.bf16.mxu0 %v6791_v44 }
0x13bb   :  { %7089 = vmatpush1.bf16.msra.mxu0 %v6790_v47 }
0x13be   :  { %9930 = vmatmul.mubr.msk.bf16.vlgmr.msra.gmra.mrb[52].mxu0 %vm2678_vm1, %v13543_v58 }
0x13bf   :  { %11272 = dma.done.wait [#allocation3 + $0x6], 4096 }
0x13c0   :  { %11273 = vsyncadd [#allocation3 + $0x6], 4294963200  ;;  %7216 = vmatprep.mubr.bf16.mxu0 %v11290_v54  ;;  %7380 = vmatprep.mubr.bf16.mxu1 %v11290_v54  ;;  %v7177_v48 = vrot.slane %v13369_v56, 6  ;;  %v7178_v49 = vrot.slane %v13371_v22, 5  ;;  %v7146_v50 = vld [vmem:[#allocation2 + $0x608] sm:$0xff]  ;;  %v7145_v51 = vld [vmem:[#allocation2 + $0x600] sm:$0xff] }
0x13c1   :  { %v7162_v52 = vld [vmem:[#allocation2 + $0x688] sm:$0xff]  ;;  %7184 = vmatprep.subr.bf16.mxu0 %v7146_v50  ;;  %v7161_v25 = vld [vmem:[#allocation2 + $0x680] sm:$0xff]  ;;  %v7148_v63 = vld [vmem:[#allocation2 + $0x618] sm:$0xff] }
0x13c2   :  { %7185 = vmatpush1.bf16.msra.mxu0 %v7145_v51  ;;  %v7179_v61 = vsel %vm4935_vm4, %v7178_v49, %v7177_v48  ;;  %v7154_v1 = vld [vmem:[#allocation2 + $0x648] sm:$0xff]  ;;  %v7153_v59 = vld [vmem:[#allocation2 + $0x640] sm:$0xff]  ;;  %v7147_v62 = vld [vmem:[#allocation2 + $0x610] sm:$0xff] }
0x13c3   :  { %7186 = vmatprep.subr.bf16.mxu0 %v7162_v52  ;;  %v13572_v0 = vpack.c.b16 %v7179_v61, %v7179_v61  ;;  %7348 = vmatprep.subr.bf16.mxu1 %v7154_v1  ;;  %v7170_v2 = vld [vmem:[#allocation2 + $0x6c8] sm:$0xff]  ;;  %v7164_v3 = vld [vmem:[#allocation2 + $0x698] sm:$0xff]  ;;  %v7169_v4 = vld [vmem:[#allocation2 + $0x6c0] sm:$0xff] }
0x13c4   :  { %7349 = vmatpush1.bf16.msra.mxu1 %v7153_v59  ;;  %v7158_v5 = vld [vmem:[#allocation2 + $0x668] sm:$0xff]  ;;  %v7163_v6 = vld [vmem:[#allocation2 + $0x690] sm:$0xff]  ;;  %v7157_v8 = vld [vmem:[#allocation2 + $0x660] sm:$0xff] }
0x13c5   :  { %7350 = vmatprep.subr.bf16.mxu1 %v7170_v2  ;;  %v7150_v7 = vld [vmem:[#allocation2 + $0x628] sm:$0xff]  ;;  %v7149_v10 = vld [vmem:[#allocation2 + $0x620] sm:$0xff]  ;;  %v7152_v14 = vld [vmem:[#allocation2 + $0x638] sm:$0xff] }
0x13c6   :  { %7187 = vmatpush1.bf16.msra.mxu0 %v7161_v25  ;;  %v7174_v9 = vld [vmem:[#allocation2 + $0x6e8] sm:$0xff]  ;;  %v7173_v12 = vld [vmem:[#allocation2 + $0x6e0] sm:$0xff]  ;;  %v7151_v15 = vld [vmem:[#allocation2 + $0x630] sm:$0xff] }
0x13c7   :  { %7225 = vmatprep.subr.bf16.mxu0 %v7148_v63  ;;  %v7166_v11 = vld [vmem:[#allocation2 + $0x6a8] sm:$0xff]  ;;  %v7165_v13 = vld [vmem:[#allocation2 + $0x6a0] sm:$0xff]  ;;  %v7168_v16 = vld [vmem:[#allocation2 + $0x6b8] sm:$0xff] }
0x13c8   :  { %7351 = vmatpush1.bf16.msra.mxu1 %v7169_v4  ;;  %v7167_v17 = vld [vmem:[#allocation2 + $0x6b0] sm:$0xff]  ;;  %v7156_v53 = vld [vmem:[#allocation2 + $0x658] sm:$0xff] }
0x13c9   :  { %9931 = vmatmul.mubr.msk.bf16.vlgmr.msra.gmra.mrb[32].mxu0 %vm2678_vm1, %v13572_v0  ;;  %7430 = vmatprep.subr.bf16.mxu1 %v7158_v5  ;;  %v7155_v55 = vld [vmem:[#allocation2 + $0x650] sm:$0xff]  ;;  %v7172_v35 = vld [vmem:[#allocation2 + $0x6d8] sm:$0xff] }
0x13ca   :  { %7226 = vmatpush1.bf16.msra.mxu0 %v7147_v62  ;;  %7257 = vmatprep.mubr.bf16.mxu0 %v11290_v54  ;;  %v7171_v21 = vld [vmem:[#allocation2 + $0x6d0] sm:$0xff]  ;;  %v7160_v57 = vld [vmem:[#allocation2 + $0x678] sm:$0xff] }
0x13cb   :  { %7227 = vmatprep.subr.bf16.mxu0 %v7164_v3  ;;  %9935 = vmatmul.mubr.msk.bf16.vlgmr.msra.gmra.mrb[16].mxu1 %vm2678_vm1, %v13572_v0  ;;  %v7159_v58 = vld [vmem:[#allocation2 + $0x670] sm:$0xff]  ;;  %v7176_v34 = vld [vmem:[#allocation2 + $0x6f8] sm:$0xff] }
0x13cc   :  { %7431 = vmatpush1.bf16.msra.mxu1 %v7157_v8  ;;  %7462 = vmatprep.mubr.bf16.mxu1 %v11290_v54  ;;  %v7175_v46 = vld [vmem:[#allocation2 + $0x6f0] sm:$0xff] }
0x13cd   :  { %7432 = vmatprep.subr.bf16.mxu1 %v7174_v9 }
0x13ce   :  { %7228 = vmatpush1.bf16.msra.mxu0 %v7163_v6 }
0x13cf   :  { %7266 = vmatprep.subr.bf16.mxu0 %v7150_v7 }
0x13d0   :  { %7433 = vmatpush1.bf16.msra.mxu1 %v7173_v12 }
0x13d1   :  { %9932 = vmatmul.mubr.msk.bf16.vlgmr.msra.gmra.mrb[36].mxu0 %vm2678_vm1, %v13572_v0 }
0x13d2   :  { %7267 = vmatpush1.bf16.msra.mxu0 %v7149_v10  ;;  %7298 = vmatprep.mubr.bf16.mxu0 %v11290_v54 }
0x13d3   :  { %7268 = vmatprep.subr.bf16.mxu0 %v7166_v11  ;;  %9937 = vmatmul.mubr.msk.bf16.vlgmr.msra.gmra.mrb[20].mxu1 %vm2678_vm1, %v13572_v0 }
0x13d6   :  { %7269 = vmatpush1.bf16.msra.mxu0 %v7165_v13 }
0x13d7   :  { %7307 = vmatprep.subr.bf16.mxu0 %v7152_v14 }
0x13d9   :  { %9933 = vmatmul.mubr.msk.bf16.vlgmr.msra.gmra.mrb[40].mxu0 %vm2678_vm1, %v13572_v0 }
0x13da   :  { %7308 = vmatpush1.bf16.msra.mxu0 %v7151_v15  ;;  %7339 = vmatprep.mubr.bf16.mxu0 %v11290_v54 }
0x13db   :  { %7309 = vmatprep.subr.bf16.mxu0 %v7168_v16 }
0x13de   :  { %7310 = vmatpush1.bf16.msra.mxu0 %v7167_v17 }
0x13df   :  { %7389 = vmatprep.subr.bf16.mxu0 %v7156_v53 }
0x13e1   :  { %9934 = vmatmul.mubr.msk.bf16.vlgmr.msra.gmra.mrb[44].mxu0 %vm2678_vm1, %v13572_v0 }
0x13e2   :  { %7390 = vmatpush1.bf16.msra.mxu0 %v7155_v55  ;;  %7421 = vmatprep.mubr.bf16.mxu0 %v11290_v54 }
0x13e3   :  { %7391 = vmatprep.subr.bf16.mxu0 %v7172_v35 }
0x13e6   :  { %7392 = vmatpush1.bf16.msra.mxu0 %v7171_v21 }
0x13e7   :  { %7471 = vmatprep.subr.bf16.mxu0 %v7160_v57 }
0x13e9   :  { %9936 = vmatmul.mubr.msk.bf16.vlgmr.msra.gmra.mrb[48].mxu0 %vm2678_vm1, %v13572_v0 }
0x13ea   :  { %7472 = vmatpush1.bf16.msra.mxu0 %v7159_v58  ;;  %7503 = vmatprep.mubr.bf16.mxu0 %v11290_v54 }
0x13eb   :  { %7473 = vmatprep.subr.bf16.mxu0 %v7176_v34 }
0x13ee   :  { %7474 = vmatpush1.bf16.msra.mxu0 %v7175_v46 }
0x13f1   :  { %9938 = vmatmul.mubr.msk.bf16.vlgmr.msra.gmra.mrb[52].mxu0 %vm2678_vm1, %v13572_v0 }
0x13f2   :  { %11274 = dma.done.wait [#allocation3 + $0x7], 4096 }
0x13f3   :  { %11275 = vsyncadd [#allocation3 + $0x7], 4294963200  ;;  %7601 = vmatprep.mubr.bf16.mxu0 %v11290_v54  ;;  %7765 = vmatprep.mubr.bf16.mxu1 %v11290_v54  ;;  %v7562_v45 = vrot.slane %v13369_v56, 7  ;;  %v7563_v60 = vrot.slane %v13371_v22, 6  ;;  %v7531_v39 = vld [vmem:[#allocation2 + $0x708] sm:$0xff]  ;;  %v7530_v18 = vld [vmem:[#allocation2 + $0x700] sm:$0xff] }
0x13f4   :  { %v7547_v19 = vld [vmem:[#allocation2 + $0x788] sm:$0xff]  ;;  %7569 = vmatprep.subr.bf16.mxu0 %v7531_v39  ;;  %v7546_v23 = vld [vmem:[#allocation2 + $0x780] sm:$0xff]  ;;  %v7533_v31 = vld [vmem:[#allocation2 + $0x718] sm:$0xff]  ;;  %vm8736_vm5 = vcmask 9216  }
0x13f5   :  { %7570 = vmatpush1.bf16.msra.mxu0 %v7530_v18  ;;  %v7564_v20 = vsel %vm4935_vm4, %v7563_v60, %v7562_v45  ;;  %v7539_v24 = vld [vmem:[#allocation2 + $0x748] sm:$0xff]  ;;  %v7538_v33 = vld [vmem:[#allocation2 + $0x740] sm:$0xff]  ;;  %v7532_v56 = vld [vmem:[#allocation2 + $0x710] sm:$0xff] }
0x13f6   :  { %7571 = vmatprep.subr.bf16.mxu0 %v7547_v19  ;;  %v13601_v32 = vpack.c.b16 %v7564_v20, %v7564_v20  ;;  %7733 = vmatprep.subr.bf16.mxu1 %v7539_v24  ;;  %v7555_v36 = vld [vmem:[#allocation2 + $0x7c8] sm:$0xff]  ;;  %v7549_v22 = vld [vmem:[#allocation2 + $0x798] sm:$0xff]  ;;  %v7554_v37 = vld [vmem:[#allocation2 + $0x7c0] sm:$0xff] }
0x13f7   :  { %7734 = vmatpush1.bf16.msra.mxu1 %v7538_v33  ;;  %v7543_v38 = vld [vmem:[#allocation2 + $0x768] sm:$0xff]  ;;  %v7548_v30 = vld [vmem:[#allocation2 + $0x790] sm:$0xff]  ;;  %v7542_v26 = vld [vmem:[#allocation2 + $0x760] sm:$0xff] }
0x13f8   :  { %7735 = vmatprep.subr.bf16.mxu1 %v7555_v36  ;;  %v7535_v40 = vld [vmem:[#allocation2 + $0x728] sm:$0xff]  ;;  %v7929_v29 = vld [vmem:[%s14458_s17 + $0x80] sm:$0xff]  ;;  %v7931_v49 = vld [vmem:[%s14458_s17 + $0x90] sm:$0xff] }
0x13f9   :  { %7572 = vmatpush1.bf16.msra.mxu0 %v7546_v23  ;;  %v7559_v41 = vld [vmem:[#allocation2 + $0x7e8] sm:$0xff]  ;;  %v7534_v28 = vld [vmem:[#allocation2 + $0x720] sm:$0xff]  ;;  %v7932_v50 = vld [vmem:[%s14458_s17 + $0x98] sm:$0xff] }
0x13fa   :  { %7610 = vmatprep.subr.bf16.mxu0 %v7533_v31  ;;  %v7930_v42 = vld [vmem:[%s14458_s17 + $0x88] sm:$0xff]  ;;  %v7558_v43 = vld [vmem:[#allocation2 + $0x7e0] sm:$0xff]  ;;  %v7537_v61 = vld [vmem:[#allocation2 + $0x738] sm:$0xff]  ;;  %v10586_v25 = vpack.c.bf16 %v7932_v50, %v7931_v49 }
0x13fb   :  { %7736 = vmatpush1.bf16.msra.mxu1 %v7554_v37  ;;  %v7551_v27 = vld [vmem:[#allocation2 + $0x7a8] sm:$0xff]  ;;  %v10582_v44 = vpack.c.bf16 %v7930_v42, %v7929_v29  ;;  %v7913_v47 = vld [vmem:[%s14458_s17] sm:$0xff]  ;;  %v7915_v63 = vld [vmem:[%s14458_s17 + $0x10] sm:$0xff] }
0x13fc   :  { %9939 = vmatmul.mubr.msk.bf16.vlgmr.msra.gmra.mrb[32].mxu0 %vm2678_vm1, %v13601_v32  ;;  %7815 = vmatprep.subr.bf16.mxu1 %v7543_v38  ;;  %v7914_v48 = vld [vmem:[%s14458_s17 + $0x8] sm:$0xff]  ;;  %v7550_v51 = vld [vmem:[#allocation2 + $0x7a0] sm:$0xff]  ;;  %v7916_v0 = vld [vmem:[%s14458_s17 + $0x18] sm:$0xff] }
0x13fd   :  { %7611 = vmatpush1.bf16.msra.mxu0 %v7532_v56  ;;  %7642 = vmatprep.mubr.bf16.mxu0 %v11290_v54  ;;  %v10584_v52 = vpack.c.bf16 %v7914_v48, %v7913_v47  ;;  %v7933_v1 = vld [vmem:[%s14458_s17 + $0xa0] sm:$0xff]  ;;  %v7934_v59 = vld [vmem:[%s14458_s17 + $0xa8] sm:$0xff]  ;;  %v7536_v2 = vld [vmem:[#allocation2 + $0x730] sm:$0xff]  ;;  %v10588_v62 = vpack.c.bf16 %v7916_v0, %v7915_v63 }
0x13fe   :  { %7612 = vmatprep.subr.bf16.mxu0 %v7549_v22  ;;  %9943 = vmatmul.mubr.msk.bf16.vlgmr.msra.gmra.mrb[16].mxu1 %vm2678_vm1, %v13601_v32  ;;  %v7553_v3 = vld [vmem:[#allocation2 + $0x7b8] sm:$0xff]  ;;  %v10590_v4 = vpack.c.bf16 %v7934_v59, %v7933_v1  ;;  %v7917_v5 = vld [vmem:[%s14458_s17 + $0x20] sm:$0xff]  ;;  %v7918_v6 = vld [vmem:[%s14458_s17 + $0x28] sm:$0xff] }
0x13ff   :  { %7816 = vmatpush1.bf16.msra.mxu1 %v7542_v26  ;;  %7847 = vmatprep.mubr.bf16.mxu1 %v11290_v54  ;;  %v7935_v7 = vld [vmem:[%s14458_s17 + $0xb0] sm:$0xff]  ;;  %v7936_v8 = vld [vmem:[%s14458_s17 + $0xb8] sm:$0xff]  ;;  %v10592_v10 = vpack.c.bf16 %v7918_v6, %v7917_v5  ;;  %v7937_v15 = vld [vmem:[%s14458_s17 + $0xc0] sm:$0xff] }
0x1400   :  { %7817 = vmatprep.subr.bf16.mxu1 %v7559_v41  ;;  %v7552_v9 = vld [vmem:[#allocation2 + $0x7b0] sm:$0xff]  ;;  %v7541_v11 = vld [vmem:[#allocation2 + $0x758] sm:$0xff]  ;;  %v10594_v12 = vpack.c.bf16 %v7936_v8, %v7935_v7  ;;  %v7938_v16 = vld [vmem:[%s14458_s17 + $0xc8] sm:$0xff] }
0x1401   :  { %7613 = vmatpush1.bf16.msra.mxu0 %v7548_v30  ;;  %v7919_v13 = vld [vmem:[%s14458_s17 + $0x30] sm:$0xff]  ;;  %v7920_v14 = vld [vmem:[%s14458_s17 + $0x38] sm:$0xff]  ;;  %v10598_v35 = vpack.c.bf16 %v7938_v16, %v7937_v15  ;;  %v7921_v21 = vld [vmem:[%s14458_s17 + $0x40] sm:$0xff] }
0x1402   :  { %7651 = vmatprep.subr.bf16.mxu0 %v7535_v40  ;;  %v7540_v17 = vld [vmem:[#allocation2 + $0x750] sm:$0xff]  ;;  %v10596_v53 = vpack.c.bf16 %v7920_v14, %v7919_v13  ;;  %v7557_v55 = vld [vmem:[#allocation2 + $0x7d8] sm:$0xff]  ;;  %v7922_v57 = vld [vmem:[%s14458_s17 + $0x48] sm:$0xff] }
0x1403   :  { %7818 = vmatpush1.bf16.msra.mxu1 %v7558_v43  ;;  %v7939_v58 = vld [vmem:[%s14458_s17 + $0xd0] sm:$0xff]  ;;  %v7940_v34 = vld [vmem:[%s14458_s17 + $0xd8] sm:$0xff]  ;;  %v10600_v45 = vpack.c.bf16 %v7922_v57, %v7921_v21  ;;  %v7941_v19 = vld [vmem:[%s14458_s17 + $0xe0] sm:$0xff] }
0x1404   :  { %9940 = vmatmul.mubr.msk.bf16.vlgmr.msra.gmra.mrb[36].mxu0 %vm2678_vm1, %v13601_v32  ;;  %10583 = vmatprep.subr.bf16.mxu1 %v10582_v44  ;;  %v7556_v46 = vld [vmem:[#allocation2 + $0x7d0] sm:$0xff]  ;;  %v10602_v60 = vpack.c.bf16 %v7940_v34, %v7939_v58  ;;  %v7924_v18 = vld [vmem:[%s14458_s17 + $0x58] sm:$0xff]  ;;  %v7942_v20 = vld [vmem:[%s14458_s17 + $0xe8] sm:$0xff] }
0x1405   :  { %7652 = vmatpush1.bf16.msra.mxu0 %v7534_v28  ;;  %7683 = vmatprep.mubr.bf16.mxu0 %v11290_v54  ;;  %v7923_v39 = vld [vmem:[%s14458_s17 + $0x50] sm:$0xff]  ;;  %v10606_v31 = vpack.c.bf16 %v7942_v20, %v7941_v19  ;;  %v7925_v24 = vld [vmem:[%s14458_s17 + $0x60] sm:$0xff]  ;;  %v7926_v33 = vld [vmem:[%s14458_s17 + $0x68] sm:$0xff] }
0x1406   :  { %7653 = vmatprep.subr.bf16.mxu0 %v7551_v27  ;;  %9945 = vmatmul.mubr.msk.bf16.vlgmr.msra.gmra.mrb[20].mxu1 %vm2678_vm1, %v13601_v32  ;;  %v10604_v23 = vpack.c.bf16 %v7924_v18, %v7923_v39  ;;  %v7943_v36 = vld [vmem:[%s14458_s17 + $0xf0] sm:$0xff]  ;;  %v7944_v56 = vld [vmem:[%s14458_s17 + $0xf8] sm:$0xff]  ;;  %v10608_v22 = vpack.c.bf16 %v7926_v33, %v7925_v24  ;;  %v7962_v26 = vld [vmem:[%s14458_s17 + $0x188] sm:$0xff] }
0x1407   :  { %10585 = vmatpush3.bf16.msra.mxu1 %v10584_v52  ;;  %v10610_v37 = vpack.c.bf16 %v7944_v56, %v7943_v36  ;;  %v7927_v38 = vld [vmem:[%s14458_s17 + $0x70] sm:$0xff]  ;;  %v7928_v30 = vld [vmem:[%s14458_s17 + $0x78] sm:$0xff]  ;;  %v7945_v43 = vld [vmem:[%s14458_s17 + $0x100] sm:$0xff] }
0x1408   :  { %10587 = vmatprep.subr.bf16.mxu1 %v10586_v25  ;;  %v10612_v40 = vpack.c.bf16 %v7928_v30, %v7927_v38  ;;  %v7545_v41 = vld [vmem:[#allocation2 + $0x778] sm:$0xff]  ;;  %v7544_v42 = vld [vmem:[#allocation2 + $0x770] sm:$0xff]  ;;  %v7946_v44 = vld [vmem:[%s14458_s17 + $0x108] sm:$0xff] }
0x1409   :  { %7654 = vmatpush1.bf16.msra.mxu0 %v7550_v51  ;;  %v7561_v28 = vld [vmem:[#allocation2 + $0x7f8] sm:$0xff]  ;;  %v7560_v27 = vld [vmem:[#allocation2 + $0x7f0] sm:$0xff]  ;;  %v10616_v50 = vpack.c.bf16 %v7946_v44, %v7945_v43  ;;  %v7965_v63 = vld [vmem:[%s14458_s17 + $0x1a0] sm:$0xff] }
0x140a   :  { %7692 = vmatprep.subr.bf16.mxu0 %v7537_v61  ;;  %v7963_v47 = vld [vmem:[%s14458_s17 + $0x190] sm:$0xff]  ;;  %v7964_v48 = vld [vmem:[%s14458_s17 + $0x198] sm:$0xff]  ;;  %v7966_v0 = vld [vmem:[%s14458_s17 + $0x1a8] sm:$0xff] }
0x140b   :  { %10589 = vmatpush3.bf16.msra.mxu1 %v10588_v62  ;;  %v7947_v52 = vld [vmem:[%s14458_s17 + $0x110] sm:$0xff]  ;;  %v7948_v61 = vld [vmem:[%s14458_s17 + $0x118] sm:$0xff]  ;;  %v7949_v62 = vld [vmem:[%s14458_s17 + $0x120] sm:$0xff] }
0x140c   :  { %9941 = vmatmul.mubr.msk.bf16.vlgmr.msra.gmra.mrb[40].mxu0 %vm2678_vm1, %v13601_v32  ;;  %10591 = vmatprep.subr.bf16.mxu1 %v10590_v4  ;;  %v10620_v59 = vpack.c.bf16 %v7948_v61, %v7947_v52  ;;  %v7967_v5 = vld [vmem:[%s14458_s17 + $0x1b0] sm:$0xff]  ;;  %v7968_v6 = vld [vmem:[%s14458_s17 + $0x1b8] sm:$0xff]  ;;  %v7969_v16 = vld [vmem:[%s14458_s17 + $0x1c0] sm:$0xff] }
0x140d   :  { %7693 = vmatpush1.bf16.msra.mxu0 %v7536_v2  ;;  %7724 = vmatprep.mubr.bf16.mxu0 %v11290_v54  ;;  %v10622_v2 = vpack.c.bf16 %v7966_v0, %v7965_v63  ;;  %v7951_v13 = vld [vmem:[%s14458_s17 + $0x130] sm:$0xff]  ;;  %v7952_v14 = vld [vmem:[%s14458_s17 + $0x138] sm:$0xff]  ;;  %v7953_v57 = vld [vmem:[%s14458_s17 + $0x140] sm:$0xff] }
0x140e   :  { %7694 = vmatprep.subr.bf16.mxu0 %v7553_v3  ;;  %v7950_v3 = vld [vmem:[%s14458_s17 + $0x128] sm:$0xff]  ;;  %v7971_v34 = vld [vmem:[%s14458_s17 + $0x1d0] sm:$0xff]  ;;  %v7956_v19 = vld [vmem:[%s14458_s17 + $0x158] sm:$0xff] }
0x140f   :  { %10593 = vmatpush3.bf16.msra.mxu1 %v10592_v10  ;;  %v7954_v58 = vld [vmem:[%s14458_s17 + $0x148] sm:$0xff]  ;;  %v7955_v18 = vld [vmem:[%s14458_s17 + $0x150] sm:$0xff]  ;;  %v7976_v30 = vld [vmem:[%s14458_s17 + $0x1f8] sm:$0xff] }
0x1410   :  { %10595 = vmatprep.subr.bf16.mxu1 %v10594_v12  ;;  %v10626_v12 = vpack.c.bf16 %v7968_v6, %v7967_v5  ;;  %v10636_v36 = vpack.c.bf16 %v7956_v19, %v7955_v18  ;;  %v7975_v38 = vld [vmem:[%s14458_s17 + $0x1f0] sm:$0xff]  ;;  %v7980_v0 = vld [vmem:[%s14458_s17 + $0x218] sm:$0xff]  ;;  %v8005_v19 = vld [vmem:[%s14458_s17 + $0x2e0] sm:$0xff] }
0x1411   :  { %7695 = vmatpush1.bf16.msra.mxu0 %v7552_v9  ;;  %v10624_v9 = vpack.c.bf16 %v7950_v3, %v7949_v62  ;;  %v7979_v63 = vld [vmem:[%s14458_s17 + $0x210] sm:$0xff] }
0x1412   :  { %7774 = vmatprep.subr.bf16.mxu0 %v7541_v11  ;;  %v10652_v5 = vpack.c.bf16 %v7980_v0, %v7979_v63  ;;  %v8030_v63 = vld [vmem:[%s14458_s17 + $0x3a8] sm:$0xff] }
0x1413   :  { %10597 = vmatpush3.bf16.msra.mxu1 %v10596_v53 }
0x1414   :  { %9942 = vmatmul.mubr.msk.bf16.vlgmr.msra.gmra.mrb[44].mxu0 %vm2678_vm1, %v13601_v32  ;;  %10599 = vmatprep.subr.bf16.mxu1 %v10598_v35  ;;  %v10628_v35 = vpack.c.bf16 %v7952_v14, %v7951_v13  ;;  %v7983_v14 = vld [vmem:[%s14458_s17 + $0x230] sm:$0xff] }
0x1415   :  { %7775 = vmatpush1.bf16.msra.mxu0 %v7540_v17  ;;  %7806 = vmatprep.mubr.bf16.mxu0 %v11290_v54  ;;  %v7970_v17 = vld [vmem:[%s14458_s17 + $0x1c8] sm:$0xff] }
0x1416   :  { %7776 = vmatprep.subr.bf16.mxu0 %v7557_v55  ;;  %v10630_v21 = vpack.c.bf16 %v7970_v17, %v7969_v16  ;;  %v8001_v16 = vld [vmem:[%s14458_s17 + $0x2c0] sm:$0xff]  ;;  %v8002_v17 = vld [vmem:[%s14458_s17 + $0x2c8] sm:$0xff] }
0x1417   :  { %10601 = vmatpush3.bf16.msra.mxu1 %v10600_v45  ;;  %v10632_v45 = vpack.c.bf16 %v7954_v58, %v7953_v57  ;;  %v8003_v57 = vld [vmem:[%s14458_s17 + $0x2d0] sm:$0xff]  ;;  %v8004_v58 = vld [vmem:[%s14458_s17 + $0x2d8] sm:$0xff] }
0x1418   :  { %10603 = vmatprep.subr.bf16.mxu1 %v10602_v60 }
0x1419   :  { %7777 = vmatpush1.bf16.msra.mxu0 %v7556_v46  ;;  %v7972_v46 = vld [vmem:[%s14458_s17 + $0x1d8] sm:$0xff] }
0x141a   :  { %7856 = vmatprep.subr.bf16.mxu0 %v7545_v41  ;;  %v10634_v39 = vpack.c.bf16 %v7972_v46, %v7971_v34  ;;  %v7959_v41 = vld [vmem:[%s14458_s17 + $0x170] sm:$0xff]  ;;  %v10666_v46 = vpack.c.bf16 %v8004_v58, %v8003_v57  ;;  %v8038_v57 = vld [vmem:[%s14458_s17 + $0x3e8] sm:$0xff] }
0x141b   :  { %10605 = vmatpush3.bf16.msra.mxu1 %v10604_v23  ;;  %v7973_v23 = vld [vmem:[%s14458_s17 + $0x1e0] sm:$0xff] }
0x141c   :  { %9944 = vmatmul.mubr.msk.bf16.vlgmr.msra.gmra.mrb[48].mxu0 %vm2678_vm1, %v13601_v32  ;;  %10607 = vmatprep.subr.bf16.mxu1 %v10606_v31  ;;  %v7974_v31 = vld [vmem:[%s14458_s17 + $0x1e8] sm:$0xff] }
0x141d   :  { %7888 = vmatprep.mubr.bf16.mxu0 %v11290_v54  ;;  %v7961_v54 = vld [vmem:[%s14458_s17 + $0x180] sm:$0xff]  ;;  %7857 = vmatpush1.bf16.msra.mxu0 %v7544_v42  ;;  %v10638_v56 = vpack.c.bf16 %v7974_v31, %v7973_v23 }
0x141e   :  { %v10614_v29 = vpack.c.bf16 %v7962_v26, %v7961_v54  ;;  %7858 = vmatprep.subr.bf16.mxu0 %v7561_v28  ;;  %v10642_v26 = vpack.c.bf16 %v7976_v30, %v7975_v38  ;;  %v7993_v28 = vld [vmem:[%s14458_s17 + $0x280] sm:$0xff] }
0x141f   :  { %10609 = vmatpush3.bf16.msra.mxu1 %v10608_v22  ;;  %v7957_v22 = vld [vmem:[%s14458_s17 + $0x160] sm:$0xff] }
0x1420   :  { %10611 = vmatprep.subr.bf16.mxu1 %v10610_v37  ;;  %v7958_v37 = vld [vmem:[%s14458_s17 + $0x168] sm:$0xff] }
0x1421   :  { %7859 = vmatpush1.bf16.msra.mxu0 %v7560_v27  ;;  %v7994_v27 = vld [vmem:[%s14458_s17 + $0x288] sm:$0xff] }
0x1423   :  { %10613 = vmatpush3.bf16.msra.mxu1 %v10612_v40  ;;  %v10640_v40 = vpack.c.bf16 %v7958_v37, %v7957_v22  ;;  %v8007_v22 = vld [vmem:[%s14458_s17 + $0x2f0] sm:$0xff]  ;;  %v8008_v37 = vld [vmem:[%s14458_s17 + $0x2f8] sm:$0xff] }
0x1424   :  { %10615 = vmatprep.subr.bf16.mxu1 %v10614_v29  ;;  %9946 = vmatmul.mubr.msk.bf16.vlgmr.msra.gmra.mrb[52].mxu0 %vm2678_vm1, %v13601_v32  ;;  %v10618_v32 = vpack.c.bf16 %v7964_v48, %v7963_v47  ;;  %v7960_v29 = vld [vmem:[%s14458_s17 + $0x178] sm:$0xff]  ;;  %v10646_v48 = vpack.c.bf16 %v7994_v27, %v7993_v28  ;;  %v8026_v28 = vld [vmem:[%s14458_s17 + $0x388] sm:$0xff] }
0x1425   :  { %v10644_v47 = vpack.c.bf16 %v7960_v29, %v7959_v41  ;;  %v7992_v41 = vld [vmem:[%s14458_s17 + $0x278] sm:$0xff]  ;;  %v8025_v29 = vld [vmem:[%s14458_s17 + $0x380] sm:$0xff] }
0x14cf   :  { %v7603_v49 = vpop.f32.mrb[32].mxu0 }
0x14d0   :  { %v7605_v51 = vpop.f32.mrb[33].mxu0 }
0x14d1   :  { %v7607_v25 = vpop.f32.mrb[34].mxu0  ;;  %8240 = vmatprep.mubr.f32.mxu1 %v7605_v51  ;;  %v13757_v4 = vpop.f32.mrb[16].mxu1  ;;  %v7995_v51 = vld [vmem:[%s14458_s17 + $0x290] sm:$0xff] }
0x14d2   :  { %v7608_v1 = vpop.f32.mrb[35].mxu0  ;;  %8241 = vmatmul.mubr.f32.vlgmr.msra.gmra.mrb[24].mxu1 %v7603_v49  ;;  %v13765_v7 = vpop.f32.mrb[17].mxu1  ;;  %v7977_v49 = vld [vmem:[%s14458_s17 + $0x200] sm:$0xff] }
0x14d3   :  { %10617 = vmatpush3.bf16.msra.mxu1 %v10616_v50  ;;  %v7771_v8 = vpop.f32.mrb[18].mxu1  ;;  %v7978_v50 = vld [vmem:[%s14458_s17 + $0x208] sm:$0xff] }
0x14d4   :  { %10619 = vmatprep.subr.bf16.mxu1 %v10618_v32  ;;  %v7772_v11 = vpop.f32.mrb[19].mxu1  ;;  %v7996_v32 = vld [vmem:[%s14458_s17 + $0x298] sm:$0xff]  ;;  %v10648_v52 = vpack.c.bf16 %v7978_v50, %v7977_v49  ;;  %v7981_v8 = vld [vmem:[%s14458_s17 + $0x220] sm:$0xff] }
0x14d5   :  { %v10650_v25 = vpack.c.bf16 %v7996_v32, %v7995_v51  ;;  %v7999_v11 = vld [vmem:[%s14458_s17 + $0x2b0] sm:$0xff]  ;;  %v8028_v49 = vld [vmem:[%s14458_s17 + $0x398] sm:$0xff] }
0x14d6   :  { %v8011_v32 = vld [vmem:[%s14458_s17 + $0x310] sm:$0xff] }
0x14d7   :  { %10621 = vmatpush3.bf16.msra.mxu1 %v10620_v59  ;;  %v13767_v10 = vpop.f32.mrb[36].mxu0  ;;  %v7997_v59 = vld [vmem:[%s14458_s17 + $0x2a0] sm:$0xff] }
0x14d8   :  { %10623 = vmatprep.subr.bf16.mxu1 %v10622_v2  ;;  %v7646_v15 = vpop.f32.mrb[37].mxu0  ;;  %v7998_v2 = vld [vmem:[%s14458_s17 + $0x2a8] sm:$0xff] }
0x14d9   :  { %v7648_v53 = vpop.f32.mrb[38].mxu0  ;;  %8310 = vmatprep.mubr.f32.mxu1 %v7646_v15  ;;  %v10654_v6 = vpack.c.bf16 %v7998_v2, %v7997_v59  ;;  %v7984_v15 = vld [vmem:[%s14458_s17 + $0x238] sm:$0xff]  ;;  %v13906_v18 = vpop.f32.mrb[20].mxu1  ;;  %v8013_v2 = vld [vmem:[%s14458_s17 + $0x320] sm:$0xff] }
0x14da   :  { %v7649_v55 = vpop.f32.mrb[39].mxu0  ;;  %v10660_v53 = vpack.c.bf16 %v7984_v15, %v7983_v14  ;;  %v13914_v31 = vpop.f32.mrb[21].mxu1  ;;  %v8018_v14 = vld [vmem:[%s14458_s17 + $0x348] sm:$0xff]  ;;  %v8035_v15 = vld [vmem:[%s14458_s17 + $0x3d0] sm:$0xff] }
0x14db   :  { %10625 = vmatpush3.bf16.msra.mxu1 %v10624_v9  ;;  %v7982_v9 = vld [vmem:[%s14458_s17 + $0x228] sm:$0xff]  ;;  %v10662_v55 = vpack.c.bf16 %v8002_v17, %v8001_v16  ;;  %v8036_v16 = vld [vmem:[%s14458_s17 + $0x3d8] sm:$0xff] }
0x14dc   :  { %10627 = vmatprep.subr.bf16.mxu1 %v10626_v12  ;;  %v10656_v12 = vpack.c.bf16 %v7982_v9, %v7981_v8  ;;  %v8016_v8 = vld [vmem:[%s14458_s17 + $0x338] sm:$0xff]  ;;  %v8033_v9 = vld [vmem:[%s14458_s17 + $0x3c0] sm:$0xff] }
0x14df   :  { %10629 = vmatpush3.bf16.msra.mxu1 %v10628_v35  ;;  %v13793_v60 = vpop.f32.mrb[40].mxu0  ;;  %v7985_v35 = vld [vmem:[%s14458_s17 + $0x240] sm:$0xff] }
0x14e0   :  { %10631 = vmatprep.subr.bf16.mxu1 %v10630_v21  ;;  %v7687_v20 = vpop.f32.mrb[41].mxu0  ;;  %v7986_v21 = vld [vmem:[%s14458_s17 + $0x248] sm:$0xff] }
0x14e1   :  { %v7689_v24 = vpop.f32.mrb[42].mxu0  ;;  %v10664_v34 = vpack.c.bf16 %v7986_v21, %v7985_v35  ;;  %v8020_v35 = vld [vmem:[%s14458_s17 + $0x358] sm:$0xff]  ;;  %v8037_v21 = vld [vmem:[%s14458_s17 + $0x3e0] sm:$0xff] }
0x14e2   :  { %v7690_v33 = vpop.f32.mrb[43].mxu0 }
0x14e3   :  { %10633 = vmatpush3.bf16.msra.mxu1 %v10632_v45  ;;  %v7987_v45 = vld [vmem:[%s14458_s17 + $0x250] sm:$0xff]  ;;  %v7989_v33 = vld [vmem:[%s14458_s17 + $0x260] sm:$0xff] }
0x14e4   :  { %10635 = vmatprep.subr.bf16.mxu1 %v10634_v39  ;;  %v7988_v39 = vld [vmem:[%s14458_s17 + $0x258] sm:$0xff] }
0x14e5   :  { %v10668_v23 = vpack.c.bf16 %v7988_v39, %v7987_v45  ;;  %v8022_v45 = vld [vmem:[%s14458_s17 + $0x368] sm:$0xff]  ;;  %v8039_v39 = vld [vmem:[%s14458_s17 + $0x3f0] sm:$0xff] }
0x14e7   :  { %10637 = vmatpush3.bf16.msra.mxu1 %v10636_v36  ;;  %v13819_v54 = vpop.f32.mrb[44].mxu0  ;;  %v7990_v36 = vld [vmem:[%s14458_s17 + $0x268] sm:$0xff] }
0x14e8   :  { %10639 = vmatprep.subr.bf16.mxu1 %v10638_v56  ;;  %v13827_v42 = vpop.f32.mrb[45].mxu0  ;;  %v7853_v56 = vpop.f32.mrb[22].mxu1  ;;  %v10672_v30 = vpack.c.bf16 %v7990_v36, %v7989_v33  ;;  %v8024_v33 = vld [vmem:[%s14458_s17 + $0x378] sm:$0xff]  ;;  %v8057_v36 = vld [vmem:[%s14458_s17 + $0x480] sm:$0xff] }
0x14e9   :  { %v7730_v43 = vpop.f32.mrb[46].mxu0  ;;  %v7854_v38 = vpop.f32.mrb[23].mxu1  ;;  %v8058_v56 = vld [vmem:[%s14458_s17 + $0x488] sm:$0xff] }
0x14ea   :  { %v7731_v44 = vpop.f32.mrb[47].mxu0  ;;  %v10678_v43 = vpack.c.bf16 %v8026_v28, %v8025_v29  ;;  %v10710_v38 = vpack.c.bf16 %v8058_v56, %v8057_v36  ;;  %v8060_v29 = vld [vmem:[%s14458_s17 + $0x498] sm:$0xff] }
0x14eb   :  { %10641 = vmatpush3.bf16.msra.mxu1 %v10640_v40  ;;  %v10674_v40 = vpack.c.bf16 %v8008_v37, %v8007_v22  ;;  %v8009_v44 = vld [vmem:[%s14458_s17 + $0x300] sm:$0xff]  ;;  %v8092_v36 = vld [vmem:[%s14458_s17 + $0x598] sm:$0xff] }
0x14ec   :  { %10643 = vmatprep.subr.bf16.mxu1 %v10642_v26  ;;  %v7991_v26 = vld [vmem:[%s14458_s17 + $0x270] sm:$0xff] }
0x14ed   :  { %v10676_v27 = vpack.c.bf16 %v7992_v41, %v7991_v26  ;;  %v8059_v41 = vld [vmem:[%s14458_s17 + $0x490] sm:$0xff] }
0x14ef   :  { %10645 = vmatpush3.bf16.msra.mxu1 %v10644_v47  ;;  %v13847_v61 = vpop.f32.mrb[48].mxu0  ;;  %v8010_v47 = vld [vmem:[%s14458_s17 + $0x308] sm:$0xff] }
0x14f0   :  { %10647 = vmatprep.subr.bf16.mxu1 %v10646_v48  ;;  %v13855_v1 = vpop.f32.mrb[49].mxu0  ;;  %v8027_v48 = vld [vmem:[%s14458_s17 + $0x390] sm:$0xff]  ;;  %v10680_v50 = vpack.c.bf16 %v8010_v47, %v8009_v44  ;;  %v10714_v44 = vpack.c.bf16 %v8060_v29, %v8059_v41  ;;  %v8094_v41 = vld [vmem:[%s14458_s17 + $0x5a8] sm:$0xff] }
0x14f1   :  { %v7812_v62 = vpop.f32.mrb[50].mxu0  ;;  %v10682_v51 = vpack.c.bf16 %v8028_v49, %v8027_v48  ;;  %v8043_v47 = vld [vmem:[%s14458_s17 + $0x410] sm:$0xff]  ;;  %v8044_v48 = vld [vmem:[%s14458_s17 + $0x418] sm:$0xff]  ;;  %v8061_v49 = vld [vmem:[%s14458_s17 + $0x4a0] sm:$0xff] }
0x14f2   :  { %8311 = vmatmul.mubr.f32.vlgmr.msra.gmra.mrb[26].mxu1 %v13767_v10  ;;  %v7813_v3 = vpop.f32.mrb[51].mxu0  ;;  %v8000_v10 = vld [vmem:[%s14458_s17 + $0x2b8] sm:$0xff]  ;;  %v8014_v62 = vld [vmem:[%s14458_s17 + $0x328] sm:$0xff] }
0x14f3   :  { %10649 = vmatpush3.bf16.msra.mxu1 %v10648_v52  ;;  %8380 = vmatprep.mubr.f32.mxu1 %v7687_v20  ;;  %v10658_v13 = vpack.c.bf16 %v8000_v10, %v7999_v11  ;;  %v8006_v20 = vld [vmem:[%s14458_s17 + $0x2e8] sm:$0xff]  ;;  %v8012_v52 = vld [vmem:[%s14458_s17 + $0x318] sm:$0xff]  ;;  %v8031_v3 = vld [vmem:[%s14458_s17 + $0x3b0] sm:$0xff] }
0x14f4   :  { %10651 = vmatprep.subr.bf16.mxu1 %v10650_v25  ;;  %v10670_v24 = vpack.c.bf16 %v8006_v20, %v8005_v19  ;;  %v8029_v25 = vld [vmem:[%s14458_s17 + $0x3a0] sm:$0xff]  ;;  %v10684_v0 = vpack.c.bf16 %v8012_v52, %v8011_v32  ;;  %v8034_v11 = vld [vmem:[%s14458_s17 + $0x3c8] sm:$0xff]  ;;  %v8040_v19 = vld [vmem:[%s14458_s17 + $0x3f8] sm:$0xff] }
0x14f5   :  { %v10686_v59 = vpack.c.bf16 %v8030_v63, %v8029_v25  ;;  %v8045_v52 = vld [vmem:[%s14458_s17 + $0x420] sm:$0xff]  ;;  %v8046_v25 = vld [vmem:[%s14458_s17 + $0x428] sm:$0xff]  ;;  %v8063_v63 = vld [vmem:[%s14458_s17 + $0x4b0] sm:$0xff] }
0x14f7   :  { %10653 = vmatpush3.bf16.msra.mxu1 %v10652_v5  ;;  %v14038_v37 = vpop.f32.mrb[52].mxu0 }
0x14f8   :  { %10655 = vmatprep.subr.bf16.mxu1 %v10654_v6  ;;  %v8015_v6 = vld [vmem:[%s14458_s17 + $0x330] sm:$0xff]  ;;  %v14046_v26 = vpop.f32.mrb[53].mxu0 }
0x14f9   :  { %v10692_v10 = vpack.c.bf16 %v8016_v8, %v8015_v6  ;;  %v7894_v28 = vpop.f32.mrb[54].mxu0  ;;  %v8050_v6 = vld [vmem:[%s14458_s17 + $0x448] sm:$0xff]  ;;  %v8067_v8 = vld [vmem:[%s14458_s17 + $0x4d0] sm:$0xff] }
0x14fb   :  { %10657 = vmatpush3.bf16.msra.mxu1 %v10656_v12  ;;  %v10694_v12 = vpack.c.bf16 %v8034_v11, %v8033_v9  ;;  %v8068_v9 = vld [vmem:[%s14458_s17 + $0x4d8] sm:$0xff] }
0x14fc   :  { %10659 = vmatprep.subr.bf16.mxu1 %v10658_v13  ;;  %v8017_v13 = vld [vmem:[%s14458_s17 + $0x340] sm:$0xff] }
0x14fd   :  { %v10696_v17 = vpack.c.bf16 %v8018_v14, %v8017_v13  ;;  %v8052_v13 = vld [vmem:[%s14458_s17 + $0x458] sm:$0xff]  ;;  %v8069_v14 = vld [vmem:[%s14458_s17 + $0x4e0] sm:$0xff] }
0x14ff   :  { %10661 = vmatpush3.bf16.msra.mxu1 %v10660_v53  ;;  %v10698_v53 = vpack.c.bf16 %v8036_v16, %v8035_v15  ;;  %v8070_v15 = vld [vmem:[%s14458_s17 + $0x4e8] sm:$0xff] }
0x1500   :  { %10663 = vmatprep.subr.bf16.mxu1 %v10662_v55  ;;  %v8019_v55 = vld [vmem:[%s14458_s17 + $0x350] sm:$0xff] }
0x1501   :  { %v10700_v58 = vpack.c.bf16 %v8020_v35, %v8019_v55  ;;  %v8054_v55 = vld [vmem:[%s14458_s17 + $0x468] sm:$0xff]  ;;  %v8071_v35 = vld [vmem:[%s14458_s17 + $0x4f0] sm:$0xff] }
0x1503   :  { %10665 = vmatpush3.bf16.msra.mxu1 %v10664_v34  ;;  %v10702_v34 = vpack.c.bf16 %v8038_v57, %v8037_v21  ;;  %v8072_v21 = vld [vmem:[%s14458_s17 + $0x4f8] sm:$0xff] }
0x1504   :  { %10667 = vmatprep.subr.bf16.mxu1 %v10666_v46  ;;  %v8021_v46 = vld [vmem:[%s14458_s17 + $0x360] sm:$0xff] }
0x1505   :  { %v10704_v20 = vpack.c.bf16 %v8022_v45, %v8021_v46  ;;  %v8056_v46 = vld [vmem:[%s14458_s17 + $0x478] sm:$0xff]  ;;  %v8089_v45 = vld [vmem:[%s14458_s17 + $0x580] sm:$0xff] }
0x1507   :  { %10669 = vmatpush3.bf16.msra.mxu1 %v10668_v23  ;;  %v10706_v23 = vpack.c.bf16 %v8040_v19, %v8039_v39  ;;  %v8090_v39 = vld [vmem:[%s14458_s17 + $0x588] sm:$0xff] }
0x1508   :  { %10671 = vmatprep.subr.bf16.mxu1 %v10670_v24  ;;  %v8023_v24 = vld [vmem:[%s14458_s17 + $0x370] sm:$0xff] }
0x1509   :  { %v10708_v22 = vpack.c.bf16 %v8024_v33, %v8023_v24  ;;  %v8074_v24 = vld [vmem:[%s14458_s17 + $0x508] sm:$0xff]  ;;  %v8091_v33 = vld [vmem:[%s14458_s17 + $0x590] sm:$0xff] }
0x150b   :  { %10673 = vmatpush3.bf16.msra.mxu1 %v10672_v30  ;;  %v8041_v30 = vld [vmem:[%s14458_s17 + $0x400] sm:$0xff] }
0x150c   :  { %10675 = vmatprep.subr.bf16.mxu1 %v10674_v40  ;;  %v8042_v40 = vld [vmem:[%s14458_s17 + $0x408] sm:$0xff] }
0x150f   :  { %10677 = vmatpush3.bf16.msra.mxu1 %v10676_v27  ;;  %v7895_v27 = vpop.f32.mrb[55].mxu0 }
0x1510   :  { %10679 = vmatprep.subr.bf16.mxu1 %v10678_v43  ;;  %v10712_v43 = vpack.c.bf16 %v8042_v40, %v8041_v30  ;;  %v8076_v30 = vld [vmem:[%s14458_s17 + $0x518] sm:$0xff]  ;;  %v8093_v40 = vld [vmem:[%s14458_s17 + $0x5a0] sm:$0xff] }
0x1511   :  { %v10750_v28 = vpack.c.bf16 %v8094_v41, %v8093_v40  ;;  %v8077_v27 = vld [vmem:[%s14458_s17 + $0x520] sm:$0xff]  ;;  %v8130_v40 = vld [vmem:[%s14458_s17 + $0x6c8] sm:$0xff] }
0x1512   :  { %8381 = vmatmul.mubr.f32.vlgmr.msra.gmra.mrb[28].mxu1 %v13793_v60  ;;  %v8032_v60 = vld [vmem:[%s14458_s17 + $0x3b8] sm:$0xff] }
0x1513   :  { %10681 = vmatpush3.bf16.msra.mxu1 %v10680_v50  ;;  %8450 = vmatprep.mubr.f32.mxu1 %v13827_v42  ;;  %v10688_v42 = vpack.c.bf16 %v8014_v62, %v8013_v2  ;;  %v10690_v5 = vpack.c.bf16 %v8032_v60, %v8031_v3  ;;  %v8062_v50 = vld [vmem:[%s14458_s17 + $0x4a8] sm:$0xff]  ;;  %v8048_v2 = vld [vmem:[%s14458_s17 + $0x438] sm:$0xff]  ;;  %v8065_v62 = vld [vmem:[%s14458_s17 + $0x4c0] sm:$0xff] }
0x1514   :  { %10683 = vmatprep.subr.bf16.mxu1 %v10682_v51  ;;  %v10716_v51 = vpack.c.bf16 %v8044_v48, %v8043_v47  ;;  %v10718_v32 = vpack.c.bf16 %v8062_v50, %v8061_v49  ;;  %v8066_v3 = vld [vmem:[%s14458_s17 + $0x4c8] sm:$0xff]  ;;  %v8079_v48 = vld [vmem:[%s14458_s17 + $0x530] sm:$0xff]  ;;  %v8080_v49 = vld [vmem:[%s14458_s17 + $0x538] sm:$0xff] }
0x1515   :  { %v8097_v50 = vld [vmem:[%s14458_s17 + $0x5c0] sm:$0xff] }
0x1517   :  { %10685 = vmatpush3.bf16.msra.mxu1 %v10684_v0 }
0x1518   :  { %10687 = vmatprep.subr.bf16.mxu1 %v10686_v59  ;;  %v8047_v59 = vld [vmem:[%s14458_s17 + $0x430] sm:$0xff] }
0x1519   :  { %v10724_v60 = vpack.c.bf16 %v8048_v2, %v8047_v59  ;;  %v8083_v2 = vld [vmem:[%s14458_s17 + $0x550] sm:$0xff] }
0x151b   :  { %10689 = vmatpush3.bf16.msra.mxu1 %v10688_v42  ;;  %v10726_v42 = vpack.c.bf16 %v8066_v3, %v8065_v62  ;;  %v8084_v62 = vld [vmem:[%s14458_s17 + $0x558] sm:$0xff]  ;;  %v8101_v3 = vld [vmem:[%s14458_s17 + $0x5e0] sm:$0xff] }
0x151c   :  { %10691 = vmatprep.subr.bf16.mxu1 %v10690_v5  ;;  %v8049_v5 = vld [vmem:[%s14458_s17 + $0x440] sm:$0xff] }
0x151d   :  { %v10728_v11 = vpack.c.bf16 %v8050_v6, %v8049_v5  ;;  %v8085_v6 = vld [vmem:[%s14458_s17 + $0x560] sm:$0xff] }
0x151f   :  { %10693 = vmatpush3.bf16.msra.mxu1 %v10692_v10  ;;  %v10730_v10 = vpack.c.bf16 %v8068_v9, %v8067_v8  ;;  %v8086_v8 = vld [vmem:[%s14458_s17 + $0x568] sm:$0xff]  ;;  %v8103_v9 = vld [vmem:[%s14458_s17 + $0x5f0] sm:$0xff] }
0x1520   :  { %10695 = vmatprep.subr.bf16.mxu1 %v10694_v12  ;;  %v8051_v12 = vld [vmem:[%s14458_s17 + $0x450] sm:$0xff] }
0x1521   :  { %v10732_v16 = vpack.c.bf16 %v8052_v13, %v8051_v12  ;;  %v8087_v13 = vld [vmem:[%s14458_s17 + $0x570] sm:$0xff] }
0x1523   :  { %10697 = vmatpush3.bf16.msra.mxu1 %v10696_v17  ;;  %v10734_v17 = vpack.c.bf16 %v8070_v15, %v8069_v14  ;;  %v8088_v14 = vld [vmem:[%s14458_s17 + $0x578] sm:$0xff]  ;;  %v8121_v15 = vld [vmem:[%s14458_s17 + $0x680] sm:$0xff] }
0x1524   :  { %10699 = vmatprep.subr.bf16.mxu1 %v10698_v53  ;;  %v8053_v53 = vld [vmem:[%s14458_s17 + $0x460] sm:$0xff] }
0x1525   :  { %v10736_v57 = vpack.c.bf16 %v8054_v55, %v8053_v53  ;;  %v8105_v55 = vld [vmem:[%s14458_s17 + $0x600] sm:$0xff] }
0x1527   :  { %10701 = vmatpush3.bf16.msra.mxu1 %v10700_v58  ;;  %v10738_v58 = vpack.c.bf16 %v8072_v21, %v8071_v35  ;;  %v8106_v35 = vld [vmem:[%s14458_s17 + $0x608] sm:$0xff]  ;;  %v8123_v21 = vld [vmem:[%s14458_s17 + $0x690] sm:$0xff] }
0x1528   :  { %10703 = vmatprep.subr.bf16.mxu1 %v10702_v34  ;;  %v8055_v34 = vld [vmem:[%s14458_s17 + $0x470] sm:$0xff] }
0x1529   :  { %v10740_v19 = vpack.c.bf16 %v8056_v46, %v8055_v34  ;;  %v8107_v46 = vld [vmem:[%s14458_s17 + $0x610] sm:$0xff] }
0x152b   :  { %10705 = vmatpush3.bf16.msra.mxu1 %v10704_v20  ;;  %v10742_v20 = vpack.c.bf16 %v8090_v39, %v8089_v45  ;;  %v8108_v45 = vld [vmem:[%s14458_s17 + $0x618] sm:$0xff]  ;;  %v8125_v39 = vld [vmem:[%s14458_s17 + $0x6a0] sm:$0xff] }
0x152c   :  { %10707 = vmatprep.subr.bf16.mxu1 %v10706_v23  ;;  %v8073_v23 = vld [vmem:[%s14458_s17 + $0x500] sm:$0xff] }
0x152d   :  { %v10744_v56 = vpack.c.bf16 %v8074_v24, %v8073_v23  ;;  %v8109_v24 = vld [vmem:[%s14458_s17 + $0x620] sm:$0xff] }
0x152f   :  { %10709 = vmatpush3.bf16.msra.mxu1 %v10708_v22  ;;  %v10746_v22 = vpack.c.bf16 %v8092_v36, %v8091_v33  ;;  %v8110_v33 = vld [vmem:[%s14458_s17 + $0x628] sm:$0xff]  ;;  %v8127_v36 = vld [vmem:[%s14458_s17 + $0x6b0] sm:$0xff] }
0x1530   :  { %10711 = vmatprep.subr.bf16.mxu1 %v10710_v38  ;;  %v8075_v38 = vld [vmem:[%s14458_s17 + $0x510] sm:$0xff] }
0x1531   :  { %v10748_v29 = vpack.c.bf16 %v8076_v30, %v8075_v38  ;;  %v8112_v38 = vld [vmem:[%s14458_s17 + $0x638] sm:$0xff]  ;;  %v8129_v30 = vld [vmem:[%s14458_s17 + $0x6c0] sm:$0xff] }
0x1532   :  { %8451 = vmatmul.mubr.f32.vlgmr.msra.gmra.mrb[30].mxu1 %v13819_v54  ;;  %v8064_v54 = vld [vmem:[%s14458_s17 + $0x4b8] sm:$0xff] }
0x1533   :  { %10713 = vmatpush3.bf16.msra.mxu1 %v10712_v43  ;;  %8520 = vmatprep.mubr.f32.mxu1 %v13765_v7  ;;  %v10720_v7 = vpack.c.bf16 %v8046_v25, %v8045_v52  ;;  %v10722_v0 = vpack.c.bf16 %v8064_v54, %v8063_v63  ;;  %v8078_v43 = vld [vmem:[%s14458_s17 + $0x528] sm:$0xff]  ;;  %v8081_v25 = vld [vmem:[%s14458_s17 + $0x540] sm:$0xff]  ;;  %v8099_v54 = vld [vmem:[%s14458_s17 + $0x5d0] sm:$0xff] }
0x1534   :  { %10715 = vmatprep.subr.bf16.mxu1 %v10714_v44  ;;  %v8095_v44 = vld [vmem:[%s14458_s17 + $0x5b0] sm:$0xff]  ;;  %v8082_v63 = vld [vmem:[%s14458_s17 + $0x548] sm:$0xff] }
0x1537   :  { %10717 = vmatpush3.bf16.msra.mxu1 %v10716_v51  ;;  %v8098_v51 = vld [vmem:[%s14458_s17 + $0x5c8] sm:$0xff] }
0x1538   :  { %10719 = vmatprep.subr.bf16.mxu1 %v10718_v32  ;;  %v10756_v32 = vpack.c.bf16 %v8080_v49, %v8079_v48  ;;  %v10758_v52 = vpack.c.bf16 %v8098_v51, %v8097_v50  ;;  %v8116_v48 = vld [vmem:[%s14458_s17 + $0x658] sm:$0xff]  ;;  %v8133_v49 = vld [vmem:[%s14458_s17 + $0x6e0] sm:$0xff]  ;;  %v8134_v50 = vld [vmem:[%s14458_s17 + $0x6e8] sm:$0xff] }
0x153b   :  { %10721 = vmatpush3.bf16.msra.mxu1 %v10720_v7  ;;  %v8100_v7 = vld [vmem:[%s14458_s17 + $0x5d8] sm:$0xff] }
0x153c   :  { %10723 = vmatprep.subr.bf16.mxu1 %v10722_v0  ;;  %v10760_v0 = vpack.c.bf16 %v8082_v63, %v8081_v25  ;;  %v10762_v59 = vpack.c.bf16 %v8100_v7, %v8099_v54  ;;  %v8118_v25 = vld [vmem:[%s14458_s17 + $0x668] sm:$0xff]  ;;  %v8135_v63 = vld [vmem:[%s14458_s17 + $0x6f0] sm:$0xff]  ;;  %v8136_v54 = vld [vmem:[%s14458_s17 + $0x6f8] sm:$0xff] }
0x153f   :  { %10725 = vmatpush3.bf16.msra.mxu1 %v10724_v60  ;;  %v8102_v60 = vld [vmem:[%s14458_s17 + $0x5e8] sm:$0xff] }
0x1540   :  { %10727 = vmatprep.subr.bf16.mxu1 %v10726_v42  ;;  %v10764_v42 = vpack.c.bf16 %v8084_v62, %v8083_v2  ;;  %v10766_v5 = vpack.c.bf16 %v8102_v60, %v8101_v3  ;;  %v8120_v2 = vld [vmem:[%s14458_s17 + $0x678] sm:$0xff]  ;;  %v8153_v62 = vld [vmem:[%s14458_s17 + $0x780] sm:$0xff]  ;;  %v8154_v3 = vld [vmem:[%s14458_s17 + $0x788] sm:$0xff] }
0x1543   :  { %10729 = vmatpush3.bf16.msra.mxu1 %v10728_v11  ;;  %v8104_v11 = vld [vmem:[%s14458_s17 + $0x5f8] sm:$0xff] }
0x1544   :  { %10731 = vmatprep.subr.bf16.mxu1 %v10730_v10  ;;  %v10768_v10 = vpack.c.bf16 %v8086_v8, %v8085_v6  ;;  %v10770_v12 = vpack.c.bf16 %v8104_v11, %v8103_v9  ;;  %v8138_v6 = vld [vmem:[%s14458_s17 + $0x708] sm:$0xff]  ;;  %v8155_v8 = vld [vmem:[%s14458_s17 + $0x790] sm:$0xff]  ;;  %v8156_v9 = vld [vmem:[%s14458_s17 + $0x798] sm:$0xff] }
0x1547   :  { %10733 = vmatpush3.bf16.msra.mxu1 %v10732_v16  ;;  %v8122_v16 = vld [vmem:[%s14458_s17 + $0x688] sm:$0xff] }
0x1548   :  { %10735 = vmatprep.subr.bf16.mxu1 %v10734_v17  ;;  %v10772_v17 = vpack.c.bf16 %v8088_v14, %v8087_v13  ;;  %v10774_v53 = vpack.c.bf16 %v8122_v16, %v8121_v15  ;;  %v8140_v13 = vld [vmem:[%s14458_s17 + $0x718] sm:$0xff]  ;;  %v8157_v14 = vld [vmem:[%s14458_s17 + $0x7a0] sm:$0xff]  ;;  %v8158_v15 = vld [vmem:[%s14458_s17 + $0x7a8] sm:$0xff] }
0x154b   :  { %10737 = vmatpush3.bf16.msra.mxu1 %v10736_v57  ;;  %v8124_v57 = vld [vmem:[%s14458_s17 + $0x698] sm:$0xff] }
0x154c   :  { %10739 = vmatprep.subr.bf16.mxu1 %v10738_v58  ;;  %v10776_v58 = vpack.c.bf16 %v8106_v35, %v8105_v55  ;;  %v10778_v34 = vpack.c.bf16 %v8124_v57, %v8123_v21  ;;  %v8142_v55 = vld [vmem:[%s14458_s17 + $0x728] sm:$0xff]  ;;  %v8159_v35 = vld [vmem:[%s14458_s17 + $0x7b0] sm:$0xff] }
0x154d   :  { %v8143_v57 = vld [vmem:[%s14458_s17 + $0x730] sm:$0xff] }
0x154f   :  { %10741 = vmatpush3.bf16.msra.mxu1 %v10740_v19  ;;  %v8126_v19 = vld [vmem:[%s14458_s17 + $0x6a8] sm:$0xff] }
0x1550   :  { %10743 = vmatprep.subr.bf16.mxu1 %v10742_v20  ;;  %v10780_v20 = vpack.c.bf16 %v8108_v45, %v8107_v46  ;;  %v10782_v23 = vpack.c.bf16 %v8126_v19, %v8125_v39  ;;  %v8162_v46 = vld [vmem:[%s14458_s17 + $0x7c8] sm:$0xff]  ;;  %v8145_v19 = vld [vmem:[%s14458_s17 + $0x740] sm:$0xff] }
0x1552   :  { %8521 = vmatmul.mubr.f32.vlgmr.msra.gmra.mrb[32].mxu1 %v13757_v4  ;;  %v8096_v4 = vld [vmem:[%s14458_s17 + $0x5b8] sm:$0xff] }
0x1553   :  { %10745 = vmatpush3.bf16.msra.mxu1 %v10744_v56  ;;  %8590 = vmatprep.mubr.f32.mxu1 %v13855_v1  ;;  %v10752_v1 = vpack.c.bf16 %v8078_v43, %v8077_v27  ;;  %v10754_v47 = vpack.c.bf16 %v8096_v4, %v8095_v44  ;;  %v8114_v27 = vld [vmem:[%s14458_s17 + $0x648] sm:$0xff]  ;;  %v8131_v43 = vld [vmem:[%s14458_s17 + $0x6d0] sm:$0xff]  ;;  %v8132_v44 = vld [vmem:[%s14458_s17 + $0x6d8] sm:$0xff] }
0x1554   :  { %10747 = vmatprep.subr.bf16.mxu1 %v10746_v22  ;;  %v8111_v22 = vld [vmem:[%s14458_s17 + $0x630] sm:$0xff] }
0x1555   :  { %v10788_v41 = vpack.c.bf16 %v8112_v38, %v8111_v22  ;;  %v8166_v22 = vld [vmem:[%s14458_s17 + $0x7e8] sm:$0xff] }
0x1557   :  { %10749 = vmatpush3.bf16.msra.mxu1 %v10748_v29  ;;  %v10790_v29 = vpack.c.bf16 %v8130_v40, %v8129_v30  ;;  %v8149_v40 = vld [vmem:[%s14458_s17 + $0x760] sm:$0xff] }
0x1558   :  { %10751 = vmatprep.subr.bf16.mxu1 %v10750_v28  ;;  %v8113_v28 = vld [vmem:[%s14458_s17 + $0x640] sm:$0xff] }
0x1559   :  { %v10792_v4 = vpack.c.bf16 %v8114_v27, %v8113_v28  ;;  %v8167_v28 = vld [vmem:[%s14458_s17 + $0x7f0] sm:$0xff]  ;;  %v8168_v27 = vld [vmem:[%s14458_s17 + $0x7f8] sm:$0xff] }
0x155b   :  { %10753 = vmatpush3.bf16.msra.mxu1 %v10752_v1  ;;  %v10794_v1 = vpack.c.bf16 %v8132_v44, %v8131_v43 }
0x155c   :  { %10755 = vmatprep.subr.bf16.mxu1 %v10754_v47  ;;  %v8115_v47 = vld [vmem:[%s14458_s17 + $0x650] sm:$0xff] }
0x155d   :  { %v10796_v51 = vpack.c.bf16 %v8116_v48, %v8115_v47  ;;  %v8151_v47 = vld [vmem:[%s14458_s17 + $0x770] sm:$0xff]  ;;  %v8152_v48 = vld [vmem:[%s14458_s17 + $0x778] sm:$0xff] }
0x155f   :  { %10757 = vmatpush3.bf16.msra.mxu1 %v10756_v32  ;;  %v10798_v32 = vpack.c.bf16 %v8134_v50, %v8133_v49  ;;  %v10836_v49 = vpack.c.bf16 %v8152_v48, %v8151_v47  ;;  %v9947_v50 = vld [vmem:[#allocation12] ss:$0 sm:$0xff] }
0x1560   :  { %10759 = vmatprep.subr.bf16.mxu1 %v10758_v52  ;;  %v8117_v52 = vld [vmem:[%s14458_s17 + $0x660] sm:$0xff] }
0x1561   :  { %v10800_v7 = vpack.c.bf16 %v8118_v25, %v8117_v52 }
0x1563   :  { %10761 = vmatpush3.bf16.msra.mxu1 %v10760_v0  ;;  %v10802_v0 = vpack.c.bf16 %v8136_v54, %v8135_v63 }
0x1564   :  { %10763 = vmatprep.subr.bf16.mxu1 %v10762_v59  ;;  %v8119_v59 = vld [vmem:[%s14458_s17 + $0x670] sm:$0xff] }
0x1565   :  { %v10804_v60 = vpack.c.bf16 %v8120_v2, %v8119_v59 }
0x1567   :  { %10765 = vmatpush3.bf16.msra.mxu1 %v10764_v42  ;;  %v10806_v42 = vpack.c.bf16 %v8154_v3, %v8153_v62 }
0x1568   :  { %10767 = vmatprep.subr.bf16.mxu1 %v10766_v5  ;;  %v8137_v5 = vld [vmem:[%s14458_s17 + $0x700] sm:$0xff] }
0x1569   :  { %v10808_v11 = vpack.c.bf16 %v8138_v6, %v8137_v5 }
0x156b   :  { %10769 = vmatpush3.bf16.msra.mxu1 %v10768_v10  ;;  %v10810_v10 = vpack.c.bf16 %v8156_v9, %v8155_v8 }
0x156c   :  { %10771 = vmatprep.subr.bf16.mxu1 %v10770_v12  ;;  %v8139_v12 = vld [vmem:[%s14458_s17 + $0x710] sm:$0xff] }
0x156d   :  { %v10812_v16 = vpack.c.bf16 %v8140_v13, %v8139_v12 }
0x156f   :  { %10773 = vmatpush3.bf16.msra.mxu1 %v10772_v17  ;;  %v10814_v17 = vpack.c.bf16 %v8158_v15, %v8157_v14 }
0x1570   :  { %10775 = vmatprep.subr.bf16.mxu1 %v10774_v53  ;;  %v8141_v53 = vld [vmem:[%s14458_s17 + $0x720] sm:$0xff] }
0x1572   :  { %8591 = vmatmul.mubr.f32.vlgmr.msra.gmra.mrb[34].mxu1 %v13847_v61  ;;  %v8128_v61 = vld [vmem:[%s14458_s17 + $0x6b8] sm:$0xff] }
0x1573   :  { %10777 = vmatpush3.bf16.msra.mxu1 %v10776_v58  ;;  %8660 = vmatprep.mubr.f32.mxu1 %v13914_v31  ;;  %v10784_v31 = vpack.c.bf16 %v8110_v33, %v8109_v24  ;;  %v10786_v56 = vpack.c.bf16 %v8128_v61, %v8127_v36  ;;  %v8144_v58 = vld [vmem:[%s14458_s17 + $0x738] sm:$0xff]  ;;  %v8147_v61 = vld [vmem:[%s14458_s17 + $0x750] sm:$0xff] }
0x1574   :  { %10779 = vmatprep.subr.bf16.mxu1 %v10778_v34  ;;  %v8161_v34 = vld [vmem:[%s14458_s17 + $0x7c0] sm:$0xff]  ;;  %v10820_v45 = vpack.c.bf16 %v8144_v58, %v8143_v57  ;;  %v8164_v24 = vld [vmem:[%s14458_s17 + $0x7d8] sm:$0xff] }
0x1575   :  { %v10822_v39 = vpack.c.bf16 %v8162_v46, %v8161_v34 }
0x1577   :  { %10781 = vmatpush3.bf16.msra.mxu1 %v10780_v20  ;;  %v8146_v20 = vld [vmem:[%s14458_s17 + $0x748] sm:$0xff] }
0x1578   :  { %10783 = vmatprep.subr.bf16.mxu1 %v10782_v23  ;;  %v8163_v23 = vld [vmem:[%s14458_s17 + $0x7d0] sm:$0xff]  ;;  %v10824_v33 = vpack.c.bf16 %v8146_v20, %v8145_v19 }
0x1579   :  { %v10826_v36 = vpack.c.bf16 %v8164_v24, %v8163_v23 }
0x157b   :  { %10785 = vmatpush3.bf16.msra.mxu1 %v10784_v31  ;;  %v8148_v31 = vld [vmem:[%s14458_s17 + $0x758] sm:$0xff] }
0x157c   :  { %10787 = vmatprep.subr.bf16.mxu1 %v10786_v56  ;;  %v8165_v56 = vld [vmem:[%s14458_s17 + $0x7e0] sm:$0xff]  ;;  %v10828_v38 = vpack.c.bf16 %v8148_v31, %v8147_v61 }
0x157d   :  { %v10830_v30 = vpack.c.bf16 %v8166_v22, %v8165_v56 }
0x157f   :  { %10789 = vmatpush3.bf16.msra.mxu1 %v10788_v41  ;;  %v8150_v41 = vld [vmem:[%s14458_s17 + $0x768] sm:$0xff] }
0x1580   :  { %10791 = vmatprep.subr.bf16.mxu1 %v10790_v29 }
0x1583   :  { %10793 = vmatpush3.bf16.msra.mxu1 %v10792_v4  ;;  %v10832_v4 = vpack.c.bf16 %v8150_v41, %v8149_v40 }
0x1584   :  { %10795 = vmatprep.subr.bf16.mxu1 %v10794_v1  ;;  %v10834_v1 = vpack.c.bf16 %v8168_v27, %v8167_v28 }
0x1587   :  { %10797 = vmatpush3.bf16.msra.mxu1 %v10796_v51 }
0x1588   :  { %10799 = vmatprep.subr.bf16.mxu1 %v10798_v32 }
0x158b   :  { %10801 = vmatpush3.bf16.msra.mxu1 %v10800_v7 }
0x158c   :  { %10803 = vmatprep.subr.bf16.mxu1 %v10802_v0 }
0x158f   :  { %10805 = vmatpush3.bf16.msra.mxu1 %v10804_v60 }
0x1590   :  { %10807 = vmatprep.subr.bf16.mxu1 %v10806_v42 }
0x1592   :  { %8661 = vmatmul.mubr.f32.vlgmr.msra.gmra.mrb[36].mxu1 %v13906_v18  ;;  %v8160_v18 = vld [vmem:[%s14458_s17 + $0x7b8] sm:$0xff]  ;;  %s11291_s17 = smov [#allocation13]  }
0x1593   :  { %10809 = vmatpush3.bf16.msra.mxu1 %v10808_v11  ;;  %8730 = vmatprep.mubr.f32.mxu1 %v14046_v26  ;;  %v10816_v26 = vpack.c.bf16 %v8142_v55, %v8141_v53  ;;  %v10818_v21 = vpack.c.bf16 %v8160_v18, %v8159_v35  ;;  %s8744_s29 = sshll.u32 %s11291_s17, 4  ;;  %s8745_s29 = int_to_ptr.vmem [resolvable:$true] %s8744_s29 }
0x1594   :  { %10811 = vmatprep.subr.bf16.mxu1 %v10810_v10  ;;  %s11232_s10 = scalar_lea.vmem %s8745_s29, 32  ;;  %p11237_p13 = scmp.lt.s32.totalorder %s8745_s29, %s8745_s29 }
0x1595   :  { %p11233_p12 = scmp.ne.s32.totalorder %s8745_s29, %s11232_s10  ;;  %p11238_p0 = scmp.lt.s32.totalorder %s11232_s10, %s11232_s10 }
0x1597   :  { %10813 = vmatpush3.bf16.msra.mxu1 %v10812_v16  ;;  %p11239_p1 = por %p11238_p0, %p11237_p13 }
0x1598   :  { %10815 = vmatprep.subr.bf16.mxu1 %v10814_v17 }
0x1599   :  { %p11240_p2 = pnand %p11239_p1, %p11233_p12 }
0x159b   :  { %10817 = vmatpush3.bf16.msra.mxu1 %v10816_v26 }
0x159c   :  { %10819 = vmatprep.subr.bf16.mxu1 %v10818_v21 }
0x159f   :  { %10821 = vmatpush3.bf16.msra.mxu1 %v10820_v45 }
0x15a0   :  { %10823 = vmatprep.subr.bf16.mxu1 %v10822_v39 }
0x15a3   :  { %10825 = vmatpush3.bf16.msra.mxu1 %v10824_v33 }
0x15a4   :  { %10827 = vmatprep.subr.bf16.mxu1 %v10826_v36 }
0x15a5   :  { %v10080_v29 = vpop.f32.mrb[24].mxu1 }
0x15a6   :  { %v10081_v43 = vpop.f32.mrb[25].mxu1 }
0x15a7   :  { %v10082_v44 = vadd.f32 %v10081_v43, %v10080_v29  ;;  %10829 = vmatpush3.bf16.msra.mxu1 %v10828_v38 }
0x15a8   :  { %10831 = vmatprep.subr.bf16.mxu1 %v10830_v30 }
0x15a9   :  { %v8243_v52 = vadd.f32 %v10082_v44, %v9947_v50 }
0x15ab   :  { %10833 = vmatpush3.bf16.msra.mxu1 %v10832_v4 }
0x15ac   :  { %10835 = vmatprep.subr.bf16.mxu1 %v10834_v1 }
0x15af   :  { %10837 = vmatpush3.bf16.msra.mxu1 %v10836_v49 }
0x15b2   :  { %8731 = vmatmul.mubr.f32.vlgmr.msra.gmra.mrb[38].mxu1 %v14038_v37 }
0x15c5   :  { %v10115_v51 = vpop.f32.mrb[26].mxu1 }
0x15c6   :  { %v10116_v32 = vpop.f32.mrb[27].mxu1 }
0x15c7   :  { %v10117_v25 = vadd.f32 %v10116_v32, %v10115_v51 }
0x15c9   :  { %v8313_v63 = vadd.f32 %v10117_v25, %v8243_v52 }
0x15e5   :  { %v10150_v54 = vpop.f32.mrb[28].mxu1 }
0x15e6   :  { %v10151_v7 = vpop.f32.mrb[29].mxu1 }
0x15e7   :  { %v10152_v0 = vadd.f32 %v10151_v7, %v10150_v54 }
0x15e9   :  { %v8383_v59 = vadd.f32 %v10152_v0, %v8313_v63 }
0x1605   :  { %v10185_v2 = vpop.f32.mrb[30].mxu1 }
0x1606   :  { %v10186_v62 = vpop.f32.mrb[31].mxu1 }
0x1607   :  { %v10187_v3 = vadd.f32 %v10186_v62, %v10185_v2 }
0x1609   :  { %v8453_v60 = vadd.f32 %v10187_v3, %v8383_v59 }
0x1625   :  { %v10220_v42 = vpop.f32.mrb[32].mxu1 }
0x1626   :  { %v10221_v5 = vpop.f32.mrb[33].mxu1 }
0x1627   :  { %v10222_v6 = vadd.f32 %v10221_v5, %v10220_v42 }
0x1629   :  { %v8523_v8 = vadd.f32 %v10222_v6, %v8453_v60 }
0x1645   :  { %v10255_v9 = vpop.f32.mrb[34].mxu1 }
0x1646   :  { %v10256_v37 = vpop.f32.mrb[35].mxu1 }
0x1647   :  { %v10257_v11 = vadd.f32 %v10256_v37, %v10255_v9 }
0x1649   :  { %v8593_v10 = vadd.f32 %v10257_v11, %v8523_v8 }
0x1665   :  { %v10290_v12 = vpop.f32.mrb[36].mxu1 }
0x1666   :  { %v10291_v13 = vpop.f32.mrb[37].mxu1 }
0x1667   :  { %v10292_v14 = vadd.f32 %v10291_v13, %v10290_v12 }
0x1669   :  { %v8663_v15 = vadd.f32 %v10292_v14, %v8593_v10 }
0x1685   :  { %v10325_v16 = vpop.f32.mrb[38].mxu1 }
0x1686   :  { %v10326_v17 = vpop.f32.mrb[39].mxu1 }
0x1687   :  { %v10327_v53 = vadd.f32 %v10326_v17, %v10325_v16 }
0x1689   :  { %v8733_v55 = vadd.f32 %v10327_v53, %v8663_v15 }
0x168b   :  { %8737 = vst.msk [vmem:[#allocation13] sm:$0x3] %vm8736_vm5, %v8733_v55 }
0x168c   :  { %11243 = shalt.err (!%p11240_p2)
}
0x168d   :  { %s11244_s8 = scalar_lea.hbm %s14460_s19, 32 }
0x168e   :  { %p11245_p3 = scmp.ne.s32.totalorder %s14460_s19, %s11244_s8  ;;  %p11248_p4 = scmp.lt.u32.totalorder %s11244_s8, %s14460_s19 }
0x1690   :  { %p11250_p5 = pnand %p11248_p4, %p11245_p3 }
0x1692   :  { %11253 = shalt.err (!%p11250_p5)
}
0x1693   :  { %8747 = dma.vmem_to_hbm [thread:$0]  %s8745_s29, 32, %s14460_s19, [#allocation6]  }
0x1694   :  { %11276 = dma.done.wait [#allocation6], 32  }
0x1695   :  { %11277 = vsyncadd [#allocation6], 4294967264 }
0x1696   :  { %8751 = vsyncpa [#allocation5], 1 }
0x1697   :  { %8752 = vsyncpa [#allocation8], 1 }
0x1698   :  { %8753 = vsyncpa [#allocation11], 1 }
0x1699   :  { %8754 = vsyncpa [#allocation6], 1 }
0x169a   :  { %8755 = vsyncmov [#allocation3] }
0x169d   :  { %s8756_s12 = vpop.sfrf %8755 }
0x169e   :  { %p9948_p6 = scmp.ne.s32.totalorder %s8756_s12, 0 }
0x16a0   :  { %8760 = shalt.err (%p9948_p6)  }
0x16a1   :  { %8762 = vsyncmov [#allocation3 + $0x1] }
0x16a4   :  { %s8763_s13 = vpop.sfrf %8762 }
0x16a5   :  { %p9949_p7 = scmp.ne.s32.totalorder %s8763_s13, 0 }
0x16a7   :  { %8767 = shalt.err (%p9949_p7)  }
0x16a8   :  { %8769 = vsyncmov [#allocation3 + $0x2] }
0x16ab   :  { %s8770_s30 = vpop.sfrf %8769 }
0x16ac   :  { %p9950_p8 = scmp.ne.s32.totalorder %s8770_s30, 0 }
0x16ae   :  { %8774 = shalt.err (%p9950_p8)  }
0x16af   :  { %8776 = vsyncmov [#allocation3 + $0x3] }
0x16b2   :  { %s8777_s19 = vpop.sfrf %8776 }
0x16b3   :  { %p9951_p9 = scmp.ne.s32.totalorder %s8777_s19, 0 }
0x16b5   :  { %8781 = shalt.err (%p9951_p9)  }
0x16b6   :  { %8783 = vsyncmov [#allocation3 + $0x4] }
0x16b9   :  { %s8784_s15 = vpop.sfrf %8783 }
0x16ba   :  { %p9952_p10 = scmp.ne.s32.totalorder %s8784_s15, 0 }
0x16bc   :  { %8788 = shalt.err (%p9952_p10)  }
0x16bd   :  { %8790 = vsyncmov [#allocation3 + $0x5] }
0x16c0   :  { %s8791_s7 = vpop.sfrf %8790 }
0x16c1   :  { %p9953_p11 = scmp.ne.s32.totalorder %s8791_s7, 0 }
0x16c3   :  { %8795 = shalt.err (%p9953_p11)  }
0x16c4   :  { %8797 = vsyncmov [#allocation3 + $0x6] }
0x16c7   :  { %s8798_s1 = vpop.sfrf %8797 }
0x16c8   :  { %p9954_p12 = scmp.ne.s32.totalorder %s8798_s1, 0 }
0x16ca   :  { %8802 = shalt.err (%p9954_p12)  }
0x16cb   :  { %8804 = vsyncmov [#allocation3 + $0x7] }
0x16ce   :  { %s8805_s3 = vpop.sfrf %8804 }
0x16cf   :  { %p9955_p13 = scmp.ne.s32.totalorder %s8805_s3, 0 }
0x16d1   :  { %8809 = shalt.err (%p9955_p13)  }

</bundles_post_ra>
